<compile_context>
chip_gen: v6e
topology: v6e:2x2x1
jax: 0.10.0
libtpu: 0.0.40
codegen_flags: <defaults>
</compile_context>

<pallas_src>
import functools
import math

import jax
import jax.numpy as jnp
from jax.experimental import pallas as pl
from jax.experimental.pallas import tpu as pltpu


# ----------------------------- kernel helpers (traced inside the kernel) ---

def _layer_norm(x, w, b, eps=1e-5):
    # f32 statistics (v5e-safe); w, b are (1, E)
    mu = jnp.mean(x, axis=-1, keepdims=True)
    var = jnp.mean((x - mu) ** 2, axis=-1, keepdims=True)
    return (x - mu) * jax.lax.rsqrt(var + eps) * w + b


def _attn_core(qp, kp, vp, mask, bt, len_q, len_k, num_heads):
    """Score / softmax / PV core.

    qp: (bt*len_q, E) bf16 (attention scale already folded in),
    kp/vp: (bt*len_k, E) bf16, heads concatenated along lanes.
    mask: (bt, 1, len_k) additive f32 or None.
    Returns the lane-concatenated context slab (bt*len_q, E) bf16.
    """
    e_dim = qp.shape[-1]
    d_head = e_dim // num_heads

    ctx_rows = []
    for i in range(bt):
        rq = slice(i * len_q, (i + 1) * len_q)
        rk = slice(i * len_k, (i + 1) * len_k)
        head_out = []
        for h in range(num_heads):
            ln = slice(h * d_head, (h + 1) * d_head)
            qh = qp[rq, ln]                                   # (len_q, Dh) bf16
            kh = kp[rk, ln]                                   # (len_k, Dh) bf16
            vh = vp[rk, ln]                                   # (len_k, Dh) bf16
            # scores without materialising k^T (contract last dims), f32 acc
            s = jax.lax.dot_general(qh, kh, (((1,), (1,)), ((), ())),
                                    preferred_element_type=jnp.float32)
            if mask is not None:
                s = s + mask[i]                               # additive mask, f32
            s = s - jnp.max(s, axis=-1, keepdims=True)
            p = jnp.exp(s)
            p = p * pl.reciprocal(jnp.sum(p, axis=-1, keepdims=True), approx=True)
            oh = jnp.dot(p.astype(jnp.bfloat16), vh,
                         preferred_element_type=jnp.float32)  # (len_q, Dh)
            head_out.append(oh.astype(jnp.bfloat16))
        ctx_rows.append(head_out[0] if num_heads == 1
                        else jnp.concatenate(head_out, axis=-1))      # (len_q, E)
    return ctx_rows[0] if bt == 1 else jnp.concatenate(ctx_rows, axis=0)


# --------------------------------------------------------------- kernel ----

def _decoder_layer_kernel(
    tgt_ref, mem_ref, pos_ref, qpos_ref, mask_ref,
    sa_wqk_ref, sa_bqk_ref, sa_wv_ref, sa_bv_ref, sa_wo_ref, sa_bo_ref,
    ca_wq_ref, ca_bq_ref, ca_wk_ref, ca_bk_ref, ca_wv_ref, ca_bv_ref,
    ca_wo_ref, ca_bo_ref,
    lin1_w_ref, lin1_b_ref, lin2_w_ref, lin2_b_ref,
    ln1_w_ref, ln1_b_ref, ln2_w_ref, ln2_b_ref, ln3_w_ref, ln3_b_ref,
    out_ref, *, num_heads,
):
    rows_q, e_dim = tgt_ref.shape          # rows_q = bt * L
    rows_k = mem_ref.shape[0]              # rows_k = bt * S
    bt = mask_ref.shape[0]
    L = rows_q // bt
    S = rows_k // bt

    tgt = tgt_ref[...]                     # (bt*L, E) f32 residual stream
    qpos = qpos_ref[...].astype(jnp.float32)   # (bt*L, E)
    mask = mask_ref[...]                   # (bt, 1, S) additive f32

    # --- self attention (query = key = tgt + query_pos, value = tgt) ---
    q_in = (tgt + qpos).astype(jnp.bfloat16)
    qk = jnp.dot(q_in, sa_wqk_ref[...],
                 preferred_element_type=jnp.float32) + sa_bqk_ref[...]   # (bt*L, 2E)
    qp = qk[:, :e_dim].astype(jnp.bfloat16)
    kp = qk[:, e_dim:].astype(jnp.bfloat16)
    vp = (jnp.dot(tgt.astype(jnp.bfloat16), sa_wv_ref[...],
                  preferred_element_type=jnp.float32)
          + sa_bv_ref[...]).astype(jnp.bfloat16)
    ctx = _attn_core(qp, kp, vp, None, bt, L, L, num_heads)             # (bt*L, E) bf16
    sa_out = jnp.dot(ctx, sa_wo_ref[...],
                     preferred_element_type=jnp.float32) + sa_bo_ref[...]
    t = _layer_norm(tgt + sa_out, ln1_w_ref[...], ln1_b_ref[...])       # dropout1 == id

    # --- cross attention (q = t + query_pos, k = memory + pos, v = memory) ---
    mem_bf = mem_ref[...]                                               # bf16
    k_in = mem_bf + pos_ref[...]                                        # bf16
    q2_in = (t + qpos).astype(jnp.bfloat16)
    qp2 = (jnp.dot(q2_in, ca_wq_ref[...],
                   preferred_element_type=jnp.float32)
           + ca_bq_ref[...]).astype(jnp.bfloat16)
    kp2 = (jnp.dot(k_in, ca_wk_ref[...],
                   preferred_element_type=jnp.float32)
           + ca_bk_ref[...]).astype(jnp.bfloat16)
    vp2 = (jnp.dot(mem_bf, ca_wv_ref[...],
                   preferred_element_type=jnp.float32)
           + ca_bv_ref[...]).astype(jnp.bfloat16)
    ctx2 = _attn_core(qp2, kp2, vp2, mask, bt, L, S, num_heads)         # (bt*L, E) bf16
    ca_out = jnp.dot(ctx2, ca_wo_ref[...],
                     preferred_element_type=jnp.float32) + ca_bo_ref[...]
    t = _layer_norm(t + ca_out, ln2_w_ref[...], ln2_b_ref[...])         # dropout2 == id

    # --- feed-forward (linear1 -> ReLU -> linear2), bf16 matmuls, f32 acc ---
    h1 = jnp.dot(t.astype(jnp.bfloat16), lin1_w_ref[...],
                 preferred_element_type=jnp.float32) + lin1_b_ref[...]
    h1 = jnp.maximum(h1, 0.0)                                           # inner dropout == id
    ff = jnp.dot(h1.astype(jnp.bfloat16), lin2_w_ref[...],
                 preferred_element_type=jnp.float32) + lin2_b_ref[...]
    t = _layer_norm(t + ff, ln3_w_ref[...], ln3_b_ref[...])             # dropout3 == id

    out_ref[...] = t


# -------------------------------------------- host-side weight preparation -

def _prep_attn(in_w, in_b, out_w, out_b, num_heads, fuse_qk):
    """PyTorch MHA weights -> (in, out)-layout, lane-dense, bf16 operands.

    Returns, with the 1/sqrt(Dh) attention scale folded into Wq/bq:
      fuse_qk=True : (Wqk (E,2E), bqk (1,2E), Wv (E,E), bv (1,E), Wo (E,E), bo (1,E))
      fuse_qk=False: (Wq, bq, Wk, bk, Wv, bv, Wo, bo)
    """
    e_dim = out_w.shape[0]
    d_head = e_dim // num_heads
    scale = 1.0 / math.sqrt(d_head)

    w_q = in_w[:e_dim].T * scale                       # (E_in, E_out), scale folded
    w_k = in_w[e_dim:2 * e_dim].T
    w_v = in_w[2 * e_dim:].T
    b_q = in_b[0, :e_dim] * scale
    b_k = in_b[0, e_dim:2 * e_dim]
    b_v = in_b[0, 2 * e_dim:]
    wo = out_w.T.astype(jnp.bfloat16)                  # (E_concat_heads, E)
    bo = out_b.astype(jnp.float32)                     # (1, E)

    def as_bias(b):
        return b.reshape(1, -1).astype(jnp.float32)

    if fuse_qk:
        wqk = jnp.concatenate([w_q, w_k], axis=1).astype(jnp.bfloat16)   # (E, 2E)
        bqk = jnp.concatenate([b_q, b_k]).reshape(1, 2 * e_dim).astype(jnp.float32)
        return (wqk, bqk, w_v.astype(jnp.bfloat16), as_bias(b_v), wo, bo)
    return (w_q.astype(jnp.bfloat16), as_bias(b_q),
            w_k.astype(jnp.bfloat16), as_bias(b_k),
            w_v.astype(jnp.bfloat16), as_bias(b_v), wo, bo)


# ------------------------------------------------------------- wrapper -----

def transformer_decoder_layer(tgt, memory, pos, query_pos, params,
                              memory_key_padding_mask=None, num_heads=4,
                              batch_block=2):
    """tgt/query_pos: (L, N, E), memory/pos: (S, N, E) seq-first (PyTorch MHA).
    memory_key_padding_mask: bool (N, S), True = ignore. Returns (L, N, E)."""
    L, N, E = tgt.shape
    S = memory.shape[0]
    bt = batch_block
    assert N % bt == 0, "batch must be divisible by batch_block"
    assert E % num_heads == 0
    # (8,128) sublane rule for the row-slab blocks (last dim == full E is ok).
    assert (bt * L) % 8 == 0 or bt == N, "bt*L must be a multiple of 8 (or bt == N)"
    assert (bt * S) % 8 == 0 or bt == N, "bt*S must be a multiple of 8 (or bt == N)"

    # Batch-first, fold batch into the row (sublane) dimension. tgt stays f32
    # (residual stream / layernorm stats); memory/pos/query_pos only feed bf16
    # MXU operands, so ship them as bf16 (half the activation DMA + VMEM).
    tgt_rows = jnp.transpose(tgt, (1, 0, 2)).reshape(N * L, E).astype(jnp.float32)
    qpos_rows = jnp.transpose(query_pos, (1, 0, 2)).reshape(N * L, E).astype(jnp.bfloat16)
    mem_rows = jnp.transpose(memory, (1, 0, 2)).reshape(N * S, E).astype(jnp.bfloat16)
    pos_rows = jnp.transpose(pos, (1, 0, 2)).reshape(N * S, E).astype(jnp.bfloat16)

    if memory_key_padding_mask is None:
        add_mask = jnp.zeros((N, 1, S), jnp.float32)
    else:
        add_mask = jnp.where(memory_key_padding_mask[:, None, :],
                             -1e30, 0.0).astype(jnp.float32)

    sa = _prep_attn(params["sa_in_w"], params["sa_in_b"],
                    params["sa_out_w"], params["sa_out_b"], num_heads, fuse_qk=True)
    ca = _prep_attn(params["ca_in_w"], params["ca_in_b"],
                    params["ca_out_w"], params["ca_out_b"], num_heads, fuse_qk=False)
    ffn_ln = (
        params["lin1_w"].T.astype(jnp.bfloat16), params["lin1_b"].astype(jnp.float32),
        params["lin2_w"].T.astype(jnp.bfloat16), params["lin2_b"].astype(jnp.float32),
        params["ln1_w"].astype(jnp.float32), params["ln1_b"].astype(jnp.float32),
        params["ln2_w"].astype(jnp.float32), params["ln2_b"].astype(jnp.float32),
        params["ln3_w"].astype(jnp.float32), params["ln3_b"].astype(jnp.float32),
    )
    param_list = list(sa) + list(ca) + list(ffn_ln)
    dim_ff = params["lin1_w"].shape[0]

    data_specs = [
        pl.BlockSpec((bt * L, E), lambda b: (b, 0)),       # tgt rows (f32)
        pl.BlockSpec((bt * S, E), lambda b: (b, 0)),       # memory rows (bf16)
        pl.BlockSpec((bt * S, E), lambda b: (b, 0)),       # pos rows (bf16)
        pl.BlockSpec((bt * L, E), lambda b: (b, 0)),       # query_pos rows (bf16)
        pl.BlockSpec((bt, 1, S), lambda b: (b, 0, 0)),     # additive mask (f32)
    ]
    # Full-array parameter blocks; bind ndim eagerly (no late-binding closure bug).
    param_specs = [
        pl.BlockSpec(p.shape, lambda b, nd=p.ndim: (0,) * nd) for p in param_list
    ]

    # ----- scoped VMEM budget from actual block / param sizes (+ headroom) ---
    act_block_bytes = (bt * L * E * 4        # tgt (f32)
                       + bt * S * E * 2      # memory (bf16)
                       + bt * S * E * 2      # pos (bf16)
                       + bt * L * E * 2      # query_pos (bf16)
                       + bt * S * 4          # mask (f32)
                       + bt * L * E * 4)     # output (f32)
    param_bytes = sum(int(p.size) * p.dtype.itemsize for p in param_list)
    inter_bytes = 4 * (12 * bt * max(L, S) * E      # projected slabs / residuals (f32)
                       + 2 * bt * L * dim_ff        # FFN hidden
                       + 4 * L * S)                 # scores / probs per (i, h)
    vmem_limit = int(min(100 << 20,
                         max(32 << 20,
                             2 * (act_block_bytes + param_bytes)
                             + inter_bytes + (4 << 20))))

    kernel = functools.partial(_decoder_layer_kernel, num_heads=num_heads)

    out_rows = pl.pallas_call(
        kernel,
        out_shape=jax.ShapeDtypeStruct((N * L, E), jnp.float32),
        grid=(N // bt,),
        in_specs=data_specs + param_specs,
        out_specs=pl.BlockSpec((bt * L, E), lambda b: (b, 0)),
        compiler_params=pltpu.CompilerParams(
            dimension_semantics=("parallel",),     # keep a parallel axis (v7x: 2 TCs)
            vmem_limit_bytes=vmem_limit,
        ),
    )(tgt_rows, mem_rows, pos_rows, qpos_rows, add_mask, *param_list)

    return jnp.transpose(out_rows.reshape(N, L, E), (1, 0, 2))   # back to (L, N, E)


# ----------------------------------------------------------- reference -----

def _reference(tgt, memory, pos, query_pos, params, mask_bool, num_heads):
    """Pure-JAX f32 reference, same math, batch loop."""
    def mha(q_in, k_in, v_in, in_w, in_b, out_w, out_b, add_mask):
        E = q_in.shape[-1]
        Dh = E // num_heads
        qp = q_in @ in_w[:E].T + in_b[0, :E]
        kp = k_in @ in_w[E:2 * E].T + in_b[0, E:2 * E]
        vp = v_in @ in_w[2 * E:].T + in_b[0, 2 * E:]
        outs = []
        for h in range(num_heads):
            sl = slice(h * Dh, (h + 1) * Dh)
            s = (qp[:, sl] / math.sqrt(Dh)) @ kp[:, sl].T + add_mask
            p = jax.nn.softmax(s, axis=-1)
            outs.append(p @ vp[:, sl])
        return jnp.concatenate(outs, -1) @ out_w.T + out_b[0]

    def ln(x, w, b):
        mu = x.mean(-1, keepdims=True)
        var = ((x - mu) ** 2).mean(-1, keepdims=True)
        return (x - mu) / jnp.sqrt(var + 1e-5) * w[0] + b[0]

    L, N, E = tgt.shape
    outs = []
    for n in range(N):
        t = tgt[:, n]
        m = memory[:, n]
        p_ = pos[:, n]
        qp_ = query_pos[:, n]
        amask = jnp.where(mask_bool[n][None, :], -1e30, 0.0)
        q = t + qp_
        t2 = mha(q, q, t, params["sa_in_w"], params["sa_in_b"],
                 params["sa_out_w"], params["sa_out_b"], 0.0)
        t = ln(t + t2, params["ln1_w"], params["ln1_b"])
        t2 = mha(t + qp_, m + p_, m, params["ca_in_w"], params["ca_in_b"],
                 params["ca_out_w"], params["ca_out_b"], amask)
        t = ln(t + t2, params["ln2_w"], params["ln2_b"])
        h1 = jnp.maximum(t @ params["lin1_w"].T + params["lin1_b"][0], 0.0)
        t2 = h1 @ params["lin2_w"].T + params["lin2_b"][0]
        t = ln(t + t2, params["ln3_w"], params["ln3_b"])
        outs.append(t)
    return jnp.stack(outs, axis=1)  # (L, N, E)


# ---------------------------------------------------------------- main -----

if __name__ == "__main__":
    d_model, num_heads, dim_ff = 32, 4, 64
    L, S, N = 8, 16, 4          # num queries, memory length, batch
    batch_block = 2             # 2 batch elements per grid step -> grid=(2,), parallel

    key = jax.random.PRNGKey(0)
    keys = jax.random.split(key, 24)

    def rnd(k, shape, scale=0.05):
        return (scale * jax.random.normal(k, shape)).astype(jnp.float32)

    params = {
        "sa_in_w": rnd(keys[0], (3 * d_model, d_model)),
        "sa_in_b": rnd(keys[1], (1, 3 * d_model)),
        "sa_out_w": rnd(keys[2], (d_model, d_model)),
        "sa_out_b": rnd(keys[3], (1, d_model)),
        "ca_in_w": rnd(keys[4], (3 * d_model, d_model)),
        "ca_in_b": rnd(keys[5], (1, 3 * d_model)),
        "ca_out_w": rnd(keys[6], (d_model, d_model)),
        "ca_out_b": rnd(keys[7], (1, d_model)),
        "lin1_w": rnd(keys[8], (dim_ff, d_model)),
        "lin1_b": rnd(keys[9], (1, dim_ff)),
        "lin2_w": rnd(keys[10], (d_model, dim_ff)),
        "lin2_b": rnd(keys[11], (1, d_model)),
        "ln1_w": jnp.ones((1, d_model), jnp.float32),
        "ln1_b": jnp.zeros((1, d_model), jnp.float32),
        "ln2_w": jnp.ones((1, d_model), jnp.float32),
        "ln2_b": jnp.zeros((1, d_model), jnp.float32),
        "ln3_w": jnp.ones((1, d_model), jnp.float32),
        "ln3_b": jnp.zeros((1, d_model), jnp.float32),
    }

    tgt = rnd(keys[12], (L, N, d_model), scale=0.5)        # (L, N, E) seq-first
    memory = rnd(keys[13], (S, N, d_model), scale=0.5)     # (S, N, E)
    pos = rnd(keys[14], (S, N, d_model), scale=0.5)
    query_pos = rnd(keys[15], (L, N, d_model), scale=0.5)
    # pad the last 3 memory positions of batch element 1
    mask_bool = jnp.zeros((N, S), bool).at[1, S - 3:].set(True)

    out = transformer_decoder_layer(tgt, memory, pos, query_pos, params,
                                    memory_key_padding_mask=mask_bool,
                                    num_heads=num_heads,
                                    batch_block=batch_block)
    out = jax.block_until_ready(out)

    ref = _reference(tgt, memory, pos, query_pos, params, mask_bool, num_heads)
    assert out.shape == (L, N, d_model)
    # bf16 MXU operands + bf16 mem/pos/qpos activations + approx reciprocal
    # vs. an all-f32 reference -> loose tolerance
    err = float(jnp.max(jnp.abs(out - ref)))
    assert err < 6e-2, f"mismatch vs pure-JAX reference: {err}"

    print("KERNEL_OK")
</pallas_src>

<mosaic_0001>
module attributes {stable_mosaic.version = 11 : i64} {
  func.func @_decoder_layer_kernel(%arg0: i32, %arg1: memref<16x32xf32, #tpu.memory_space<vmem>>, %arg2: memref<32x32xbf16, #tpu.memory_space<vmem>>, %arg3: memref<32x32xbf16, #tpu.memory_space<vmem>>, %arg4: memref<16x32xbf16, #tpu.memory_space<vmem>>, %arg5: memref<2x1x16xf32, #tpu.memory_space<vmem>>, %arg6: memref<32x64xbf16, #tpu.memory_space<vmem>>, %arg7: memref<1x64xf32, #tpu.memory_space<vmem>>, %arg8: memref<32x32xbf16, #tpu.memory_space<vmem>>, %arg9: memref<1x32xf32, #tpu.memory_space<vmem>>, %arg10: memref<32x32xbf16, #tpu.memory_space<vmem>>, %arg11: memref<1x32xf32, #tpu.memory_space<vmem>>, %arg12: memref<32x32xbf16, #tpu.memory_space<vmem>>, %arg13: memref<1x32xf32, #tpu.memory_space<vmem>>, %arg14: memref<32x32xbf16, #tpu.memory_space<vmem>>, %arg15: memref<1x32xf32, #tpu.memory_space<vmem>>, %arg16: memref<32x32xbf16, #tpu.memory_space<vmem>>, %arg17: memref<1x32xf32, #tpu.memory_space<vmem>>, %arg18: memref<32x32xbf16, #tpu.memory_space<vmem>>, %arg19: memref<1x32xf32, #tpu.memory_space<vmem>>, %arg20: memref<32x64xbf16, #tpu.memory_space<vmem>>, %arg21: memref<1x64xf32, #tpu.memory_space<vmem>>, %arg22: memref<64x32xbf16, #tpu.memory_space<vmem>>, %arg23: memref<1x32xf32, #tpu.memory_space<vmem>>, %arg24: memref<1x32xf32, #tpu.memory_space<vmem>>, %arg25: memref<1x32xf32, #tpu.memory_space<vmem>>, %arg26: memref<1x32xf32, #tpu.memory_space<vmem>>, %arg27: memref<1x32xf32, #tpu.memory_space<vmem>>, %arg28: memref<1x32xf32, #tpu.memory_space<vmem>>, %arg29: memref<1x32xf32, #tpu.memory_space<vmem>>, %arg30: memref<16x32xf32, #tpu.memory_space<vmem>>) attributes {dimension_semantics = [#tpu.dimension_semantics<parallel>], iteration_bounds = array<i64: 2>, scalar_prefetch = 0 : i64, scratch_operands = 0 : i64, tpu.core_type = #tpu.core_type<tc>, window_params = [{transform_indices = @transform_0, window_bounds = array<i64: 16, 32>}, {transform_indices = @transform_1, window_bounds = array<i64: 32, 32>}, {transform_indices = @transform_2, window_bounds = array<i64: 32, 32>}, {transform_indices = @transform_3, window_bounds = array<i64: 16, 32>}, {transform_indices = @transform_4, window_bounds = array<i64: 2, 1, 16>}, {pipeline_mode = #tpu.pipeline_mode<synchronous>, transform_indices = @transform_5, window_bounds = array<i64: 32, 64>}, {pipeline_mode = #tpu.pipeline_mode<synchronous>, transform_indices = @transform_6, window_bounds = array<i64: 1, 64>}, {pipeline_mode = #tpu.pipeline_mode<synchronous>, transform_indices = @transform_7, window_bounds = array<i64: 32, 32>}, {pipeline_mode = #tpu.pipeline_mode<synchronous>, transform_indices = @transform_8, window_bounds = array<i64: 1, 32>}, {pipeline_mode = #tpu.pipeline_mode<synchronous>, transform_indices = @transform_9, window_bounds = array<i64: 32, 32>}, {pipeline_mode = #tpu.pipeline_mode<synchronous>, transform_indices = @transform_10, window_bounds = array<i64: 1, 32>}, {pipeline_mode = #tpu.pipeline_mode<synchronous>, transform_indices = @transform_11, window_bounds = array<i64: 32, 32>}, {pipeline_mode = #tpu.pipeline_mode<synchronous>, transform_indices = @transform_12, window_bounds = array<i64: 1, 32>}, {pipeline_mode = #tpu.pipeline_mode<synchronous>, transform_indices = @transform_13, window_bounds = array<i64: 32, 32>}, {pipeline_mode = #tpu.pipeline_mode<synchronous>, transform_indices = @transform_14, window_bounds = array<i64: 1, 32>}, {pipeline_mode = #tpu.pipeline_mode<synchronous>, transform_indices = @transform_15, window_bounds = array<i64: 32, 32>}, {pipeline_mode = #tpu.pipeline_mode<synchronous>, transform_indices = @transform_16, window_bounds = array<i64: 1, 32>}, {pipeline_mode = #tpu.pipeline_mode<synchronous>, transform_indices = @transform_17, window_bounds = array<i64: 32, 32>}, {pipeline_mode = #tpu.pipeline_mode<synchronous>, transform_indices = @transform_18, window_bounds = array<i64: 1, 32>}, {pipeline_mode = #tpu.pipeline_mode<synchronous>, transform_indices = @transform_19, window_bounds = array<i64: 32, 64>}, {pipeline_mode = #tpu.pipeline_mode<synchronous>, transform_indices = @transform_20, window_bounds = array<i64: 1, 64>}, {pipeline_mode = #tpu.pipeline_mode<synchronous>, transform_indices = @transform_21, window_bounds = array<i64: 64, 32>}, {pipeline_mode = #tpu.pipeline_mode<synchronous>, transform_indices = @transform_22, window_bounds = array<i64: 1, 32>}, {pipeline_mode = #tpu.pipeline_mode<synchronous>, transform_indices = @transform_23, window_bounds = array<i64: 1, 32>}, {pipeline_mode = #tpu.pipeline_mode<synchronous>, transform_indices = @transform_24, window_bounds = array<i64: 1, 32>}, {pipeline_mode = #tpu.pipeline_mode<synchronous>, transform_indices = @transform_25, window_bounds = array<i64: 1, 32>}, {pipeline_mode = #tpu.pipeline_mode<synchronous>, transform_indices = @transform_26, window_bounds = array<i64: 1, 32>}, {pipeline_mode = #tpu.pipeline_mode<synchronous>, transform_indices = @transform_27, window_bounds = array<i64: 1, 32>}, {pipeline_mode = #tpu.pipeline_mode<synchronous>, transform_indices = @transform_28, window_bounds = array<i64: 1, 32>}, {transform_indices = @transform_29, window_bounds = array<i64: 16, 32>}]} {
    %c0 = arith.constant 0 : index
    %c0_0 = arith.constant 0 : index
    %0 = vector.load %arg1[%c0, %c0_0] : memref<16x32xf32, #tpu.memory_space<vmem>>, vector<16x32xf32>
    %c0_1 = arith.constant 0 : index
    %c0_2 = arith.constant 0 : index
    %1 = vector.load %arg4[%c0_1, %c0_2] : memref<16x32xbf16, #tpu.memory_space<vmem>>, vector<16x32xbf16>
    %2 = arith.extf %1 : vector<16x32xbf16> to vector<16x32xf32>
    %c0_3 = arith.constant 0 : index
    %c0_4 = arith.constant 0 : index
    %c0_5 = arith.constant 0 : index
    %3 = vector.load %arg5[%c0_3, %c0_4, %c0_5] : memref<2x1x16xf32, #tpu.memory_space<vmem>>, vector<2x1x16xf32>
    %4 = arith.addf %0, %2 : vector<16x32xf32>
    %5 = arith.truncf %4 : vector<16x32xf32> to vector<16x32xbf16>
    %c0_6 = arith.constant 0 : index
    %c0_7 = arith.constant 0 : index
    %6 = vector.load %arg6[%c0_6, %c0_7] : memref<32x64xbf16, #tpu.memory_space<vmem>>, vector<32x64xbf16>
    %cst = arith.constant dense<0.000000e+00> : vector<16x64xf32>
    %7 = tpu.matmul %5, %6, %cst {dimension_numbers = #tpu.dot_dimension_numbers<[1], [0], [0], [1], [0, 0, 1, 1], [], []>} : vector<16x32xbf16>, vector<32x64xbf16>, vector<16x64xf32> -> vector<16x64xf32>
    %c0_8 = arith.constant 0 : index
    %c0_9 = arith.constant 0 : index
    %8 = vector.load %arg7[%c0_8, %c0_9] : memref<1x64xf32, #tpu.memory_space<vmem>>, vector<1x64xf32>
    %9 = vector.broadcast %8 : vector<1x64xf32> to vector<16x64xf32>
    %10 = arith.addf %7, %9 : vector<16x64xf32>
    %11 = vector.extract_strided_slice %10 {offsets = [0, 0], sizes = [16, 32], strides = [1, 1]} : vector<16x64xf32> to vector<16x32xf32>
    %12 = arith.truncf %11 : vector<16x32xf32> to vector<16x32xbf16>
    %13 = vector.extract_strided_slice %10 {offsets = [0, 32], sizes = [16, 32], strides = [1, 1]} : vector<16x64xf32> to vector<16x32xf32>
    %14 = arith.truncf %13 : vector<16x32xf32> to vector<16x32xbf16>
    %15 = arith.truncf %0 : vector<16x32xf32> to vector<16x32xbf16>
    %c0_10 = arith.constant 0 : index
    %c0_11 = arith.constant 0 : index
    %16 = vector.load %arg8[%c0_10, %c0_11] : memref<32x32xbf16, #tpu.memory_space<vmem>>, vector<32x32xbf16>
    %cst_12 = arith.constant dense<0.000000e+00> : vector<16x32xf32>
    %17 = tpu.matmul %15, %16, %cst_12 {dimension_numbers = #tpu.dot_dimension_numbers<[1], [0], [0], [1], [0, 0, 1, 1], [], []>} : vector<16x32xbf16>, vector<32x32xbf16>, vector<16x32xf32> -> vector<16x32xf32>
    %c0_13 = arith.constant 0 : index
    %c0_14 = arith.constant 0 : index
    %18 = vector.load %arg9[%c0_13, %c0_14] : memref<1x32xf32, #tpu.memory_space<vmem>>, vector<1x32xf32>
    %19 = vector.broadcast %18 : vector<1x32xf32> to vector<16x32xf32>
    %20 = arith.addf %17, %19 : vector<16x32xf32>
    %21 = arith.truncf %20 : vector<16x32xf32> to vector<16x32xbf16>
    %22 = vector.extract_strided_slice %12 {offsets = [0, 0], sizes = [8, 8], strides = [1, 1]} : vector<16x32xbf16> to vector<8x8xbf16>
    %23 = vector.extract_strided_slice %14 {offsets = [0, 0], sizes = [8, 8], strides = [1, 1]} : vector<16x32xbf16> to vector<8x8xbf16>
    %24 = vector.extract_strided_slice %21 {offsets = [0, 0], sizes = [8, 8], strides = [1, 1]} : vector<16x32xbf16> to vector<8x8xbf16>
    %cst_15 = arith.constant dense<0.000000e+00> : vector<8x8xf32>
    %25 = tpu.matmul %22, %23, %cst_15 {dimension_numbers = #tpu.dot_dimension_numbers<[1], [1], [0], [0], [0, 0, 1, 0], [], []>} : vector<8x8xbf16>, vector<8x8xbf16>, vector<8x8xf32> -> vector<8x8xf32>
    %cst_16 = arith.constant dense<0xFF800000> : vector<8xf32>
    %26 = vector.multi_reduction <maximumf>, %25, %cst_16 [1] : vector<8x8xf32> to vector<8xf32>
    %27 = vector.shape_cast %26 : vector<8xf32> to vector<8x1xf32>
    %28 = vector.broadcast %27 : vector<8x1xf32> to vector<8x8xf32>
    %29 = arith.subf %25, %28 : vector<8x8xf32>
    %30 = math.exp %29 : vector<8x8xf32>
    %cst_17 = arith.constant dense<0.000000e+00> : vector<8xf32>
    %31 = vector.multi_reduction <add>, %30, %cst_17 [1] : vector<8x8xf32> to vector<8xf32>
    %32 = vector.shape_cast %31 : vector<8xf32> to vector<8x1xf32>
    %33 = tpu.reciprocal %32 {approx = true} : vector<8x1xf32> -> vector<8x1xf32>
    %34 = vector.broadcast %33 : vector<8x1xf32> to vector<8x8xf32>
    %35 = arith.mulf %30, %34 : vector<8x8xf32>
    %36 = arith.truncf %35 : vector<8x8xf32> to vector<8x8xbf16>
    %cst_18 = arith.constant dense<0.000000e+00> : vector<8x8xf32>
    %37 = tpu.matmul %36, %24, %cst_18 {dimension_numbers = #tpu.dot_dimension_numbers<[1], [0], [0], [1], [0, 0, 1, 1], [], []>} : vector<8x8xbf16>, vector<8x8xbf16>, vector<8x8xf32> -> vector<8x8xf32>
    %38 = arith.truncf %37 : vector<8x8xf32> to vector<8x8xbf16>
    %39 = vector.extract_strided_slice %12 {offsets = [0, 8], sizes = [8, 8], strides = [1, 1]} : vector<16x32xbf16> to vector<8x8xbf16>
    %40 = vector.extract_strided_slice %14 {offsets = [0, 8], sizes = [8, 8], strides = [1, 1]} : vector<16x32xbf16> to vector<8x8xbf16>
    %41 = vector.extract_strided_slice %21 {offsets = [0, 8], sizes = [8, 8], strides = [1, 1]} : vector<16x32xbf16> to vector<8x8xbf16>
    %cst_19 = arith.constant dense<0.000000e+00> : vector<8x8xf32>
    %42 = tpu.matmul %39, %40, %cst_19 {dimension_numbers = #tpu.dot_dimension_numbers<[1], [1], [0], [0], [0, 0, 1, 0], [], []>} : vector<8x8xbf16>, vector<8x8xbf16>, vector<8x8xf32> -> vector<8x8xf32>
    %cst_20 = arith.constant dense<0xFF800000> : vector<8xf32>
    %43 = vector.multi_reduction <maximumf>, %42, %cst_20 [1] : vector<8x8xf32> to vector<8xf32>
    %44 = vector.shape_cast %43 : vector<8xf32> to vector<8x1xf32>
    %45 = vector.broadcast %44 : vector<8x1xf32> to vector<8x8xf32>
    %46 = arith.subf %42, %45 : vector<8x8xf32>
    %47 = math.exp %46 : vector<8x8xf32>
    %cst_21 = arith.constant dense<0.000000e+00> : vector<8xf32>
    %48 = vector.multi_reduction <add>, %47, %cst_21 [1] : vector<8x8xf32> to vector<8xf32>
    %49 = vector.shape_cast %48 : vector<8xf32> to vector<8x1xf32>
    %50 = tpu.reciprocal %49 {approx = true} : vector<8x1xf32> -> vector<8x1xf32>
    %51 = vector.broadcast %50 : vector<8x1xf32> to vector<8x8xf32>
    %52 = arith.mulf %47, %51 : vector<8x8xf32>
    %53 = arith.truncf %52 : vector<8x8xf32> to vector<8x8xbf16>
    %cst_22 = arith.constant dense<0.000000e+00> : vector<8x8xf32>
    %54 = tpu.matmul %53, %41, %cst_22 {dimension_numbers = #tpu.dot_dimension_numbers<[1], [0], [0], [1], [0, 0, 1, 1], [], []>} : vector<8x8xbf16>, vector<8x8xbf16>, vector<8x8xf32> -> vector<8x8xf32>
    %55 = arith.truncf %54 : vector<8x8xf32> to vector<8x8xbf16>
    %56 = vector.extract_strided_slice %12 {offsets = [0, 16], sizes = [8, 8], strides = [1, 1]} : vector<16x32xbf16> to vector<8x8xbf16>
    %57 = vector.extract_strided_slice %14 {offsets = [0, 16], sizes = [8, 8], strides = [1, 1]} : vector<16x32xbf16> to vector<8x8xbf16>
    %58 = vector.extract_strided_slice %21 {offsets = [0, 16], sizes = [8, 8], strides = [1, 1]} : vector<16x32xbf16> to vector<8x8xbf16>
    %cst_23 = arith.constant dense<0.000000e+00> : vector<8x8xf32>
    %59 = tpu.matmul %56, %57, %cst_23 {dimension_numbers = #tpu.dot_dimension_numbers<[1], [1], [0], [0], [0, 0, 1, 0], [], []>} : vector<8x8xbf16>, vector<8x8xbf16>, vector<8x8xf32> -> vector<8x8xf32>
    %cst_24 = arith.constant dense<0xFF800000> : vector<8xf32>
    %60 = vector.multi_reduction <maximumf>, %59, %cst_24 [1] : vector<8x8xf32> to vector<8xf32>
    %61 = vector.shape_cast %60 : vector<8xf32> to vector<8x1xf32>
    %62 = vector.broadcast %61 : vector<8x1xf32> to vector<8x8xf32>
    %63 = arith.subf %59, %62 : vector<8x8xf32>
    %64 = math.exp %63 : vector<8x8xf32>
    %cst_25 = arith.constant dense<0.000000e+00> : vector<8xf32>
    %65 = vector.multi_reduction <add>, %64, %cst_25 [1] : vector<8x8xf32> to vector<8xf32>
    %66 = vector.shape_cast %65 : vector<8xf32> to vector<8x1xf32>
    %67 = tpu.reciprocal %66 {approx = true} : vector<8x1xf32> -> vector<8x1xf32>
    %68 = vector.broadcast %67 : vector<8x1xf32> to vector<8x8xf32>
    %69 = arith.mulf %64, %68 : vector<8x8xf32>
    %70 = arith.truncf %69 : vector<8x8xf32> to vector<8x8xbf16>
    %cst_26 = arith.constant dense<0.000000e+00> : vector<8x8xf32>
    %71 = tpu.matmul %70, %58, %cst_26 {dimension_numbers = #tpu.dot_dimension_numbers<[1], [0], [0], [1], [0, 0, 1, 1], [], []>} : vector<8x8xbf16>, vector<8x8xbf16>, vector<8x8xf32> -> vector<8x8xf32>
    %72 = arith.truncf %71 : vector<8x8xf32> to vector<8x8xbf16>
    %73 = vector.extract_strided_slice %12 {offsets = [0, 24], sizes = [8, 8], strides = [1, 1]} : vector<16x32xbf16> to vector<8x8xbf16>
    %74 = vector.extract_strided_slice %14 {offsets = [0, 24], sizes = [8, 8], strides = [1, 1]} : vector<16x32xbf16> to vector<8x8xbf16>
    %75 = vector.extract_strided_slice %21 {offsets = [0, 24], sizes = [8, 8], strides = [1, 1]} : vector<16x32xbf16> to vector<8x8xbf16>
    %cst_27 = arith.constant dense<0.000000e+00> : vector<8x8xf32>
    %76 = tpu.matmul %73, %74, %cst_27 {dimension_numbers = #tpu.dot_dimension_numbers<[1], [1], [0], [0], [0, 0, 1, 0], [], []>} : vector<8x8xbf16>, vector<8x8xbf16>, vector<8x8xf32> -> vector<8x8xf32>
    %cst_28 = arith.constant dense<0xFF800000> : vector<8xf32>
    %77 = vector.multi_reduction <maximumf>, %76, %cst_28 [1] : vector<8x8xf32> to vector<8xf32>
    %78 = vector.shape_cast %77 : vector<8xf32> to vector<8x1xf32>
    %79 = vector.broadcast %78 : vector<8x1xf32> to vector<8x8xf32>
    %80 = arith.subf %76, %79 : vector<8x8xf32>
    %81 = math.exp %80 : vector<8x8xf32>
    %cst_29 = arith.constant dense<0.000000e+00> : vector<8xf32>
    %82 = vector.multi_reduction <add>, %81, %cst_29 [1] : vector<8x8xf32> to vector<8xf32>
    %83 = vector.shape_cast %82 : vector<8xf32> to vector<8x1xf32>
    %84 = tpu.reciprocal %83 {approx = true} : vector<8x1xf32> -> vector<8x1xf32>
    %85 = vector.broadcast %84 : vector<8x1xf32> to vector<8x8xf32>
    %86 = arith.mulf %81, %85 : vector<8x8xf32>
    %87 = arith.truncf %86 : vector<8x8xf32> to vector<8x8xbf16>
    %cst_30 = arith.constant dense<0.000000e+00> : vector<8x8xf32>
    %88 = tpu.matmul %87, %75, %cst_30 {dimension_numbers = #tpu.dot_dimension_numbers<[1], [0], [0], [1], [0, 0, 1, 1], [], []>} : vector<8x8xbf16>, vector<8x8xbf16>, vector<8x8xf32> -> vector<8x8xf32>
    %89 = arith.truncf %88 : vector<8x8xf32> to vector<8x8xbf16>
    %90 = tpu.concatenate %38, %55, %72, %89 in 1 : vector<8x8xbf16>, vector<8x8xbf16>, vector<8x8xbf16>, vector<8x8xbf16> -> vector<8x32xbf16>
    %91 = vector.extract_strided_slice %12 {offsets = [8, 0], sizes = [8, 8], strides = [1, 1]} : vector<16x32xbf16> to vector<8x8xbf16>
    %92 = vector.extract_strided_slice %14 {offsets = [8, 0], sizes = [8, 8], strides = [1, 1]} : vector<16x32xbf16> to vector<8x8xbf16>
    %93 = vector.extract_strided_slice %21 {offsets = [8, 0], sizes = [8, 8], strides = [1, 1]} : vector<16x32xbf16> to vector<8x8xbf16>
    %cst_31 = arith.constant dense<0.000000e+00> : vector<8x8xf32>
    %94 = tpu.matmul %91, %92, %cst_31 {dimension_numbers = #tpu.dot_dimension_numbers<[1], [1], [0], [0], [0, 0, 1, 0], [], []>} : vector<8x8xbf16>, vector<8x8xbf16>, vector<8x8xf32> -> vector<8x8xf32>
    %cst_32 = arith.constant dense<0xFF800000> : vector<8xf32>
    %95 = vector.multi_reduction <maximumf>, %94, %cst_32 [1] : vector<8x8xf32> to vector<8xf32>
    %96 = vector.shape_cast %95 : vector<8xf32> to vector<8x1xf32>
    %97 = vector.broadcast %96 : vector<8x1xf32> to vector<8x8xf32>
    %98 = arith.subf %94, %97 : vector<8x8xf32>
    %99 = math.exp %98 : vector<8x8xf32>
    %cst_33 = arith.constant dense<0.000000e+00> : vector<8xf32>
    %100 = vector.multi_reduction <add>, %99, %cst_33 [1] : vector<8x8xf32> to vector<8xf32>
    %101 = vector.shape_cast %100 : vector<8xf32> to vector<8x1xf32>
    %102 = tpu.reciprocal %101 {approx = true} : vector<8x1xf32> -> vector<8x1xf32>
    %103 = vector.broadcast %102 : vector<8x1xf32> to vector<8x8xf32>
    %104 = arith.mulf %99, %103 : vector<8x8xf32>
    %105 = arith.truncf %104 : vector<8x8xf32> to vector<8x8xbf16>
    %cst_34 = arith.constant dense<0.000000e+00> : vector<8x8xf32>
    %106 = tpu.matmul %105, %93, %cst_34 {dimension_numbers = #tpu.dot_dimension_numbers<[1], [0], [0], [1], [0, 0, 1, 1], [], []>} : vector<8x8xbf16>, vector<8x8xbf16>, vector<8x8xf32> -> vector<8x8xf32>
    %107 = arith.truncf %106 : vector<8x8xf32> to vector<8x8xbf16>
    %108 = vector.extract_strided_slice %12 {offsets = [8, 8], sizes = [8, 8], strides = [1, 1]} : vector<16x32xbf16> to vector<8x8xbf16>
    %109 = vector.extract_strided_slice %14 {offsets = [8, 8], sizes = [8, 8], strides = [1, 1]} : vector<16x32xbf16> to vector<8x8xbf16>
    %110 = vector.extract_strided_slice %21 {offsets = [8, 8], sizes = [8, 8], strides = [1, 1]} : vector<16x32xbf16> to vector<8x8xbf16>
    %cst_35 = arith.constant dense<0.000000e+00> : vector<8x8xf32>
    %111 = tpu.matmul %108, %109, %cst_35 {dimension_numbers = #tpu.dot_dimension_numbers<[1], [1], [0], [0], [0, 0, 1, 0], [], []>} : vector<8x8xbf16>, vector<8x8xbf16>, vector<8x8xf32> -> vector<8x8xf32>
    %cst_36 = arith.constant dense<0xFF800000> : vector<8xf32>
    %112 = vector.multi_reduction <maximumf>, %111, %cst_36 [1] : vector<8x8xf32> to vector<8xf32>
    %113 = vector.shape_cast %112 : vector<8xf32> to vector<8x1xf32>
    %114 = vector.broadcast %113 : vector<8x1xf32> to vector<8x8xf32>
    %115 = arith.subf %111, %114 : vector<8x8xf32>
    %116 = math.exp %115 : vector<8x8xf32>
    %cst_37 = arith.constant dense<0.000000e+00> : vector<8xf32>
    %117 = vector.multi_reduction <add>, %116, %cst_37 [1] : vector<8x8xf32> to vector<8xf32>
    %118 = vector.shape_cast %117 : vector<8xf32> to vector<8x1xf32>
    %119 = tpu.reciprocal %118 {approx = true} : vector<8x1xf32> -> vector<8x1xf32>
    %120 = vector.broadcast %119 : vector<8x1xf32> to vector<8x8xf32>
    %121 = arith.mulf %116, %120 : vector<8x8xf32>
    %122 = arith.truncf %121 : vector<8x8xf32> to vector<8x8xbf16>
    %cst_38 = arith.constant dense<0.000000e+00> : vector<8x8xf32>
    %123 = tpu.matmul %122, %110, %cst_38 {dimension_numbers = #tpu.dot_dimension_numbers<[1], [0], [0], [1], [0, 0, 1, 1], [], []>} : vector<8x8xbf16>, vector<8x8xbf16>, vector<8x8xf32> -> vector<8x8xf32>
    %124 = arith.truncf %123 : vector<8x8xf32> to vector<8x8xbf16>
    %125 = vector.extract_strided_slice %12 {offsets = [8, 16], sizes = [8, 8], strides = [1, 1]} : vector<16x32xbf16> to vector<8x8xbf16>
    %126 = vector.extract_strided_slice %14 {offsets = [8, 16], sizes = [8, 8], strides = [1, 1]} : vector<16x32xbf16> to vector<8x8xbf16>
    %127 = vector.extract_strided_slice %21 {offsets = [8, 16], sizes = [8, 8], strides = [1, 1]} : vector<16x32xbf16> to vector<8x8xbf16>
    %cst_39 = arith.constant dense<0.000000e+00> : vector<8x8xf32>
    %128 = tpu.matmul %125, %126, %cst_39 {dimension_numbers = #tpu.dot_dimension_numbers<[1], [1], [0], [0], [0, 0, 1, 0], [], []>} : vector<8x8xbf16>, vector<8x8xbf16>, vector<8x8xf32> -> vector<8x8xf32>
    %cst_40 = arith.constant dense<0xFF800000> : vector<8xf32>
    %129 = vector.multi_reduction <maximumf>, %128, %cst_40 [1] : vector<8x8xf32> to vector<8xf32>
    %130 = vector.shape_cast %129 : vector<8xf32> to vector<8x1xf32>
    %131 = vector.broadcast %130 : vector<8x1xf32> to vector<8x8xf32>
    %132 = arith.subf %128, %131 : vector<8x8xf32>
    %133 = math.exp %132 : vector<8x8xf32>
    %cst_41 = arith.constant dense<0.000000e+00> : vector<8xf32>
    %134 = vector.multi_reduction <add>, %133, %cst_41 [1] : vector<8x8xf32> to vector<8xf32>
    %135 = vector.shape_cast %134 : vector<8xf32> to vector<8x1xf32>
    %136 = tpu.reciprocal %135 {approx = true} : vector<8x1xf32> -> vector<8x1xf32>
    %137 = vector.broadcast %136 : vector<8x1xf32> to vector<8x8xf32>
    %138 = arith.mulf %133, %137 : vector<8x8xf32>
    %139 = arith.truncf %138 : vector<8x8xf32> to vector<8x8xbf16>
    %cst_42 = arith.constant dense<0.000000e+00> : vector<8x8xf32>
    %140 = tpu.matmul %139, %127, %cst_42 {dimension_numbers = #tpu.dot_dimension_numbers<[1], [0], [0], [1], [0, 0, 1, 1], [], []>} : vector<8x8xbf16>, vector<8x8xbf16>, vector<8x8xf32> -> vector<8x8xf32>
    %141 = arith.truncf %140 : vector<8x8xf32> to vector<8x8xbf16>
    %142 = vector.extract_strided_slice %12 {offsets = [8, 24], sizes = [8, 8], strides = [1, 1]} : vector<16x32xbf16> to vector<8x8xbf16>
    %143 = vector.extract_strided_slice %14 {offsets = [8, 24], sizes = [8, 8], strides = [1, 1]} : vector<16x32xbf16> to vector<8x8xbf16>
    %144 = vector.extract_strided_slice %21 {offsets = [8, 24], sizes = [8, 8], strides = [1, 1]} : vector<16x32xbf16> to vector<8x8xbf16>
    %cst_43 = arith.constant dense<0.000000e+00> : vector<8x8xf32>
    %145 = tpu.matmul %142, %143, %cst_43 {dimension_numbers = #tpu.dot_dimension_numbers<[1], [1], [0], [0], [0, 0, 1, 0], [], []>} : vector<8x8xbf16>, vector<8x8xbf16>, vector<8x8xf32> -> vector<8x8xf32>
    %cst_44 = arith.constant dense<0xFF800000> : vector<8xf32>
    %146 = vector.multi_reduction <maximumf>, %145, %cst_44 [1] : vector<8x8xf32> to vector<8xf32>
    %147 = vector.shape_cast %146 : vector<8xf32> to vector<8x1xf32>
    %148 = vector.broadcast %147 : vector<8x1xf32> to vector<8x8xf32>
    %149 = arith.subf %145, %148 : vector<8x8xf32>
    %150 = math.exp %149 : vector<8x8xf32>
    %cst_45 = arith.constant dense<0.000000e+00> : vector<8xf32>
    %151 = vector.multi_reduction <add>, %150, %cst_45 [1] : vector<8x8xf32> to vector<8xf32>
    %152 = vector.shape_cast %151 : vector<8xf32> to vector<8x1xf32>
    %153 = tpu.reciprocal %152 {approx = true} : vector<8x1xf32> -> vector<8x1xf32>
    %154 = vector.broadcast %153 : vector<8x1xf32> to vector<8x8xf32>
    %155 = arith.mulf %150, %154 : vector<8x8xf32>
    %156 = arith.truncf %155 : vector<8x8xf32> to vector<8x8xbf16>
    %cst_46 = arith.constant dense<0.000000e+00> : vector<8x8xf32>
    %157 = tpu.matmul %156, %144, %cst_46 {dimension_numbers = #tpu.dot_dimension_numbers<[1], [0], [0], [1], [0, 0, 1, 1], [], []>} : vector<8x8xbf16>, vector<8x8xbf16>, vector<8x8xf32> -> vector<8x8xf32>
    %158 = arith.truncf %157 : vector<8x8xf32> to vector<8x8xbf16>
    %159 = tpu.concatenate %107, %124, %141, %158 in 1 : vector<8x8xbf16>, vector<8x8xbf16>, vector<8x8xbf16>, vector<8x8xbf16> -> vector<8x32xbf16>
    %160 = tpu.concatenate %90, %159 in 0 : vector<8x32xbf16>, vector<8x32xbf16> -> vector<16x32xbf16>
    %c0_47 = arith.constant 0 : index
    %c0_48 = arith.constant 0 : index
    %161 = vector.load %arg10[%c0_47, %c0_48] : memref<32x32xbf16, #tpu.memory_space<vmem>>, vector<32x32xbf16>
    %cst_49 = arith.constant dense<0.000000e+00> : vector<16x32xf32>
    %162 = tpu.matmul %160, %161, %cst_49 {dimension_numbers = #tpu.dot_dimension_numbers<[1], [0], [0], [1], [0, 0, 1, 1], [], []>} : vector<16x32xbf16>, vector<32x32xbf16>, vector<16x32xf32> -> vector<16x32xf32>
    %c0_50 = arith.constant 0 : index
    %c0_51 = arith.constant 0 : index
    %163 = vector.load %arg11[%c0_50, %c0_51] : memref<1x32xf32, #tpu.memory_space<vmem>>, vector<1x32xf32>
    %164 = vector.broadcast %163 : vector<1x32xf32> to vector<16x32xf32>
    %165 = arith.addf %162, %164 : vector<16x32xf32>
    %166 = arith.addf %0, %165 : vector<16x32xf32>
    %c0_52 = arith.constant 0 : index
    %c0_53 = arith.constant 0 : index
    %167 = vector.load %arg24[%c0_52, %c0_53] : memref<1x32xf32, #tpu.memory_space<vmem>>, vector<1x32xf32>
    %c0_54 = arith.constant 0 : index
    %c0_55 = arith.constant 0 : index
    %168 = vector.load %arg25[%c0_54, %c0_55] : memref<1x32xf32, #tpu.memory_space<vmem>>, vector<1x32xf32>
    %cst_56 = arith.constant dense<0.000000e+00> : vector<16xf32>
    %169 = vector.multi_reduction <add>, %166, %cst_56 [1] : vector<16x32xf32> to vector<16xf32>
    %170 = vector.shape_cast %169 : vector<16xf32> to vector<16x1xf32>
    %cst_57 = arith.constant 3.200000e+01 : f32
    %171 = vector.broadcast %cst_57 : f32 to vector<16x1xf32>
    %172 = arith.divf %170, %171 : vector<16x1xf32>
    %173 = vector.broadcast %172 : vector<16x1xf32> to vector<16x32xf32>
    %174 = arith.subf %166, %173 : vector<16x32xf32>
    %175 = arith.mulf %174, %174 : vector<16x32xf32>
    %cst_58 = arith.constant dense<0.000000e+00> : vector<16xf32>
    %176 = vector.multi_reduction <add>, %175, %cst_58 [1] : vector<16x32xf32> to vector<16xf32>
    %177 = vector.shape_cast %176 : vector<16xf32> to vector<16x1xf32>
    %cst_59 = arith.constant 3.200000e+01 : f32
    %178 = vector.broadcast %cst_59 : f32 to vector<16x1xf32>
    %179 = arith.divf %177, %178 : vector<16x1xf32>
    %180 = vector.broadcast %172 : vector<16x1xf32> to vector<16x32xf32>
    %181 = arith.subf %166, %180 : vector<16x32xf32>
    %cst_60 = arith.constant 9.99999974E-6 : f32
    %182 = vector.broadcast %cst_60 : f32 to vector<16x1xf32>
    %183 = arith.addf %179, %182 : vector<16x1xf32>
    %184 = math.rsqrt %183 : vector<16x1xf32>
    %185 = vector.broadcast %184 : vector<16x1xf32> to vector<16x32xf32>
    %186 = arith.mulf %181, %185 : vector<16x32xf32>
    %187 = vector.broadcast %167 : vector<1x32xf32> to vector<16x32xf32>
    %188 = arith.mulf %186, %187 : vector<16x32xf32>
    %189 = vector.broadcast %168 : vector<1x32xf32> to vector<16x32xf32>
    %190 = arith.addf %188, %189 : vector<16x32xf32>
    %c0_61 = arith.constant 0 : index
    %c0_62 = arith.constant 0 : index
    %191 = vector.load %arg2[%c0_61, %c0_62] : memref<32x32xbf16, #tpu.memory_space<vmem>>, vector<32x32xbf16>
    %c0_63 = arith.constant 0 : index
    %c0_64 = arith.constant 0 : index
    %192 = vector.load %arg3[%c0_63, %c0_64] : memref<32x32xbf16, #tpu.memory_space<vmem>>, vector<32x32xbf16>
    %193 = arith.addf %191, %192 : vector<32x32xbf16>
    %194 = arith.addf %190, %2 : vector<16x32xf32>
    %195 = arith.truncf %194 : vector<16x32xf32> to vector<16x32xbf16>
    %c0_65 = arith.constant 0 : index
    %c0_66 = arith.constant 0 : index
    %196 = vector.load %arg12[%c0_65, %c0_66] : memref<32x32xbf16, #tpu.memory_space<vmem>>, vector<32x32xbf16>
    %cst_67 = arith.constant dense<0.000000e+00> : vector<16x32xf32>
    %197 = tpu.matmul %195, %196, %cst_67 {dimension_numbers = #tpu.dot_dimension_numbers<[1], [0], [0], [1], [0, 0, 1, 1], [], []>} : vector<16x32xbf16>, vector<32x32xbf16>, vector<16x32xf32> -> vector<16x32xf32>
    %c0_68 = arith.constant 0 : index
    %c0_69 = arith.constant 0 : index
    %198 = vector.load %arg13[%c0_68, %c0_69] : memref<1x32xf32, #tpu.memory_space<vmem>>, vector<1x32xf32>
    %199 = vector.broadcast %198 : vector<1x32xf32> to vector<16x32xf32>
    %200 = arith.addf %197, %199 : vector<16x32xf32>
    %201 = arith.truncf %200 : vector<16x32xf32> to vector<16x32xbf16>
    %c0_70 = arith.constant 0 : index
    %c0_71 = arith.constant 0 : index
    %202 = vector.load %arg14[%c0_70, %c0_71] : memref<32x32xbf16, #tpu.memory_space<vmem>>, vector<32x32xbf16>
    %cst_72 = arith.constant dense<0.000000e+00> : vector<32x32xf32>
    %203 = tpu.matmul %193, %202, %cst_72 {dimension_numbers = #tpu.dot_dimension_numbers<[1], [0], [0], [1], [0, 0, 1, 1], [], []>} : vector<32x32xbf16>, vector<32x32xbf16>, vector<32x32xf32> -> vector<32x32xf32>
    %c0_73 = arith.constant 0 : index
    %c0_74 = arith.constant 0 : index
    %204 = vector.load %arg15[%c0_73, %c0_74] : memref<1x32xf32, #tpu.memory_space<vmem>>, vector<1x32xf32>
    %205 = vector.broadcast %204 : vector<1x32xf32> to vector<32x32xf32>
    %206 = arith.addf %203, %205 : vector<32x32xf32>
    %207 = arith.truncf %206 : vector<32x32xf32> to vector<32x32xbf16>
    %c0_75 = arith.constant 0 : index
    %c0_76 = arith.constant 0 : index
    %208 = vector.load %arg16[%c0_75, %c0_76] : memref<32x32xbf16, #tpu.memory_space<vmem>>, vector<32x32xbf16>
    %cst_77 = arith.constant dense<0.000000e+00> : vector<32x32xf32>
    %209 = tpu.matmul %191, %208, %cst_77 {dimension_numbers = #tpu.dot_dimension_numbers<[1], [0], [0], [1], [0, 0, 1, 1], [], []>} : vector<32x32xbf16>, vector<32x32xbf16>, vector<32x32xf32> -> vector<32x32xf32>
    %c0_78 = arith.constant 0 : index
    %c0_79 = arith.constant 0 : index
    %210 = vector.load %arg17[%c0_78, %c0_79] : memref<1x32xf32, #tpu.memory_space<vmem>>, vector<1x32xf32>
    %211 = vector.broadcast %210 : vector<1x32xf32> to vector<32x32xf32>
    %212 = arith.addf %209, %211 : vector<32x32xf32>
    %213 = arith.truncf %212 : vector<32x32xf32> to vector<32x32xbf16>
    %214 = vector.extract_strided_slice %201 {offsets = [0, 0], sizes = [8, 8], strides = [1, 1]} : vector<16x32xbf16> to vector<8x8xbf16>
    %215 = vector.extract_strided_slice %207 {offsets = [0, 0], sizes = [16, 8], strides = [1, 1]} : vector<32x32xbf16> to vector<16x8xbf16>
    %216 = vector.extract_strided_slice %213 {offsets = [0, 0], sizes = [16, 8], strides = [1, 1]} : vector<32x32xbf16> to vector<16x8xbf16>
    %cst_80 = arith.constant dense<0.000000e+00> : vector<8x16xf32>
    %217 = tpu.matmul %214, %215, %cst_80 {dimension_numbers = #tpu.dot_dimension_numbers<[1], [1], [0], [0], [0, 0, 1, 0], [], []>} : vector<8x8xbf16>, vector<16x8xbf16>, vector<8x16xf32> -> vector<8x16xf32>
    %218 = vector.extract_strided_slice %3 {offsets = [0, 0, 0], sizes = [1, 1, 16], strides = [1, 1, 1]} : vector<2x1x16xf32> to vector<1x1x16xf32>
    %219 = vector.shape_cast %218 : vector<1x1x16xf32> to vector<1x16xf32>
    %220 = vector.broadcast %219 : vector<1x16xf32> to vector<8x16xf32>
    %221 = arith.addf %217, %220 : vector<8x16xf32>
    %cst_81 = arith.constant dense<0xFF800000> : vector<8xf32>
    %222 = vector.multi_reduction <maximumf>, %221, %cst_81 [1] : vector<8x16xf32> to vector<8xf32>
    %223 = vector.shape_cast %222 : vector<8xf32> to vector<8x1xf32>
    %224 = vector.broadcast %223 : vector<8x1xf32> to vector<8x16xf32>
    %225 = arith.subf %221, %224 : vector<8x16xf32>
    %226 = math.exp %225 : vector<8x16xf32>
    %cst_82 = arith.constant dense<0.000000e+00> : vector<8xf32>
    %227 = vector.multi_reduction <add>, %226, %cst_82 [1] : vector<8x16xf32> to vector<8xf32>
    %228 = vector.shape_cast %227 : vector<8xf32> to vector<8x1xf32>
    %229 = tpu.reciprocal %228 {approx = true} : vector<8x1xf32> -> vector<8x1xf32>
    %230 = vector.broadcast %229 : vector<8x1xf32> to vector<8x16xf32>
    %231 = arith.mulf %226, %230 : vector<8x16xf32>
    %232 = arith.truncf %231 : vector<8x16xf32> to vector<8x16xbf16>
    %cst_83 = arith.constant dense<0.000000e+00> : vector<8x8xf32>
    %233 = tpu.matmul %232, %216, %cst_83 {dimension_numbers = #tpu.dot_dimension_numbers<[1], [0], [0], [1], [0, 0, 1, 1], [], []>} : vector<8x16xbf16>, vector<16x8xbf16>, vector<8x8xf32> -> vector<8x8xf32>
    %234 = arith.truncf %233 : vector<8x8xf32> to vector<8x8xbf16>
    %235 = vector.extract_strided_slice %201 {offsets = [0, 8], sizes = [8, 8], strides = [1, 1]} : vector<16x32xbf16> to vector<8x8xbf16>
    %236 = vector.extract_strided_slice %207 {offsets = [0, 8], sizes = [16, 8], strides = [1, 1]} : vector<32x32xbf16> to vector<16x8xbf16>
    %237 = vector.extract_strided_slice %213 {offsets = [0, 8], sizes = [16, 8], strides = [1, 1]} : vector<32x32xbf16> to vector<16x8xbf16>
    %cst_84 = arith.constant dense<0.000000e+00> : vector<8x16xf32>
    %238 = tpu.matmul %235, %236, %cst_84 {dimension_numbers = #tpu.dot_dimension_numbers<[1], [1], [0], [0], [0, 0, 1, 0], [], []>} : vector<8x8xbf16>, vector<16x8xbf16>, vector<8x16xf32> -> vector<8x16xf32>
    %239 = vector.extract_strided_slice %3 {offsets = [0, 0, 0], sizes = [1, 1, 16], strides = [1, 1, 1]} : vector<2x1x16xf32> to vector<1x1x16xf32>
    %240 = vector.shape_cast %239 : vector<1x1x16xf32> to vector<1x16xf32>
    %241 = vector.broadcast %240 : vector<1x16xf32> to vector<8x16xf32>
    %242 = arith.addf %238, %241 : vector<8x16xf32>
    %cst_85 = arith.constant dense<0xFF800000> : vector<8xf32>
    %243 = vector.multi_reduction <maximumf>, %242, %cst_85 [1] : vector<8x16xf32> to vector<8xf32>
    %244 = vector.shape_cast %243 : vector<8xf32> to vector<8x1xf32>
    %245 = vector.broadcast %244 : vector<8x1xf32> to vector<8x16xf32>
    %246 = arith.subf %242, %245 : vector<8x16xf32>
    %247 = math.exp %246 : vector<8x16xf32>
    %cst_86 = arith.constant dense<0.000000e+00> : vector<8xf32>
    %248 = vector.multi_reduction <add>, %247, %cst_86 [1] : vector<8x16xf32> to vector<8xf32>
    %249 = vector.shape_cast %248 : vector<8xf32> to vector<8x1xf32>
    %250 = tpu.reciprocal %249 {approx = true} : vector<8x1xf32> -> vector<8x1xf32>
    %251 = vector.broadcast %250 : vector<8x1xf32> to vector<8x16xf32>
    %252 = arith.mulf %247, %251 : vector<8x16xf32>
    %253 = arith.truncf %252 : vector<8x16xf32> to vector<8x16xbf16>
    %cst_87 = arith.constant dense<0.000000e+00> : vector<8x8xf32>
    %254 = tpu.matmul %253, %237, %cst_87 {dimension_numbers = #tpu.dot_dimension_numbers<[1], [0], [0], [1], [0, 0, 1, 1], [], []>} : vector<8x16xbf16>, vector<16x8xbf16>, vector<8x8xf32> -> vector<8x8xf32>
    %255 = arith.truncf %254 : vector<8x8xf32> to vector<8x8xbf16>
    %256 = vector.extract_strided_slice %201 {offsets = [0, 16], sizes = [8, 8], strides = [1, 1]} : vector<16x32xbf16> to vector<8x8xbf16>
    %257 = vector.extract_strided_slice %207 {offsets = [0, 16], sizes = [16, 8], strides = [1, 1]} : vector<32x32xbf16> to vector<16x8xbf16>
    %258 = vector.extract_strided_slice %213 {offsets = [0, 16], sizes = [16, 8], strides = [1, 1]} : vector<32x32xbf16> to vector<16x8xbf16>
    %cst_88 = arith.constant dense<0.000000e+00> : vector<8x16xf32>
    %259 = tpu.matmul %256, %257, %cst_88 {dimension_numbers = #tpu.dot_dimension_numbers<[1], [1], [0], [0], [0, 0, 1, 0], [], []>} : vector<8x8xbf16>, vector<16x8xbf16>, vector<8x16xf32> -> vector<8x16xf32>
    %260 = vector.extract_strided_slice %3 {offsets = [0, 0, 0], sizes = [1, 1, 16], strides = [1, 1, 1]} : vector<2x1x16xf32> to vector<1x1x16xf32>
    %261 = vector.shape_cast %260 : vector<1x1x16xf32> to vector<1x16xf32>
    %262 = vector.broadcast %261 : vector<1x16xf32> to vector<8x16xf32>
    %263 = arith.addf %259, %262 : vector<8x16xf32>
    %cst_89 = arith.constant dense<0xFF800000> : vector<8xf32>
    %264 = vector.multi_reduction <maximumf>, %263, %cst_89 [1] : vector<8x16xf32> to vector<8xf32>
    %265 = vector.shape_cast %264 : vector<8xf32> to vector<8x1xf32>
    %266 = vector.broadcast %265 : vector<8x1xf32> to vector<8x16xf32>
    %267 = arith.subf %263, %266 : vector<8x16xf32>
    %268 = math.exp %267 : vector<8x16xf32>
    %cst_90 = arith.constant dense<0.000000e+00> : vector<8xf32>
    %269 = vector.multi_reduction <add>, %268, %cst_90 [1] : vector<8x16xf32> to vector<8xf32>
    %270 = vector.shape_cast %269 : vector<8xf32> to vector<8x1xf32>
    %271 = tpu.reciprocal %270 {approx = true} : vector<8x1xf32> -> vector<8x1xf32>
    %272 = vector.broadcast %271 : vector<8x1xf32> to vector<8x16xf32>
    %273 = arith.mulf %268, %272 : vector<8x16xf32>
    %274 = arith.truncf %273 : vector<8x16xf32> to vector<8x16xbf16>
    %cst_91 = arith.constant dense<0.000000e+00> : vector<8x8xf32>
    %275 = tpu.matmul %274, %258, %cst_91 {dimension_numbers = #tpu.dot_dimension_numbers<[1], [0], [0], [1], [0, 0, 1, 1], [], []>} : vector<8x16xbf16>, vector<16x8xbf16>, vector<8x8xf32> -> vector<8x8xf32>
    %276 = arith.truncf %275 : vector<8x8xf32> to vector<8x8xbf16>
    %277 = vector.extract_strided_slice %201 {offsets = [0, 24], sizes = [8, 8], strides = [1, 1]} : vector<16x32xbf16> to vector<8x8xbf16>
    %278 = vector.extract_strided_slice %207 {offsets = [0, 24], sizes = [16, 8], strides = [1, 1]} : vector<32x32xbf16> to vector<16x8xbf16>
    %279 = vector.extract_strided_slice %213 {offsets = [0, 24], sizes = [16, 8], strides = [1, 1]} : vector<32x32xbf16> to vector<16x8xbf16>
    %cst_92 = arith.constant dense<0.000000e+00> : vector<8x16xf32>
    %280 = tpu.matmul %277, %278, %cst_92 {dimension_numbers = #tpu.dot_dimension_numbers<[1], [1], [0], [0], [0, 0, 1, 0], [], []>} : vector<8x8xbf16>, vector<16x8xbf16>, vector<8x16xf32> -> vector<8x16xf32>
    %281 = vector.extract_strided_slice %3 {offsets = [0, 0, 0], sizes = [1, 1, 16], strides = [1, 1, 1]} : vector<2x1x16xf32> to vector<1x1x16xf32>
    %282 = vector.shape_cast %281 : vector<1x1x16xf32> to vector<1x16xf32>
    %283 = vector.broadcast %282 : vector<1x16xf32> to vector<8x16xf32>
    %284 = arith.addf %280, %283 : vector<8x16xf32>
    %cst_93 = arith.constant dense<0xFF800000> : vector<8xf32>
    %285 = vector.multi_reduction <maximumf>, %284, %cst_93 [1] : vector<8x16xf32> to vector<8xf32>
    %286 = vector.shape_cast %285 : vector<8xf32> to vector<8x1xf32>
    %287 = vector.broadcast %286 : vector<8x1xf32> to vector<8x16xf32>
    %288 = arith.subf %284, %287 : vector<8x16xf32>
    %289 = math.exp %288 : vector<8x16xf32>
    %cst_94 = arith.constant dense<0.000000e+00> : vector<8xf32>
    %290 = vector.multi_reduction <add>, %289, %cst_94 [1] : vector<8x16xf32> to vector<8xf32>
    %291 = vector.shape_cast %290 : vector<8xf32> to vector<8x1xf32>
    %292 = tpu.reciprocal %291 {approx = true} : vector<8x1xf32> -> vector<8x1xf32>
    %293 = vector.broadcast %292 : vector<8x1xf32> to vector<8x16xf32>
    %294 = arith.mulf %289, %293 : vector<8x16xf32>
    %295 = arith.truncf %294 : vector<8x16xf32> to vector<8x16xbf16>
    %cst_95 = arith.constant dense<0.000000e+00> : vector<8x8xf32>
    %296 = tpu.matmul %295, %279, %cst_95 {dimension_numbers = #tpu.dot_dimension_numbers<[1], [0], [0], [1], [0, 0, 1, 1], [], []>} : vector<8x16xbf16>, vector<16x8xbf16>, vector<8x8xf32> -> vector<8x8xf32>
    %297 = arith.truncf %296 : vector<8x8xf32> to vector<8x8xbf16>
    %298 = tpu.concatenate %234, %255, %276, %297 in 1 : vector<8x8xbf16>, vector<8x8xbf16>, vector<8x8xbf16>, vector<8x8xbf16> -> vector<8x32xbf16>
    %299 = vector.extract_strided_slice %201 {offsets = [8, 0], sizes = [8, 8], strides = [1, 1]} : vector<16x32xbf16> to vector<8x8xbf16>
    %300 = vector.extract_strided_slice %207 {offsets = [16, 0], sizes = [16, 8], strides = [1, 1]} : vector<32x32xbf16> to vector<16x8xbf16>
    %301 = vector.extract_strided_slice %213 {offsets = [16, 0], sizes = [16, 8], strides = [1, 1]} : vector<32x32xbf16> to vector<16x8xbf16>
    %cst_96 = arith.constant dense<0.000000e+00> : vector<8x16xf32>
    %302 = tpu.matmul %299, %300, %cst_96 {dimension_numbers = #tpu.dot_dimension_numbers<[1], [1], [0], [0], [0, 0, 1, 0], [], []>} : vector<8x8xbf16>, vector<16x8xbf16>, vector<8x16xf32> -> vector<8x16xf32>
    %303 = vector.extract_strided_slice %3 {offsets = [1, 0, 0], sizes = [1, 1, 16], strides = [1, 1, 1]} : vector<2x1x16xf32> to vector<1x1x16xf32>
    %304 = vector.shape_cast %303 : vector<1x1x16xf32> to vector<1x16xf32>
    %305 = vector.broadcast %304 : vector<1x16xf32> to vector<8x16xf32>
    %306 = arith.addf %302, %305 : vector<8x16xf32>
    %cst_97 = arith.constant dense<0xFF800000> : vector<8xf32>
    %307 = vector.multi_reduction <maximumf>, %306, %cst_97 [1] : vector<8x16xf32> to vector<8xf32>
    %308 = vector.shape_cast %307 : vector<8xf32> to vector<8x1xf32>
    %309 = vector.broadcast %308 : vector<8x1xf32> to vector<8x16xf32>
    %310 = arith.subf %306, %309 : vector<8x16xf32>
    %311 = math.exp %310 : vector<8x16xf32>
    %cst_98 = arith.constant dense<0.000000e+00> : vector<8xf32>
    %312 = vector.multi_reduction <add>, %311, %cst_98 [1] : vector<8x16xf32> to vector<8xf32>
    %313 = vector.shape_cast %312 : vector<8xf32> to vector<8x1xf32>
    %314 = tpu.reciprocal %313 {approx = true} : vector<8x1xf32> -> vector<8x1xf32>
    %315 = vector.broadcast %314 : vector<8x1xf32> to vector<8x16xf32>
    %316 = arith.mulf %311, %315 : vector<8x16xf32>
    %317 = arith.truncf %316 : vector<8x16xf32> to vector<8x16xbf16>
    %cst_99 = arith.constant dense<0.000000e+00> : vector<8x8xf32>
    %318 = tpu.matmul %317, %301, %cst_99 {dimension_numbers = #tpu.dot_dimension_numbers<[1], [0], [0], [1], [0, 0, 1, 1], [], []>} : vector<8x16xbf16>, vector<16x8xbf16>, vector<8x8xf32> -> vector<8x8xf32>
    %319 = arith.truncf %318 : vector<8x8xf32> to vector<8x8xbf16>
    %320 = vector.extract_strided_slice %201 {offsets = [8, 8], sizes = [8, 8], strides = [1, 1]} : vector<16x32xbf16> to vector<8x8xbf16>
    %321 = vector.extract_strided_slice %207 {offsets = [16, 8], sizes = [16, 8], strides = [1, 1]} : vector<32x32xbf16> to vector<16x8xbf16>
    %322 = vector.extract_strided_slice %213 {offsets = [16, 8], sizes = [16, 8], strides = [1, 1]} : vector<32x32xbf16> to vector<16x8xbf16>
    %cst_100 = arith.constant dense<0.000000e+00> : vector<8x16xf32>
    %323 = tpu.matmul %320, %321, %cst_100 {dimension_numbers = #tpu.dot_dimension_numbers<[1], [1], [0], [0], [0, 0, 1, 0], [], []>} : vector<8x8xbf16>, vector<16x8xbf16>, vector<8x16xf32> -> vector<8x16xf32>
    %324 = vector.extract_strided_slice %3 {offsets = [1, 0, 0], sizes = [1, 1, 16], strides = [1, 1, 1]} : vector<2x1x16xf32> to vector<1x1x16xf32>
    %325 = vector.shape_cast %324 : vector<1x1x16xf32> to vector<1x16xf32>
    %326 = vector.broadcast %325 : vector<1x16xf32> to vector<8x16xf32>
    %327 = arith.addf %323, %326 : vector<8x16xf32>
    %cst_101 = arith.constant dense<0xFF800000> : vector<8xf32>
    %328 = vector.multi_reduction <maximumf>, %327, %cst_101 [1] : vector<8x16xf32> to vector<8xf32>
    %329 = vector.shape_cast %328 : vector<8xf32> to vector<8x1xf32>
    %330 = vector.broadcast %329 : vector<8x1xf32> to vector<8x16xf32>
    %331 = arith.subf %327, %330 : vector<8x16xf32>
    %332 = math.exp %331 : vector<8x16xf32>
    %cst_102 = arith.constant dense<0.000000e+00> : vector<8xf32>
    %333 = vector.multi_reduction <add>, %332, %cst_102 [1] : vector<8x16xf32> to vector<8xf32>
    %334 = vector.shape_cast %333 : vector<8xf32> to vector<8x1xf32>
    %335 = tpu.reciprocal %334 {approx = true} : vector<8x1xf32> -> vector<8x1xf32>
    %336 = vector.broadcast %335 : vector<8x1xf32> to vector<8x16xf32>
    %337 = arith.mulf %332, %336 : vector<8x16xf32>
    %338 = arith.truncf %337 : vector<8x16xf32> to vector<8x16xbf16>
    %cst_103 = arith.constant dense<0.000000e+00> : vector<8x8xf32>
    %339 = tpu.matmul %338, %322, %cst_103 {dimension_numbers = #tpu.dot_dimension_numbers<[1], [0], [0], [1], [0, 0, 1, 1], [], []>} : vector<8x16xbf16>, vector<16x8xbf16>, vector<8x8xf32> -> vector<8x8xf32>
    %340 = arith.truncf %339 : vector<8x8xf32> to vector<8x8xbf16>
    %341 = vector.extract_strided_slice %201 {offsets = [8, 16], sizes = [8, 8], strides = [1, 1]} : vector<16x32xbf16> to vector<8x8xbf16>
    %342 = vector.extract_strided_slice %207 {offsets = [16, 16], sizes = [16, 8], strides = [1, 1]} : vector<32x32xbf16> to vector<16x8xbf16>
    %343 = vector.extract_strided_slice %213 {offsets = [16, 16], sizes = [16, 8], strides = [1, 1]} : vector<32x32xbf16> to vector<16x8xbf16>
    %cst_104 = arith.constant dense<0.000000e+00> : vector<8x16xf32>
    %344 = tpu.matmul %341, %342, %cst_104 {dimension_numbers = #tpu.dot_dimension_numbers<[1], [1], [0], [0], [0, 0, 1, 0], [], []>} : vector<8x8xbf16>, vector<16x8xbf16>, vector<8x16xf32> -> vector<8x16xf32>
    %345 = vector.extract_strided_slice %3 {offsets = [1, 0, 0], sizes = [1, 1, 16], strides = [1, 1, 1]} : vector<2x1x16xf32> to vector<1x1x16xf32>
    %346 = vector.shape_cast %345 : vector<1x1x16xf32> to vector<1x16xf32>
    %347 = vector.broadcast %346 : vector<1x16xf32> to vector<8x16xf32>
    %348 = arith.addf %344, %347 : vector<8x16xf32>
    %cst_105 = arith.constant dense<0xFF800000> : vector<8xf32>
    %349 = vector.multi_reduction <maximumf>, %348, %cst_105 [1] : vector<8x16xf32> to vector<8xf32>
    %350 = vector.shape_cast %349 : vector<8xf32> to vector<8x1xf32>
    %351 = vector.broadcast %350 : vector<8x1xf32> to vector<8x16xf32>
    %352 = arith.subf %348, %351 : vector<8x16xf32>
    %353 = math.exp %352 : vector<8x16xf32>
    %cst_106 = arith.constant dense<0.000000e+00> : vector<8xf32>
    %354 = vector.multi_reduction <add>, %353, %cst_106 [1] : vector<8x16xf32> to vector<8xf32>
    %355 = vector.shape_cast %354 : vector<8xf32> to vector<8x1xf32>
    %356 = tpu.reciprocal %355 {approx = true} : vector<8x1xf32> -> vector<8x1xf32>
    %357 = vector.broadcast %356 : vector<8x1xf32> to vector<8x16xf32>
    %358 = arith.mulf %353, %357 : vector<8x16xf32>
    %359 = arith.truncf %358 : vector<8x16xf32> to vector<8x16xbf16>
    %cst_107 = arith.constant dense<0.000000e+00> : vector<8x8xf32>
    %360 = tpu.matmul %359, %343, %cst_107 {dimension_numbers = #tpu.dot_dimension_numbers<[1], [0], [0], [1], [0, 0, 1, 1], [], []>} : vector<8x16xbf16>, vector<16x8xbf16>, vector<8x8xf32> -> vector<8x8xf32>
    %361 = arith.truncf %360 : vector<8x8xf32> to vector<8x8xbf16>
    %362 = vector.extract_strided_slice %201 {offsets = [8, 24], sizes = [8, 8], strides = [1, 1]} : vector<16x32xbf16> to vector<8x8xbf16>
    %363 = vector.extract_strided_slice %207 {offsets = [16, 24], sizes = [16, 8], strides = [1, 1]} : vector<32x32xbf16> to vector<16x8xbf16>
    %364 = vector.extract_strided_slice %213 {offsets = [16, 24], sizes = [16, 8], strides = [1, 1]} : vector<32x32xbf16> to vector<16x8xbf16>
    %cst_108 = arith.constant dense<0.000000e+00> : vector<8x16xf32>
    %365 = tpu.matmul %362, %363, %cst_108 {dimension_numbers = #tpu.dot_dimension_numbers<[1], [1], [0], [0], [0, 0, 1, 0], [], []>} : vector<8x8xbf16>, vector<16x8xbf16>, vector<8x16xf32> -> vector<8x16xf32>
    %366 = vector.extract_strided_slice %3 {offsets = [1, 0, 0], sizes = [1, 1, 16], strides = [1, 1, 1]} : vector<2x1x16xf32> to vector<1x1x16xf32>
    %367 = vector.shape_cast %366 : vector<1x1x16xf32> to vector<1x16xf32>
    %368 = vector.broadcast %367 : vector<1x16xf32> to vector<8x16xf32>
    %369 = arith.addf %365, %368 : vector<8x16xf32>
    %cst_109 = arith.constant dense<0xFF800000> : vector<8xf32>
    %370 = vector.multi_reduction <maximumf>, %369, %cst_109 [1] : vector<8x16xf32> to vector<8xf32>
    %371 = vector.shape_cast %370 : vector<8xf32> to vector<8x1xf32>
    %372 = vector.broadcast %371 : vector<8x1xf32> to vector<8x16xf32>
    %373 = arith.subf %369, %372 : vector<8x16xf32>
    %374 = math.exp %373 : vector<8x16xf32>
    %cst_110 = arith.constant dense<0.000000e+00> : vector<8xf32>
    %375 = vector.multi_reduction <add>, %374, %cst_110 [1] : vector<8x16xf32> to vector<8xf32>
    %376 = vector.shape_cast %375 : vector<8xf32> to vector<8x1xf32>
    %377 = tpu.reciprocal %376 {approx = true} : vector<8x1xf32> -> vector<8x1xf32>
    %378 = vector.broadcast %377 : vector<8x1xf32> to vector<8x16xf32>
    %379 = arith.mulf %374, %378 : vector<8x16xf32>
    %380 = arith.truncf %379 : vector<8x16xf32> to vector<8x16xbf16>
    %cst_111 = arith.constant dense<0.000000e+00> : vector<8x8xf32>
    %381 = tpu.matmul %380, %364, %cst_111 {dimension_numbers = #tpu.dot_dimension_numbers<[1], [0], [0], [1], [0, 0, 1, 1], [], []>} : vector<8x16xbf16>, vector<16x8xbf16>, vector<8x8xf32> -> vector<8x8xf32>
    %382 = arith.truncf %381 : vector<8x8xf32> to vector<8x8xbf16>
    %383 = tpu.concatenate %319, %340, %361, %382 in 1 : vector<8x8xbf16>, vector<8x8xbf16>, vector<8x8xbf16>, vector<8x8xbf16> -> vector<8x32xbf16>
    %384 = tpu.concatenate %298, %383 in 0 : vector<8x32xbf16>, vector<8x32xbf16> -> vector<16x32xbf16>
    %c0_112 = arith.constant 0 : index
    %c0_113 = arith.constant 0 : index
    %385 = vector.load %arg18[%c0_112, %c0_113] : memref<32x32xbf16, #tpu.memory_space<vmem>>, vector<32x32xbf16>
    %cst_114 = arith.constant dense<0.000000e+00> : vector<16x32xf32>
    %386 = tpu.matmul %384, %385, %cst_114 {dimension_numbers = #tpu.dot_dimension_numbers<[1], [0], [0], [1], [0, 0, 1, 1], [], []>} : vector<16x32xbf16>, vector<32x32xbf16>, vector<16x32xf32> -> vector<16x32xf32>
    %c0_115 = arith.constant 0 : index
    %c0_116 = arith.constant 0 : index
    %387 = vector.load %arg19[%c0_115, %c0_116] : memref<1x32xf32, #tpu.memory_space<vmem>>, vector<1x32xf32>
    %388 = vector.broadcast %387 : vector<1x32xf32> to vector<16x32xf32>
    %389 = arith.addf %386, %388 : vector<16x32xf32>
    %390 = arith.addf %190, %389 : vector<16x32xf32>
    %c0_117 = arith.constant 0 : index
    %c0_118 = arith.constant 0 : index
    %391 = vector.load %arg26[%c0_117, %c0_118] : memref<1x32xf32, #tpu.memory_space<vmem>>, vector<1x32xf32>
    %c0_119 = arith.constant 0 : index
    %c0_120 = arith.constant 0 : index
    %392 = vector.load %arg27[%c0_119, %c0_120] : memref<1x32xf32, #tpu.memory_space<vmem>>, vector<1x32xf32>
    %cst_121 = arith.constant dense<0.000000e+00> : vector<16xf32>
    %393 = vector.multi_reduction <add>, %390, %cst_121 [1] : vector<16x32xf32> to vector<16xf32>
    %394 = vector.shape_cast %393 : vector<16xf32> to vector<16x1xf32>
    %cst_122 = arith.constant 3.200000e+01 : f32
    %395 = vector.broadcast %cst_122 : f32 to vector<16x1xf32>
    %396 = arith.divf %394, %395 : vector<16x1xf32>
    %397 = vector.broadcast %396 : vector<16x1xf32> to vector<16x32xf32>
    %398 = arith.subf %390, %397 : vector<16x32xf32>
    %399 = arith.mulf %398, %398 : vector<16x32xf32>
    %cst_123 = arith.constant dense<0.000000e+00> : vector<16xf32>
    %400 = vector.multi_reduction <add>, %399, %cst_123 [1] : vector<16x32xf32> to vector<16xf32>
    %401 = vector.shape_cast %400 : vector<16xf32> to vector<16x1xf32>
    %cst_124 = arith.constant 3.200000e+01 : f32
    %402 = vector.broadcast %cst_124 : f32 to vector<16x1xf32>
    %403 = arith.divf %401, %402 : vector<16x1xf32>
    %404 = vector.broadcast %396 : vector<16x1xf32> to vector<16x32xf32>
    %405 = arith.subf %390, %404 : vector<16x32xf32>
    %cst_125 = arith.constant 9.99999974E-6 : f32
    %406 = vector.broadcast %cst_125 : f32 to vector<16x1xf32>
    %407 = arith.addf %403, %406 : vector<16x1xf32>
    %408 = math.rsqrt %407 : vector<16x1xf32>
    %409 = vector.broadcast %408 : vector<16x1xf32> to vector<16x32xf32>
    %410 = arith.mulf %405, %409 : vector<16x32xf32>
    %411 = vector.broadcast %391 : vector<1x32xf32> to vector<16x32xf32>
    %412 = arith.mulf %410, %411 : vector<16x32xf32>
    %413 = vector.broadcast %392 : vector<1x32xf32> to vector<16x32xf32>
    %414 = arith.addf %412, %413 : vector<16x32xf32>
    %415 = arith.truncf %414 : vector<16x32xf32> to vector<16x32xbf16>
    %c0_126 = arith.constant 0 : index
    %c0_127 = arith.constant 0 : index
    %416 = vector.load %arg20[%c0_126, %c0_127] : memref<32x64xbf16, #tpu.memory_space<vmem>>, vector<32x64xbf16>
    %cst_128 = arith.constant dense<0.000000e+00> : vector<16x64xf32>
    %417 = tpu.matmul %415, %416, %cst_128 {dimension_numbers = #tpu.dot_dimension_numbers<[1], [0], [0], [1], [0, 0, 1, 1], [], []>} : vector<16x32xbf16>, vector<32x64xbf16>, vector<16x64xf32> -> vector<16x64xf32>
    %c0_129 = arith.constant 0 : index
    %c0_130 = arith.constant 0 : index
    %418 = vector.load %arg21[%c0_129, %c0_130] : memref<1x64xf32, #tpu.memory_space<vmem>>, vector<1x64xf32>
    %419 = vector.broadcast %418 : vector<1x64xf32> to vector<16x64xf32>
    %420 = arith.addf %417, %419 : vector<16x64xf32>
    %cst_131 = arith.constant 0.000000e+00 : f32
    %421 = vector.broadcast %cst_131 : f32 to vector<16x64xf32>
    %422 = arith.maximumf %420, %421 : vector<16x64xf32>
    %423 = arith.truncf %422 : vector<16x64xf32> to vector<16x64xbf16>
    %c0_132 = arith.constant 0 : index
    %c0_133 = arith.constant 0 : index
    %424 = vector.load %arg22[%c0_132, %c0_133] : memref<64x32xbf16, #tpu.memory_space<vmem>>, vector<64x32xbf16>
    %cst_134 = arith.constant dense<0.000000e+00> : vector<16x32xf32>
    %425 = tpu.matmul %423, %424, %cst_134 {dimension_numbers = #tpu.dot_dimension_numbers<[1], [0], [0], [1], [0, 0, 1, 1], [], []>} : vector<16x64xbf16>, vector<64x32xbf16>, vector<16x32xf32> -> vector<16x32xf32>
    %c0_135 = arith.constant 0 : index
    %c0_136 = arith.constant 0 : index
    %426 = vector.load %arg23[%c0_135, %c0_136] : memref<1x32xf32, #tpu.memory_space<vmem>>, vector<1x32xf32>
    %427 = vector.broadcast %426 : vector<1x32xf32> to vector<16x32xf32>
    %428 = arith.addf %425, %427 : vector<16x32xf32>
    %429 = arith.addf %414, %428 : vector<16x32xf32>
    %c0_137 = arith.constant 0 : index
    %c0_138 = arith.constant 0 : index
    %430 = vector.load %arg28[%c0_137, %c0_138] : memref<1x32xf32, #tpu.memory_space<vmem>>, vector<1x32xf32>
    %c0_139 = arith.constant 0 : index
    %c0_140 = arith.constant 0 : index
    %431 = vector.load %arg29[%c0_139, %c0_140] : memref<1x32xf32, #tpu.memory_space<vmem>>, vector<1x32xf32>
    %cst_141 = arith.constant dense<0.000000e+00> : vector<16xf32>
    %432 = vector.multi_reduction <add>, %429, %cst_141 [1] : vector<16x32xf32> to vector<16xf32>
    %433 = vector.shape_cast %432 : vector<16xf32> to vector<16x1xf32>
    %cst_142 = arith.constant 3.200000e+01 : f32
    %434 = vector.broadcast %cst_142 : f32 to vector<16x1xf32>
    %435 = arith.divf %433, %434 : vector<16x1xf32>
    %436 = vector.broadcast %435 : vector<16x1xf32> to vector<16x32xf32>
    %437 = arith.subf %429, %436 : vector<16x32xf32>
    %438 = arith.mulf %437, %437 : vector<16x32xf32>
    %cst_143 = arith.constant dense<0.000000e+00> : vector<16xf32>
    %439 = vector.multi_reduction <add>, %438, %cst_143 [1] : vector<16x32xf32> to vector<16xf32>
    %440 = vector.shape_cast %439 : vector<16xf32> to vector<16x1xf32>
    %cst_144 = arith.constant 3.200000e+01 : f32
    %441 = vector.broadcast %cst_144 : f32 to vector<16x1xf32>
    %442 = arith.divf %440, %441 : vector<16x1xf32>
    %443 = vector.broadcast %435 : vector<16x1xf32> to vector<16x32xf32>
    %444 = arith.subf %429, %443 : vector<16x32xf32>
    %cst_145 = arith.constant 9.99999974E-6 : f32
    %445 = vector.broadcast %cst_145 : f32 to vector<16x1xf32>
    %446 = arith.addf %442, %445 : vector<16x1xf32>
    %447 = math.rsqrt %446 : vector<16x1xf32>
    %448 = vector.broadcast %447 : vector<16x1xf32> to vector<16x32xf32>
    %449 = arith.mulf %444, %448 : vector<16x32xf32>
    %450 = vector.broadcast %430 : vector<1x32xf32> to vector<16x32xf32>
    %451 = arith.mulf %449, %450 : vector<16x32xf32>
    %452 = vector.broadcast %431 : vector<1x32xf32> to vector<16x32xf32>
    %453 = arith.addf %451, %452 : vector<16x32xf32>
    %c0_146 = arith.constant 0 : index
    %c0_147 = arith.constant 0 : index
    %454 = vector.load %arg30[%c0_146, %c0_147] : memref<16x32xf32, #tpu.memory_space<vmem>>, vector<16x32xf32>
    tpu.vector_store %arg30[%c0_146, %c0_147], %453 {strides = array<i32>} : memref<16x32xf32, #tpu.memory_space<vmem>>, vector<16x32xf32>,
    return
  }
  func.func @transform_0(%arg0: i32) -> (i32, i32) {
    %c0_i32 = arith.constant 0 : i32
    %c0_i32_0 = arith.constant 0 : i32
    return %arg0, %c0_i32 : i32, i32
  }
  func.func @transform_1(%arg0: i32) -> (i32, i32) {
    %c0_i32 = arith.constant 0 : i32
    %c0_i32_0 = arith.constant 0 : i32
    return %arg0, %c0_i32 : i32, i32
  }
  func.func @transform_2(%arg0: i32) -> (i32, i32) {
    %c0_i32 = arith.constant 0 : i32
    %c0_i32_0 = arith.constant 0 : i32
    return %arg0, %c0_i32 : i32, i32
  }
  func.func @transform_3(%arg0: i32) -> (i32, i32) {
    %c0_i32 = arith.constant 0 : i32
    %c0_i32_0 = arith.constant 0 : i32
    return %arg0, %c0_i32 : i32, i32
  }
  func.func @transform_4(%arg0: i32) -> (i32, i32, i32) {
    %c0_i32 = arith.constant 0 : i32
    %c0_i32_0 = arith.constant 0 : i32
    %c0_i32_1 = arith.constant 0 : i32
    return %arg0, %c0_i32, %c0_i32_0 : i32, i32, i32
  }
  func.func @transform_5(%arg0: i32) -> (i32, i32) {
    %c0_i32 = arith.constant 0 : i32
    %c0_i32_0 = arith.constant 0 : i32
    %c0_i32_1 = arith.constant 0 : i32
    return %c0_i32, %c0_i32_0 : i32, i32
  }
  func.func @transform_6(%arg0: i32) -> (i32, i32) {
    %c0_i32 = arith.constant 0 : i32
    %c0_i32_0 = arith.constant 0 : i32
    %c0_i32_1 = arith.constant 0 : i32
    return %c0_i32, %c0_i32_0 : i32, i32
  }
  func.func @transform_7(%arg0: i32) -> (i32, i32) {
    %c0_i32 = arith.constant 0 : i32
    %c0_i32_0 = arith.constant 0 : i32
    %c0_i32_1 = arith.constant 0 : i32
    return %c0_i32, %c0_i32_0 : i32, i32
  }
  func.func @transform_8(%arg0: i32) -> (i32, i32) {
    %c0_i32 = arith.constant 0 : i32
    %c0_i32_0 = arith.constant 0 : i32
    %c0_i32_1 = arith.constant 0 : i32
    return %c0_i32, %c0_i32_0 : i32, i32
  }
  func.func @transform_9(%arg0: i32) -> (i32, i32) {
    %c0_i32 = arith.constant 0 : i32
    %c0_i32_0 = arith.constant 0 : i32
    %c0_i32_1 = arith.constant 0 : i32
    return %c0_i32, %c0_i32_0 : i32, i32
  }
  func.func @transform_10(%arg0: i32) -> (i32, i32) {
    %c0_i32 = arith.constant 0 : i32
    %c0_i32_0 = arith.constant 0 : i32
    %c0_i32_1 = arith.constant 0 : i32
    return %c0_i32, %c0_i32_0 : i32, i32
  }
  func.func @transform_11(%arg0: i32) -> (i32, i32) {
    %c0_i32 = arith.constant 0 : i32
    %c0_i32_0 = arith.constant 0 : i32
    %c0_i32_1 = arith.constant 0 : i32
    return %c0_i32, %c0_i32_0 : i32, i32
  }
  func.func @transform_12(%arg0: i32) -> (i32, i32) {
    %c0_i32 = arith.constant 0 : i32
    %c0_i32_0 = arith.constant 0 : i32
    %c0_i32_1 = arith.constant 0 : i32
    return %c0_i32, %c0_i32_0 : i32, i32
  }
  func.func @transform_13(%arg0: i32) -> (i32, i32) {
    %c0_i32 = arith.constant 0 : i32
    %c0_i32_0 = arith.constant 0 : i32
    %c0_i32_1 = arith.constant 0 : i32
    return %c0_i32, %c0_i32_0 : i32, i32
  }
  func.func @transform_14(%arg0: i32) -> (i32, i32) {
    %c0_i32 = arith.constant 0 : i32
    %c0_i32_0 = arith.constant 0 : i32
    %c0_i32_1 = arith.constant 0 : i32
    return %c0_i32, %c0_i32_0 : i32, i32
  }
  func.func @transform_15(%arg0: i32) -> (i32, i32) {
    %c0_i32 = arith.constant 0 : i32
    %c0_i32_0 = arith.constant 0 : i32
    %c0_i32_1 = arith.constant 0 : i32
    return %c0_i32, %c0_i32_0 : i32, i32
  }
  func.func @transform_16(%arg0: i32) -> (i32, i32) {
    %c0_i32 = arith.constant 0 : i32
    %c0_i32_0 = arith.constant 0 : i32
    %c0_i32_1 = arith.constant 0 : i32
    return %c0_i32, %c0_i32_0 : i32, i32
  }
  func.func @transform_17(%arg0: i32) -> (i32, i32) {
    %c0_i32 = arith.constant 0 : i32
    %c0_i32_0 = arith.constant 0 : i32
    %c0_i32_1 = arith.constant 0 : i32
    return %c0_i32, %c0_i32_0 : i32, i32
  }
  func.func @transform_18(%arg0: i32) -> (i32, i32) {
    %c0_i32 = arith.constant 0 : i32
    %c0_i32_0 = arith.constant 0 : i32
    %c0_i32_1 = arith.constant 0 : i32
    return %c0_i32, %c0_i32_0 : i32, i32
  }
  func.func @transform_19(%arg0: i32) -> (i32, i32) {
    %c0_i32 = arith.constant 0 : i32
    %c0_i32_0 = arith.constant 0 : i32
    %c0_i32_1 = arith.constant 0 : i32
    return %c0_i32, %c0_i32_0 : i32, i32
  }
  func.func @transform_20(%arg0: i32) -> (i32, i32) {
    %c0_i32 = arith.constant 0 : i32
    %c0_i32_0 = arith.constant 0 : i32
    %c0_i32_1 = arith.constant 0 : i32
    return %c0_i32, %c0_i32_0 : i32, i32
  }
  func.func @transform_21(%arg0: i32) -> (i32, i32) {
    %c0_i32 = arith.constant 0 : i32
    %c0_i32_0 = arith.constant 0 : i32
    %c0_i32_1 = arith.constant 0 : i32
    return %c0_i32, %c0_i32_0 : i32, i32
  }
  func.func @transform_22(%arg0: i32) -> (i32, i32) {
    %c0_i32 = arith.constant 0 : i32
    %c0_i32_0 = arith.constant 0 : i32
    %c0_i32_1 = arith.constant 0 : i32
    return %c0_i32, %c0_i32_0 : i32, i32
  }
  func.func @transform_23(%arg0: i32) -> (i32, i32) {
    %c0_i32 = arith.constant 0 : i32
    %c0_i32_0 = arith.constant 0 : i32
    %c0_i32_1 = arith.constant 0 : i32
    return %c0_i32, %c0_i32_0 : i32, i32
  }
  func.func @transform_24(%arg0: i32) -> (i32, i32) {
    %c0_i32 = arith.constant 0 : i32
    %c0_i32_0 = arith.constant 0 : i32
    %c0_i32_1 = arith.constant 0 : i32
    return %c0_i32, %c0_i32_0 : i32, i32
  }
  func.func @transform_25(%arg0: i32) -> (i32, i32) {
    %c0_i32 = arith.constant 0 : i32
    %c0_i32_0 = arith.constant 0 : i32
    %c0_i32_1 = arith.constant 0 : i32
    return %c0_i32, %c0_i32_0 : i32, i32
  }
  func.func @transform_26(%arg0: i32) -> (i32, i32) {
    %c0_i32 = arith.constant 0 : i32
    %c0_i32_0 = arith.constant 0 : i32
    %c0_i32_1 = arith.constant 0 : i32
    return %c0_i32, %c0_i32_0 : i32, i32
  }
  func.func @transform_27(%arg0: i32) -> (i32, i32) {
    %c0_i32 = arith.constant 0 : i32
    %c0_i32_0 = arith.constant 0 : i32
    %c0_i32_1 = arith.constant 0 : i32
    return %c0_i32, %c0_i32_0 : i32, i32
  }
  func.func @transform_28(%arg0: i32) -> (i32, i32) {
    %c0_i32 = arith.constant 0 : i32
    %c0_i32_0 = arith.constant 0 : i32
    %c0_i32_1 = arith.constant 0 : i32
    return %c0_i32, %c0_i32_0 : i32, i32
  }
  func.func @transform_29(%arg0: i32) -> (i32, i32) {
    %c0_i32 = arith.constant 0 : i32
    %c0_i32_0 = arith.constant 0 : i32
    return %arg0, %c0_i32 : i32, i32
  }
}

</mosaic_0001>

<bundles_post_ra>
// kernel: tpu_custom_call.1
= control target key start
LH: loop header
LB: loop body
LE: loop exit
PB: predicated region body
PF: predicated region fallthrough
CT: control target
= control target key end

     0   :  { %s5177_s6 = smov 1   ;;  %s5178_s10 = smov 2   ;;  %s6108_s0 = inlined_call_operand.smem [shape: u32[30], index: -1, kind: input, shape index: {}] }
   0x1   :  { %s5242_s5 = sld [smem:[%s6108_s0]]   ;;  %s5179_s14 = smov 3  }
   0x2   :  { %s5247_s9 = sld [smem:[%s6108_s0 + %s5177_s6]]   ;;  %s5180_s18 = smov 4  }
   0x3   :  { %s5252_s13 = sld [smem:[%s6108_s0 + %s5178_s10]]   ;;  %s5181_s22 = smov 5  }
   0x4   :  { %s5257_s17 = sld [smem:[%s6108_s0 + %s5179_s14]]   ;;  %s5182_s26 = smov 6  }
   0x5   :  { %s5262_s21 = sld [smem:[%s6108_s0 + %s5180_s18]]   ;;  %s5183_s30 = smov 7  }
   0x6   :  { %s5267_s25 = sld [smem:[%s6108_s0 + %s5181_s22]]   ;;  %s5184_s4 = smov 8  }
   0x7   :  { %6132 = sst [smem:[#allocation27_spill]] %s5242_s5  ;;  %s5185_s10 = smov 9  }
   0x8   :  { %6133 = sst [smem:[#allocation28_spill]] %s5247_s9  ;;  %s5186_s15 = smov 10  }
   0x9   :  { %6134 = sst [smem:[#allocation29_spill]] %s5252_s13  ;;  %s5187_s20 = smov 11  }
   0xa   :  { %s5272_s29 = sld [smem:[%s6108_s0 + %s5182_s26]]   ;;  %s5188_s26 = smov 12  }
   0xb   :  { %s5277_s3 = sld [smem:[%s6108_s0 + %s5183_s30]]   ;;  %s5189_s1 = smov 13  }
   0xc   :  { %s5282_s8 = sld [smem:[%s6108_s0 + %s5184_s4]]   ;;  %s5190_s7 = smov 14  }
   0xd   :  { %s5287_s14 = sld [smem:[%s6108_s0 + %s5185_s10]]   ;;  %s5192_s22 = smov 16  }
   0xe   :  { %s5292_s19 = sld [smem:[%s6108_s0 + %s5186_s15]]   ;;  %s5191_s15 = smov 15  }
   0xf   :  { %s5297_s24 = sld [smem:[%s6108_s0 + %s5187_s20]]   ;;  %s5193_s28 = smov 17  }
  0x10   :  { %s5302_s30 = sld [smem:[%s6108_s0 + %s5188_s26]]  }
  0x11   :  { %6135 = sst [smem:[#allocation30_spill]] %s5277_s3 }
  0x12   :  { %6136 = sst [smem:[#allocation31_spill]] %s5282_s8 }
  0x13   :  { %6137 = sst [smem:[#allocation32_spill]] %s5287_s14 }
  0x14   :  { %6138 = sst [smem:[#allocation33_spill]] %s5292_s19 }
  0x15   :  { %6139 = sst [smem:[#allocation34_spill]] %s5297_s24 }
  0x16   :  { %s5307_s6 = sld [smem:[%s6108_s0 + %s5189_s1]]  }
  0x17   :  { %s5312_s12 = sld [smem:[%s6108_s0 + %s5190_s7]]   ;;  %s5194_s7 = smov 18  }
  0x18   :  { %s5317_s20 = sld [smem:[%s6108_s0 + %s5191_s15]]   ;;  %s5195_s15 = smov 19  }
  0x19   :  { %s5322_s27 = sld [smem:[%s6108_s0 + %s5192_s22]]   ;;  %s5196_s22 = smov 20  }
  0x1a   :  { %s5327_s4 = sld [smem:[%s6108_s0 + %s5193_s28]]   ;;  %s5197_s28 = smov 21  }
  0x1b   :  { %s5332_s24 = sld [smem:[%s6108_s0 + %s5194_s7]]   ;;  %s5198_s7 = smov 22  }
  0x1c   :  { %6140 = sst [smem:[#allocation35_spill]] %s5307_s6 }
  0x1d   :  { %6141 = sst [smem:[#allocation36_spill]] %s5312_s12 }
  0x1e   :  { %6142 = sst [smem:[#allocation37_spill]] %s5317_s20 }
  0x1f   :  { %s5337_s13 = sld [smem:[%s6108_s0 + %s5195_s15]]   ;;  %s5199_s15 = smov 23  }
  0x20   :  { %6143 = sst [smem:[#allocation38_spill]] %s5327_s4 }
  0x21   :  { %s5342_s9 = sld [smem:[%s6108_s0 + %s5196_s22]]   ;;  %s5200_s22 = smov 24  }
  0x22   :  { %s5347_s6 = sld [smem:[%s6108_s0 + %s5197_s28]]   ;;  %s5201_s28 = smov 25  }
  0x23   :  { %s5352_s14 = sld [smem:[%s6108_s0 + %s5198_s7]]   ;;  %s5202_s7 = smov 26  }
  0x25   :  { %6144 = sst [smem:[#allocation39_spill]] %s5337_s13 }
  0x26   :  { %s5357_s13 = sld [smem:[%s6108_s0 + %s5199_s15]]   ;;  %s5203_s15 = smov 27  }
  0x27   :  { %6145 = sst [smem:[#allocation40_spill]] %s5342_s9 }
  0x28   :  { %6146 = sst [smem:[#allocation41_spill]] %s5347_s6 }
  0x29   :  { %6147 = sst [smem:[#allocation42_spill]] %s5352_s14 }
  0x2a   :  { %s5362_s9 = sld [smem:[%s6108_s0 + %s5200_s22]]   ;;  %s5204_s22 = smov 28  }
  0x2b   :  { %s5367_s6 = sld [smem:[%s6108_s0 + %s5201_s28]]   ;;  %s5205_s28 = smov 29  }
  0x2c   :  { %6148 = sst [smem:[#allocation43_spill]] %s5357_s13 }
  0x2d   :  { %s5372_s14 = sld [smem:[%s6108_s0 + %s5202_s7]]  }
  0x2e   :  { %s5377_s13 = sld [smem:[%s6108_s0 + %s5203_s15]]  }
  0x30   :  { %6149 = sst [smem:[#allocation44_spill]] %s5362_s9 }
  0x31   :  { %6150 = sst [smem:[#allocation45_spill]] %s5367_s6 }
  0x32   :  { %s5382_s9 = sld [smem:[%s6108_s0 + %s5204_s22]]  }
  0x33   :  { %s5387_s6 = sld [smem:[%s6108_s0 + %s5205_s28]]  }
  0x34   :  { %6151 = sst [smem:[#allocation46_spill]] %s5377_s13 }
  0x38   :  { %6152 = sst [smem:[#allocation47_spill]] %s5382_s9 }
  0x39   :  { %6153 = sst [smem:[#allocation48_spill]] %s5387_s6 }
  0x3a   :  { %64 = vsyncpa [#allocation3], 0 }
  0x3b   :  { %66 = vsyncpa [#allocation3 + $0x1], 0 }
  0x3c   :  { %67 = vsyncpa [#allocation6], 0 }
  0x3d   :  { %68 = vsyncpa [#allocation9], 0 }
  0x3e   :  { %69 = vsyncpa [#allocation12], 0 }
  0x3f   :  { %70 = vsyncpa [#allocation15], 0 }
  0x40   :  { %71 = vsyncpa [#allocation18], 0 }
  0x41   :  { %72 = vsyncpa [#allocation4], 0 }
  0x42   :  { %74 = vsyncpa [#allocation4 + $0x1], 0  ;;  %s5389_s7 = smov 0   ;;  %s5391_s10 = smov 0  }
  0x43   :  { %s5393_s11 = smov 0   ;;  %s5395_s15 = smov 0  }
  0x44 LB: > { %s6154_s3 = sld [smem:[#allocation30_spill]]  ;;  %s5206_s0 = smov [#allocation5]   ;;  %s5163_s7 = sphi %s5389_s7, %s6204_s7   ;;  %s5175_s15 = sphi %s5395_s15, %s6207_s15   ;;  %s5171_s11 = sphi %s5393_s11, %s6206_s11   ;;  %s5167_s10 = sphi %s5391_s10, %s6205_s10  }
  0x45   : > { %s761_s16 = sshll.u32 %s5206_s0, 4  ;;  %s5410_s18 = sadd.s32 4294967295, %s5175_s15   ;;  %s762_s16 = int_to_ptr.vmem [resolvable:$true] %s761_s16 }
  0x46   : > { %p4056_p0 = scmp.ge.s32.totalorder %s5175_s15, 1  ;;  %p6115_p1 = scmp.eq.s32.totalorder %s5410_s18, 0 }
  0x47   : > { %p745_p2 = scmp.lt.s32.totalorder %s5175_s15, 3  ;;  %s5207_s23 = smov [#allocation8]  }
  0x48   : > { %s789_s26 = sshll.u32 %s5207_s23, 4  ;;  %s5208_s28 = smov [#allocation11]   ;;  %s5422_s26 = int_to_ptr.vmem [resolvable:$true] %s789_s26 }
  0x49   : > { %p5415_p3 = pnand %p4056_p0, %p745_p2  ;;  %s817_s1 = sshll.u32 %s5208_s28, 4  ;;  %s5430_s1 = int_to_ptr.vmem [resolvable:$true] %s817_s1 }
  0x4a   : > { %s5209_s0 = smov [#allocation14]   ;;  %s4840_s23 = scalar_lea.vmem %s762_s16, 16 }
  0x4b   : > { %s6155_s22 = scalar_select %p5415_p3, 1, 0 }
  0x4c   : > { %p4588_p5 = pneg %p5415_p3  ;;  %s5432_s6 = sshll.u32 %s5209_s0, 4  ;;  %s842_s6 = int_to_ptr.vmem [resolvable:$true] %s5432_s6 }
  0x4d   : > { %p4841_p8 = scmp.ne.s32.totalorder %s762_s16, %s4840_s23  ;;  %s4847_s28 = scalar_lea.vmem %s762_s16, 32 }
  0x4e   : > { %p5426_p6 = pnand %p4588_p5, %p6115_p1  ;;  %p4848_p11 = scmp.lt.s32.totalorder %s762_s16, %s762_s16 }
  0x4f   : > { %p4849_p12 = scmp.lt.s32.totalorder %s4847_s28, %s4840_s23 }
  0x50   : > { %p5436_p7 = pneg %p5426_p6 }
  0x51   : > { %p4850_p13 = por %p4849_p12, %p4848_p11 }
  0x52   : > { %p4843_p9 = pnand %p4841_p8, %p5436_p7 }
  0x54   : > { %p4844_p10 = pneg %p4843_p9 }
  0x56   : > { %p4851_p0 = pnand %p4850_p13, %p4844_p10 }
  0x58   : > { %4854 = shalt.err (!%p4851_p0)
}
  0x59   : > { %4591 = dma.hbm_to_vmem [thread:$0]  (!%p5426_p6), %s5272_s29, 16, %s762_s16, [#allocation6]  }
  0x5a   : > { %s4866_s0 = scalar_lea.vmem %s5422_s26, 16  ;;  %s4873_s13 = scalar_lea.vmem %s5422_s26, 32 }
  0x5b   : > { %p4867_p2 = scmp.ne.s32.totalorder %s5422_s26, %s4866_s0  ;;  %p4874_p9 = scmp.lt.s32.totalorder %s5422_s26, %s5422_s26 }
  0x5c   : > { %p4875_p11 = scmp.lt.s32.totalorder %s4873_s13, %s4866_s0 }
  0x5d   : > { %p4869_p5 = pnand %p4867_p2, %p5436_p7 }
  0x5e   : > { %p4876_p10 = por %p4875_p11, %p4874_p9 }
  0x5f   : > { %p4870_p8 = pneg %p4869_p5 }
  0x61   : > { %p4877_p12 = pnand %p4876_p10, %p4870_p8 }
  0x63   : > { %4880 = shalt.err (!%p4877_p12)
}
  0x64   : > { %s6158_s19 = sld [smem:[#allocation33_spill]]  ;;  %s4892_s16 = scalar_lea.vmem %s5430_s1, 16 }
  0x65   : > { %p4893_p13 = scmp.ne.s32.totalorder %s5430_s1, %s4892_s16  ;;  %s4899_s23 = scalar_lea.vmem %s5430_s1, 32 }
  0x66   : > { %p4900_p5 = scmp.lt.s32.totalorder %s5430_s1, %s5430_s1  ;;  %p4901_p8 = scmp.lt.s32.totalorder %s4899_s23, %s4892_s16 }
  0x67   : > { %p4895_p0 = pnand %p4893_p13, %p5436_p7 }
  0x68   : > { %p4902_p9 = por %p4901_p8, %p4900_p5 }
  0x69   : > { %p4896_p2 = pneg %p4895_p0 }
  0x6a   : > { %4597 = dma.hbm_to_vmem [thread:$0]  (!%p5426_p6), %s6158_s19, 16, %s5422_s26, [#allocation9]  }
  0x6b   : > { %p4903_p11 = pnand %p4902_p9, %p4896_p2 }
  0x6d   : > { %4906 = shalt.err (!%p4903_p11)
}
  0x6e   : > { %s6159_s12 = sld [smem:[#allocation36_spill]]  ;;  %s5210_s13 = smov [#allocation7]  }
  0x6f   : > { %s775_s26 = sshll.u32 %s5210_s13, 4  ;;  %s4918_s28 = scalar_lea.vmem %s842_s6, 16  ;;  %s776_s26 = int_to_ptr.vmem [resolvable:$true] %s775_s26 }
  0x70   : > { %p4919_p10 = scmp.ne.s32.totalorder %s842_s6, %s4918_s28  ;;  %s4925_s0 = scalar_lea.vmem %s842_s6, 32 }
  0x71   : > { %p4926_p0 = scmp.lt.s32.totalorder %s842_s6, %s842_s6  ;;  %p4927_p5 = scmp.lt.s32.totalorder %s4925_s0, %s4918_s28 }
  0x72   : > { %p4921_p12 = pnand %p4919_p10, %p5436_p7 }
  0x73   : > { %p4928_p2 = por %p4927_p5, %p4926_p0 }
  0x74   : > { %4603 = dma.hbm_to_vmem [thread:$0]  (!%p5426_p6), %s6159_s12, 16, %s5430_s1, [#allocation12]  }
  0x75   : > { %p4922_p13 = pneg %p4921_p12 }
  0x77   : > { %p4929_p8 = pnand %p4928_p2, %p4922_p13 }
  0x79   : > { %4932 = shalt.err (!%p4929_p8)
}
  0x7a   : > { %4609 = dma.hbm_to_vmem [thread:$0]  (!%p5426_p6), %s5322_s27, 16, %s842_s6, [#allocation15]  }
  0x7b   : > { %s4944_s1 = scalar_lea.vmem %s776_s26, 16  ;;  %s4951_s16 = scalar_lea.vmem %s776_s26, 32 }
  0x7c   : > { %p4945_p9 = scmp.ne.s32.totalorder %s776_s26, %s4944_s1  ;;  %p4952_p10 = scmp.lt.s32.totalorder %s776_s26, %s776_s26 }
  0x7d   : > { %p4953_p12 = scmp.lt.s32.totalorder %s4951_s16, %s4944_s1 }
  0x7e   : > { %p4947_p11 = pnand %p4945_p9, %p5436_p7 }
  0x7f   : > { %p4954_p1 = por %p4953_p12, %p4952_p10 }
  0x80   : > { %p4948_p4 = pneg %p4947_p11 }
  0x82   : > { %p4955_p3 = pnand %p4954_p1, %p4948_p4 }
  0x84   : > { %4958 = shalt.err (!%p4955_p3)
}
  0x85   : > { %s6160_s8 = sld [smem:[#allocation31_spill]]  ;;  %s5211_s23 = smov [#allocation10]  }
  0x86   : > { %s803_s13 = sshll.u32 %s5211_s23, 4  ;;  %s5212_s6 = smov [#allocation13]   ;;  %s804_s13 = int_to_ptr.vmem [resolvable:$true] %s803_s13 }
  0x87   : > { %s827_s28 = sshll.u32 %s5212_s6, 4  ;;  %s4970_s0 = scalar_lea.vmem %s804_s13, 16  ;;  %s828_s28 = int_to_ptr.vmem [resolvable:$true] %s827_s28 }
  0x88   : > { %p4971_p13 = scmp.ne.s32.totalorder %s804_s13, %s4970_s0  ;;  %s4977_s12 = scalar_lea.vmem %s804_s13, 32 }
  0x89   : > { %p4978_p2 = scmp.lt.s32.totalorder %s804_s13, %s804_s13  ;;  %p4979_p8 = scmp.lt.s32.totalorder %s4977_s12, %s4970_s0 }
  0x8a   : > { %p4973_p0 = pnand %p4971_p13, %p5436_p7 }
  0x8b   : > { %4594 = dma.hbm_to_vmem [thread:$0]  (!%p5426_p6), %s6160_s8, 16, %s776_s26, [#allocation6]  }
  0x8c   : > { %p4974_p5 = pneg %p4973_p0  ;;  %p4980_p1 = por %p4979_p8, %p4978_p2 }
  0x8e   : > { %p4981_p3 = pnand %p4980_p1, %p4974_p5 }
  0x90   : > { %4984 = shalt.err (!%p4981_p3)
}
  0x91   : > { %4600 = dma.hbm_to_vmem [thread:$0]  (!%p5426_p6), %s5302_s30, 16, %s804_s13, [#allocation9]  }
  0x92   : > { %s4996_s26 = scalar_lea.vmem %s828_s28, 256  ;;  %p5004_p10 = scmp.lt.s32.totalorder %s828_s28, %s828_s28 }
  0x93   : > { %p4997_p4 = scmp.ne.s32.totalorder %s828_s28, %s4996_s26  ;;  %p5005_p12 = scmp.lt.s32.totalorder %s4996_s26, %s4996_s26 }
  0x95   : > { %p4999_p9 = pnand %p4997_p4, %p5436_p7  ;;  %p5006_p13 = por %p5005_p12, %p5004_p10 }
  0x97   : > { %p5000_p11 = pneg %p4999_p9 }
  0x99   : > { %p5007_p0 = pnand %p5006_p13, %p5000_p11 }
  0x9b   : > { %5010 = shalt.err (!%p5007_p0)
}
  0x9c   : > { %s5213_s12 = smov 64   ;;  %s6161_s20 = sld [smem:[#allocation37_spill]] }
  0x9d   : > { %s5214_s1 = smov 4   ;;  %s5215_s16 = smov [#allocation16]  }
  0x9e   : > { %s851_s23 = sshll.u32 %s5215_s16, 4  ;;  %s5216_s13 = smov [#allocation17]   ;;  %s852_s23 = int_to_ptr.vmem [resolvable:$true] %s851_s23 }
  0x9f   : > { %s865_s6 = sshll.u32 %s5216_s13, 4  ;;  %s5022_s0 = scalar_lea.vmem %s852_s23, 256  ;;  %s866_s6 = int_to_ptr.vmem [resolvable:$true] %s865_s6 }
  0xa0   : > { %p5023_p5 = scmp.ne.s32.totalorder %s852_s23, %s5022_s0  ;;  %p5030_p1 = scmp.lt.s32.totalorder %s852_s23, %s852_s23 }
  0xa1   : > { %p5031_p3 = scmp.lt.s32.totalorder %s5022_s0, %s5022_s0 }
  0xa2   : > { %4606 = dma.hbm_to_vmem [thread:$0]  (!%p5426_p6), %s6161_s20, 256, %s828_s28, [#allocation12], %s5213_s12, %s5213_s12, %s5214_s1  }
  0xa3   : > { %p5025_p2 = pnand %p5023_p5, %p5436_p7  ;;  %p5032_p4 = por %p5031_p3, %p5030_p1 }
  0xa5   : > { %p5026_p8 = pneg %p5025_p2 }
  0xa7   : > { %p5033_p9 = pnand %p5032_p4, %p5026_p8 }
  0xa9   : > { %5036 = shalt.err (!%p5033_p9)
}
  0xaa   : > { %s6162_s4 = sld [smem:[#allocation38_spill]]  ;;  %s5048_s28 = scalar_lea.vmem %s866_s6, 16 }
  0xab   : > { %p5049_p11 = scmp.ne.s32.totalorder %s866_s6, %s5048_s28  ;;  %s5055_s26 = scalar_lea.vmem %s866_s6, 32 }
  0xac   : > { %p5056_p13 = scmp.lt.s32.totalorder %s866_s6, %s866_s6  ;;  %p5057_p0 = scmp.lt.s32.totalorder %s5055_s26, %s5048_s28 }
  0xad   : > { %p5051_p10 = pnand %p5049_p11, %p5436_p7 }
  0xae   : > { %p5058_p5 = por %p5057_p0, %p5056_p13 }
  0xaf   : > { %p5052_p12 = pneg %p5051_p10 }
  0xb0   : > { %4612 = dma.hbm_to_vmem [thread:$0]  (!%p5426_p6), %s6162_s4, 256, %s852_s23, [#allocation15], %s5213_s12, %s5213_s12, %s5214_s1  }
  0xb1   : > { %p5059_p2 = pnand %p5058_p5, %p5052_p12 }
  0xb3   : > { %5062 = shalt.err (!%p5059_p2)
}
  0xb4   : > { %4615 = dma.hbm_to_vmem [thread:$0]  (!%p5426_p6), %s5332_s24, 16, %s866_s6, [#allocation18]  }
  0xb5   : > { %s4055_s9 = sadd.s32 4294967294, %s5175_s15   ;;  %s5500_s12 = sadd.s32 1, %s5175_s15  }
  0xb6   : > { %s191_s2 = sadd.s32 1, %s5171_s11  ;;  %s188_s1 = ssub.s32 %s5175_s15, %s5500_s12 }
  0xb7   : > { %p198_p7 = scmp.ne.s32.totalorder %s5171_s11, %s5167_s10  ;;  %p189_p8 = scmp.eq.s32.totalorder %s188_s1, 0 }
  0xb8   : > { %p199_p1 = scmp.eq.s32.totalorder %s5175_s15, 0  ;;  %p204_p3 = scmp.ne.s32.totalorder %s5167_s10, %s5163_s7 }
  0xb9   : > { %p732_p4 = scmp.eq.s32.totalorder %s5410_s18, 1  ;;  %p6163_p11 = scmp.eq.s32.totalorder %s5410_s18, 0 }
  0xba   : > { %s5512_s16 = scalar_select %p189_p8, %s5171_s11, %s191_s2  }
  0xbb   : > { %p200_p9 = por %p199_p1, %p198_p7  ;;  %p5516_p10 = por %p6163_p11, %p204_p3 }
  0xbc   : > { %p5520_p6 = por %p732_p4, %p198_p7  ;;  %p738_p12 = scmp.eq.s32.totalorder %s4055_s9, 1 }
  0xbd   : > { %s6164_s23 = scalar_select %p5516_p10, 1, 0 }
  0xbe   : > { %s6165_s13 = scalar_select %p5520_p6, 1, 0 }
  0xbf   : > { %p4633_p13 = scmp.lt.s32.totalorder %s5175_s15, 2  ;;  %s942_s6 = sand.u32 1, %s5171_s11  }
  0xc0   : > { %p5526_p0 = por %p738_p12, %p204_p3  ;;  %s4067_s28 = sshll.u32 %s942_s6, 1 }
  0xc1   : > { %s4179_s26 = sshll.u32 %s5175_s15, 5  ;;  %s946_s1 = scalar_lea.vmem [#allocation2], %s4067_s28 }
  0xc2   : > { %s6166_s0 = scalar_select %p5526_p0, 1, 0 }
  0xc3   : > { %s5532_s2 = scalar_lea.hbm %s5262_s21, %s4179_s26  ;;  %s953_s4 = sshll.u32 %s946_s1, 4  ;;  %s5538_s4 = int_to_ptr.vmem [resolvable:$true] %s953_s4 }
  0xc4   : > { %p5534_p5 = pnand %p4633_p13, %p200_p9  ;;  %s5540_s9 = scalar_lea.sflag [#allocation3], %s942_s6 }
  0xc5   : > { %s5063_s19 = scalar_lea.hbm %s5532_s2, 32  ;;  %s5068_s26 = scalar_lea.hbm %s5262_s21, 64 }
  0xc6   : > { %p5064_p2 = scmp.ne.s32.totalorder %s5532_s2, %s5063_s19  ;;  %p5065_p7 = pneg %p5534_p5 }
  0xc7   : > { %p5069_p3 = scmp.lt.s32.totalorder %s5532_s2, %s5262_s21  ;;  %p5070_p4 = scmp.lt.s32.totalorder %s5068_s26, %s5063_s19 }
  0xc8   : > { %p5066_p8 = pnand %p5065_p7, %p5064_p2 }
  0xc9   : > { %p5071_p11 = por %p5070_p4, %p5069_p3 }
  0xca   : > { %p5067_p1 = pneg %p5066_p8 }
  0xcc   : > { %p5072_p12 = pnand %p5071_p11, %p5067_p1 }
  0xce   : > { %5075 = shalt.err (!%p5072_p12)
}
  0xcf   : > { %s5076_s28 = scalar_lea.vmem %s5538_s4, 32  ;;  %s5217_s6 = smov [#allocation2]  }
  0xd0   : > { %p5077_p9 = scmp.ne.s32.totalorder %s5538_s4, %s5076_s28  ;;  %s5081_s1 = sshll.u32 %s5217_s6, 4  ;;  %s5082_s1 = int_to_ptr.vmem [resolvable:$false] %s5081_s1 }
  0xd1   : > { %s5083_s20 = scalar_lea.vmem %s5082_s1, 64  ;;  %p5084_p6 = scmp.lt.s32.totalorder %s5538_s4, %s5082_s1 }
  0xd2   : > { %p5079_p13 = pnand %p5077_p9, %p5065_p7  ;;  %p5085_p2 = scmp.lt.s32.totalorder %s5083_s20, %s5076_s28 }
  0xd4   : > { %p5080_p0 = pneg %p5079_p13  ;;  %p5086_p8 = por %p5085_p2, %p5084_p6 }
  0xd6   : > { %p5087_p10 = pnand %p5086_p8, %p5080_p0 }
  0xd8   : > { %5090 = shalt.err (!%p5087_p10)
}
  0xd9   : > { %s5218_s19 = smov 16   ;;  %s5219_s26 = smov 1  }
  0xda   : > { %4619 = dma.hbm_to_vmem [thread:$0]  (!%p5534_p5), %s5532_s2, 32, %s5538_s4, %s5540_s9, %s5218_s19, %s5218_s19, %s5219_s26  }
  0xdb   : > { %p6168_p7 = scmp.ne.s32.totalorder %s6155_s22, 0 }
  0xdc   : > { %s5560_s6 = sand.u32 (!%p6168_p7), 1, %s5167_s10   ;;  %p6169_p10 = scmp.ne.s32.totalorder (!%p6168_p7), %s6164_s23, 0 }
  0xdd   : > { %965 = sbr.rel (%p6168_p7) target bundleno = 4480 (0x1180), region = 136  ;;  %s4071_s20 = sshll.u32 (!%p6168_p7), %s5560_s6, 1 }
  0xde   : > { %s968_s28 = scalar_lea.sflag (!%p6168_p7), [#allocation3], %s5560_s6  ;;  %s5564_s1 = scalar_lea.vmem (!%p6168_p7), [#allocation2], %s4071_s20 }
  0xe2   : > { %5134 = dma.done.wait (%p6169_p10), %s968_s28, 32  }
  0xe3   : > { %5136 = vsyncadd (%p6169_p10), %s968_s28, 4294967264  ;;  %p6170_p6 = scmp.eq.s32.totalorder %s5410_s18, 0 }
  0xe5   : > { %5138 = dma.done.wait (%p6170_p6), [#allocation6], 32   ;;  %p6171_p0 = pmov %p6170_p6 }
  0xe7   : > { %5140 = vsyncadd (%p6171_p0), [#allocation6], 4294967264  ;;  %p6172_p5 = pmov %p6171_p0 }
  0xe8   : > { %p6173_p1 = pmov %p6171_p0 }
  0xe9   : > { %5142 = dma.done.wait (%p6172_p5), [#allocation9], 32  }
  0xea   : > { %5144 = vsyncadd (%p6173_p1), [#allocation9], 4294967264  ;;  %p6174_p3 = pmov %p6171_p0 }
  0xeb   : > { %p6175_p4 = pmov %p6171_p0 }
  0xec   : > { %5146 = dma.done.wait (%p6174_p3), [#allocation12], 272  }
  0xed   : > { %5148 = vsyncadd (%p6175_p4), [#allocation12], 4294967024  ;;  %p6176_p11 = pmov %p6171_p0 }
  0xee   : > { %p6177_p12 = pmov %p6171_p0 }
  0xef   : > { %5150 = dma.done.wait (%p6176_p11), [#allocation15], 272  }
  0xf0   : > { %5152 = vsyncadd (%p6177_p12), [#allocation15], 4294967024  ;;  %p6178_p9 = pmov %p6171_p0 }
  0xf1   : > { %p6179_p13 = pmov %p6171_p0 }
  0xf2   : > { %5154 = dma.done.wait (%p6178_p9), [#allocation18], 16  }
  0xf3   : > { %5156 = vsyncadd (%p6179_p13), [#allocation18], 4294967280  ;;  %s6180_s5 = sld [smem:[#allocation27_spill]]  ;;  %s4082_s8 = sshll.u32 %s5410_s18, 1  ;;  %v5220_v0 = vmov 0.0   ;;  %vm5221_vm0 = vmmov 0  }
  0xf4   : > { %4280 = vmatprep.subr.bf16.mxu1 %v5220_v0  ;;  %4284 = vmatprep.mubr.msk.bf16.mxu1 %vm5221_vm0, %v5220_v0  ;;  %p1103_p2 = scmp.lt.s32.totalorder %s4082_s8, 3  ;;  %v4731_v1 = vld [vmem:[%s5267_s25 + $0x8] sm:$0xff]   ;;  %v4732_v2 = vld [vmem:[%s5267_s25] sm:$0xff]   ;;  %vm1163_vm1 = vcmask 261120   ;;  %s5222_s9 = smov 120   ;;  %vm1281_vm2 = vcmask 64512  }
  0xf5   : > { %4296 = vmatprep.subr.bf16.mxu0 %v5220_v0  ;;  %4298 = vmatprep.mubr.msk.bf16.mxu0 %vm5221_vm0, %v5220_v0  ;;  %v4090_v12 = vld [vmem:[#allocation5] ss:$0 sm:$0xff]  ;;  %s5223_s19 = smov 96   ;;  %s5224_s26 = smov 80   ;;  %v4733_v20 = vld [vmem:[%s6154_s3 + $0x8] sm:$0xff]   ;;  %vm1343_vm3 = vcmask 1043456  }
  0xf6   : > { %s6209_s8 = smov (!%p1103_p2, %s4082_s8), 3  ;;  %4281 = vmatpush3.bf16.msra.mxu1 %v4731_v1  ;;  %s5225_s20 = smov 88   ;;  %v4734_v21 = vld [vmem:[%s6154_s3] sm:$0xff]   ;;  %vm1737_vm4 = vcmask 195584   ;;  %vm1734_vm5 = vcmask 130048   ;;  %vm3712_vm6 = vcmask 523264  }
  0xf7   : > { %s4083_s4 = sshll.u32 %s6209_s8, 3  ;;  %s4089_s22 = sshll.u32 %s6209_s8, 2  ;;  %4282 = vmatprep.subr.bf16.mxu1 %v5220_v0 }
  0xf8   : > { %s1124_s2 = scalar_lea.vmem %s5257_s17, %s4089_s22  ;;  %s5226_s28 = smov 72  }
  0xf9   : > { %s1106_s23 = scalar_lea.vmem %s6180_s5, %s4083_s4  ;;  %v5605_v5 = vld [vmem:[%s1124_s2] sm:$0xff]   ;;  %s6127_s8 = smov 112  }
  0xfa   : > { %v5601_v3 = vld [vmem:[%s1106_s23] sm:$0xff]  ;;  %v5603_v4 = vld [vmem:[%s1106_s23 + $0x8] sm:$0xff]  ;;  %v4183_v6 = vunpack.c.l.bf16 %v5605_v5  ;;  %v4184_v7 = vunpack.c.h.bf16 %v5605_v5  ;;  %4283 = vmatpush3.bf16.msra.mxu1 %v4732_v2  ;;  %s6125_s4 = smov 104   ;;  %s6123_s22 = smov 8  }
  0xfb   : > { %4288 = vmatprep.subr.bf16.mxu1 %v5220_v0  ;;  %v1209_v22 = vpack.c.bf16 %v5603_v4, %v5601_v3  ;;  %s6181_s23 = sld [smem:[#allocation32_spill]]  ;;  %s6121_s2 = smov 16  }
  0xfc   : > { %v1137_v8 = vadd.f32 %v4183_v6, %v5601_v3  ;;  %v1138_v9 = vadd.f32 %v4184_v7, %v5603_v4  ;;  %p6201_p10 = scmp.ne.s32.totalorder %s6165_s13, 0 }
  0xfe   : > { %v1139_v10 = vpack.c.bf16 %v1138_v9, %v1137_v8 }
 0x100   : > { %4285 = vmatmul.mubr.msk.bf16.vlgmr.msra.gmra.mxu1 %vm1163_vm1, %v1139_v10 }
 0x101   : > { %4292 = vmatprep.mubr.msk.bf16.mxu1 %vm5221_vm0, %v5220_v0  ;;  %4289 = vmatpush3.bf16.msra.mxu1 %v4733_v20 }
 0x102   : > { %4290 = vmatprep.subr.bf16.mxu1 %v5220_v0 }
 0x105   : > { %4291 = vmatpush3.bf16.msra.mxu1 %v4734_v21 }
 0x106   : > { %4302 = vmatprep.subr.bf16.mxu1 %v5220_v0 }
 0x108   : > { %4293 = vmatmul.mubr.msk.bf16.vlgmr.msra.gmra.mxu1 %vm1163_vm1, %v1209_v22  ;;  %v4094_v22 = vld [vmem:[#allocation7] ss:$0 sm:$0xff] }
 0x109   : > { %4304 = vmatprep.mubr.msk.bf16.mxu1 %vm5221_vm0, %v5220_v0 }
 0x1c0   : > { %v1201_v11 = vpop.f32.mrf.mxu1 }
 0x1c1   : > { %v1202_v15 = vadd.f32 %v4090_v12, %v1201_v11 }
 0x1c2   : > { %v4286_v13 = vpop.f32.mrf.mxu1 }
 0x1c4   : > { %v1204_v14 = vpop.f32.mrf.mxu1 }
 0x1c5   : > { %v1205_v16 = vadd.f32 %v4090_v12, %v1204_v14 }
 0x1c6   : > { %v4287_v17 = vpop.f32.mrf.mxu1 }
 0x1c7   : > { %v1208_v18 = vpack.c.bf16 %v1205_v16, %v1202_v15 }
 0x1c9   : > { %1388 = vrot.lane.b32.xlu1 %v1208_v18, %s5222_s9  ;;  %1279 = vrot.lane.b32.xlu0 %v1208_v18, %s5223_s19  ;;  %v1740_v19 = vrot.slane %v1208_v18, 4 }
 0x1cd   : > { %1502 = vrot.lane.b32.xlu1 %v1208_v18, %s5224_s26  ;;  %1390 = vrot.lane.b32.xlu0 %v1208_v18, %s5225_s20 }
 0x1d1   : > { %1613 = vrot.lane.b32.xlu1 %v1208_v18, %s5226_s28  ;;  %1500 = vrot.lane.b32.xlu0 %v1208_v18, %s6127_s8 }
 0x1d5   : > { %1611 = vrot.lane.b32.xlu0 %v1208_v18, %s6125_s4  ;;  %1741 = vrot.lane.b32.xlu1 %v1740_v19, %s5223_s19  ;;  %s6119_s19 = smov 24  }
 0x1d9   : > { %1851 = vrot.lane.b32.xlu0 %v1740_v19, %s5225_s20  ;;  %1849 = vrot.lane.b32.xlu1 %v1740_v19, %s5222_s9  ;;  %s6183_s20 = sld [smem:[#allocation28_spill]] }
 0x1dd   : > { %1962 = vrot.lane.b32.xlu0 %v1740_v19, %s5224_s26  ;;  %1960 = vrot.lane.b32.xlu1 %v1740_v19, %s6127_s8  ;;  %s6182_s26 = sld [smem:[#allocation35_spill]] }
 0x1e1   : > { %2073 = vrot.lane.b32.xlu0 %v1740_v19, %s5226_s28  ;;  %2071 = vrot.lane.b32.xlu1 %v1740_v19, %s6125_s4  ;;  %s6184_s28 = sld [smem:[#allocation29_spill]] }
 0x23b   : > { %v1280_v23 = vpop.permute.xlu0 %1279  ;;  %v1389_v26 = vpop.permute.xlu1 %1388 }
 0x23c   : > { %v1286_v24 = vsel %vm1281_vm2, %v1280_v23, 0 }
 0x23d   : > { %4297 = vmatpush3.bf16.xpose.msra.mxu0 %v1286_v24 }
 0x23e   : > { %4308 = vmatprep.subr.bf16.mxu0 %v5220_v0 }
 0x23f   : > { %v1391_v25 = vpop.permute.xlu0 %1390  ;;  %v1503_v28 = vpop.permute.xlu1 %1502 }
 0x240   : > { %v1396_v27 = vsel %vm1281_vm2, %v1391_v25, 0  ;;  %v1508_v29 = vsel %vm1281_vm2, %v1503_v28, 0 }
 0x243   : > { %v1614_v30 = vpop.permute.xlu1 %1613  ;;  %v1501_v31 = vpop.permute.xlu0 %1500 }
 0x244   : > { %4299 = vmatmul.mubr.msk.bf16.vlgmr.msra.gmra.mxu0 %vm1281_vm2, %v1208_v18  ;;  %v1619_v32 = vsel %vm1281_vm2, %v1614_v30, 0  ;;  %v1270_v18 = vpop.f32.mrf.mxu1 }
 0x245   : > { %4309 = vmatpush3.bf16.xpose.msra.mxu0 %v1396_v27  ;;  %4310 = vmatprep.mubr.msk.bf16.mxu0 %vm5221_vm0, %v5220_v0 }
 0x246   : > { %4320 = vmatprep.subr.bf16.mxu0 %v5220_v0  ;;  %v4294_v21 = vpop.f32.mrf.mxu1 }
 0x247   : > { %v1742_v33 = vpop.permute.xlu1 %1741  ;;  %v1612_v34 = vpop.permute.xlu0 %1611 }
 0x248   : > { %v1747_v35 = vsel %vm1281_vm2, %v1742_v33, 0  ;;  %v1273_v24 = vpop.f32.mrf.mxu1 }
 0x24a   : > { %v4295_v27 = vpop.f32.mrf.mxu1 }
 0x24b   : > { %v1852_v36 = vpop.permute.xlu0 %1851  ;;  %v1850_v39 = vpop.permute.xlu1 %1849 }
 0x24c   : > { %4311 = vmatmul.mubr.msk.bf16.vlgmr.msra.gmra.mxu0 %vm1281_vm2, %v1389_v26  ;;  %v1857_v37 = vsel %vm1281_vm2, %v1852_v36, 0  ;;  %v1271_v26 = vadd.f32 %v4094_v22, %v1270_v18 }
 0x24d   : > { %4321 = vmatpush3.bf16.xpose.msra.mxu0 %v1508_v29  ;;  %4322 = vmatprep.mubr.msk.bf16.mxu0 %vm5221_vm0, %v5220_v0  ;;  %v1274_v29 = vadd.f32 %v4094_v22, %v1273_v24 }
 0x24e   : > { %4332 = vmatprep.subr.bf16.mxu0 %v5220_v0 }
 0x24f   : > { %v1963_v38 = vpop.permute.xlu0 %1962  ;;  %v1961_v42 = vpop.permute.xlu1 %1960 }
 0x250   : > { %v1968_v40 = vsel %vm1281_vm2, %v1963_v38, 0 }
 0x253   : > { %v2074_v41 = vpop.permute.xlu0 %2073  ;;  %v2072_v44 = vpop.permute.xlu1 %2071 }
 0x254   : > { %4323 = vmatmul.mubr.msk.bf16.vlgmr.msra.gmra.mxu0 %vm1281_vm2, %v1501_v31  ;;  %v2079_v43 = vsel %vm1281_vm2, %v2074_v41, 0 }
 0x255   : > { %4333 = vmatpush3.bf16.xpose.msra.mxu0 %v1619_v32  ;;  %4334 = vmatprep.mubr.msk.bf16.mxu0 %vm5221_vm0, %v5220_v0  ;;  %v5692_v32 = vpack.c.bf16 %v1274_v29, %v1271_v26 }
 0x256   : > { %4344 = vmatprep.subr.bf16.mxu0 %v5220_v0 }
 0x257   : > { %v1801_v18 = vrot.slane %v5692_v32, 4 }
 0x25c   : > { %4335 = vmatmul.mubr.msk.bf16.vlgmr.msra.gmra.mxu0 %vm1281_vm2, %v1612_v34  ;;  %v1345_v34 = vsel %vm1343_vm3, %v5692_v32, 0 }
 0x25d   : > { %4345 = vmatpush3.bf16.xpose.msra.mxu0 %v1747_v35  ;;  %4346 = vmatprep.mubr.msk.bf16.mxu0 %vm5221_vm0, %v5220_v0 }
 0x25e   : > { %4356 = vmatprep.subr.bf16.mxu0 %v5220_v0  ;;  %4303 = vmatpush3.bf16.msra.mxu1 %v1345_v34 }
 0x25f   : > { %4314 = vmatprep.subr.bf16.mxu1 %v5220_v0 }
 0x264   : > { %4347 = vmatmul.mubr.msk.bf16.vlgmr.msra.gmra.mxu0 %vm1281_vm2, %v1740_v19 }
 0x265   : > { %4357 = vmatpush3.bf16.xpose.msra.mxu0 %v1857_v37  ;;  %4358 = vmatprep.mubr.msk.bf16.mxu0 %vm5221_vm0, %v5220_v0 }
 0x266   : > { %4368 = vmatprep.subr.bf16.mxu0 %v5220_v0 }
 0x26c   : > { %4359 = vmatmul.mubr.msk.bf16.vlgmr.msra.gmra.mxu0 %vm1281_vm2, %v1850_v39 }
 0x26d   : > { %4369 = vmatpush3.bf16.xpose.msra.mxu0 %v1968_v40  ;;  %4370 = vmatprep.mubr.msk.bf16.mxu0 %vm5221_vm0, %v5220_v0 }
 0x26e   : > { %4380 = vmatprep.subr.bf16.mxu0 %v5220_v0 }
 0x274   : > { %4371 = vmatmul.mubr.msk.bf16.vlgmr.msra.gmra.mxu0 %vm1281_vm2, %v1961_v42 }
 0x275   : > { %4381 = vmatpush3.bf16.xpose.msra.mxu0 %v2079_v43  ;;  %4382 = vmatprep.mubr.msk.bf16.mxu0 %vm5221_vm0, %v5220_v0 }
 0x276   : > { %4392 = vmatprep.subr.bf16.mxu0 %v5220_v0 }
 0x27c   : > { %4383 = vmatmul.mubr.msk.bf16.vlgmr.msra.gmra.mxu0 %vm1281_vm2, %v2072_v44 }
 0x27d   : > { %4396 = vmatprep.mubr.msk.bf16.mxu0 %vm5221_vm0, %v5220_v0 }
 0x304   : > { %v1322_v45 = vpop.f32.mrf.mxu0 }
 0x305   : > { %v1328_v46 = vsel %vm1281_vm2, %v1322_v45, -inf }
 0x306   : > { %v4300_v47 = vpop.f32.mrf.mxu0  ;;  %1329 = vmax.xlane.f32.xlu0 %v1328_v46 }
 0x308   : > { %v1325_v48 = vpop.f32.mrf.mxu0 }
 0x30a   : > { %v4301_v49 = vpop.f32.mrf.mxu0 }
 0x30c   : > { %v1432_v50 = vpop.f32.mrf.mxu0 }
 0x30d   : > { %v1438_v51 = vsel %vm1281_vm2, %v1432_v50, -inf }
 0x30e   : > { %v4312_v52 = vpop.f32.mrf.mxu0  ;;  %1439 = vmax.xlane.f32.xlu1 %v1438_v51 }
 0x310   : > { %v1435_v53 = vpop.f32.mrf.mxu0 }
 0x312   : > { %v4313_v54 = vpop.f32.mrf.mxu0 }
 0x314   : > { %v1544_v55 = vpop.f32.mrf.mxu0 }
 0x315   : > { %v1550_v56 = vsel %vm1281_vm2, %v1544_v55, -inf }
 0x316   : > { %v4324_v57 = vpop.f32.mrf.mxu0  ;;  %1551 = vmax.xlane.f32.xlu0 %v1550_v56 }
 0x318   : > { %v1547_v58 = vpop.f32.mrf.mxu0 }
 0x31a   : > { %v4325_v59 = vpop.f32.mrf.mxu0 }
 0x31c   : > { %v1655_v60 = vpop.f32.mrf.mxu0 }
 0x31d   : > { %v1661_v61 = vsel %vm1281_vm2, %v1655_v60, -inf }
 0x31e   : > { %v4336_v62 = vpop.f32.mrf.mxu0  ;;  %1662 = vmax.xlane.f32.xlu0 %v1661_v61 }
 0x320   : > { %v1658_v63 = vpop.f32.mrf.mxu0 }
 0x322   : > { %v4337_v1 = vpop.f32.mrf.mxu0 }
 0x324   : > { %v5679_v2 = vpop.f32.mrf.mxu0 }
 0x325   : > { %v1789_v8 = vsel %vm1281_vm2, %v5679_v2, -inf }
 0x326   : > { %1790 = vmax.xlane.f32.xlu1 %v1789_v8  ;;  %v4348_v9 = vpop.f32.mrf.mxu0 }
 0x328   : > { %v1786_v10 = vpop.f32.mrf.mxu0 }
 0x32a   : > { %v4349_v11 = vpop.f32.mrf.mxu0 }
 0x32c   : > { %v5683_v12 = vpop.f32.mrf.mxu0 }
 0x32d   : > { %v1899_v13 = vsel %vm1281_vm2, %v5683_v12, -inf }
 0x32e   : > { %1900 = vmax.xlane.f32.xlu0 %v1899_v13  ;;  %v4360_v14 = vpop.f32.mrf.mxu0 }
 0x330   : > { %v1896_v15 = vpop.f32.mrf.mxu0 }
 0x332   : > { %v4361_v16 = vpop.f32.mrf.mxu0 }
 0x334   : > { %v5687_v17 = vpop.f32.mrf.mxu0 }
 0x335   : > { %v2010_v19 = vsel %vm1281_vm2, %v5687_v17, -inf }
 0x336   : > { %2011 = vmax.xlane.f32.xlu1 %v2010_v19  ;;  %v4372_v20 = vpop.f32.mrf.mxu0 }
 0x338   : > { %v2007_v23 = vpop.f32.mrf.mxu0 }
 0x33a   : > { %v4373_v25 = vpop.f32.mrf.mxu0 }
 0x33c   : > { %v2115_v28 = vpop.f32.mrf.mxu0 }
 0x33d   : > { %v2121_v30 = vsel %vm1281_vm2, %v2115_v28, -inf }
 0x33e   : > { %2122 = vmax.xlane.f32.xlu0 %v2121_v30  ;;  %v4384_v31 = vpop.f32.mrf.mxu0 }
 0x340   : > { %v2118_v33 = vpop.f32.mrf.mxu0 }
 0x342   : > { %v4385_v35 = vpop.f32.mrf.mxu0 }
 0x38f   : > { %v1330_v36 = vpop.xlane.xlu0 %1329 }
 0x390   : > { %v1331_v37 = vsub.f32 %v1322_v45, %v1330_v36 }
 0x392   : > { %v1332_v38 = vmul.f32 1.442695, %v1331_v37 }
 0x394   : > { %4753 = vpow2.f32 %v1332_v38 }
 0x397   : > { %v1440_v39 = vpop.xlane.xlu1 %1439 }
 0x398   : > { %v1441_v40 = vsub.f32 %v1432_v50, %v1440_v39 }
 0x39a   : > { %v1442_v41 = vmul.f32 1.442695, %v1441_v40 }
 0x39c   : > { %4755 = vpow2.f32 %v1442_v41  ;;  %v1806_v41 = vsel %vm1343_vm3, %v1801_v18, 0 }
 0x39f   : > { %v1552_v42 = vpop.xlane.xlu0 %1551 }
 0x3a0   : > { %v1553_v43 = vsub.f32 %v1544_v55, %v1552_v42 }
 0x3a1   : > { %v4754_v44 = vpop.eup %4753 }
 0x3a2   : > { %v1554_v46 = vmul.f32 1.442695, %v1553_v43  ;;  %v1334_v47 = vsel %vm1281_vm2, %v4754_v44, 0.0 }
 0x3a3   : > { %1335 = vadd.xlane.f32.xlu1 %v1334_v47 }
 0x3a4   : > { %4757 = vpow2.f32 %v1554_v46 }
 0x3a7   : > { %v1663_v48 = vpop.xlane.xlu0 %1662 }
 0x3a8   : > { %v1664_v49 = vsub.f32 %v1655_v60, %v1663_v48 }
 0x3a9   : > { %v4756_v51 = vpop.eup %4755 }
 0x3aa   : > { %v1665_v52 = vmul.f32 1.442695, %v1664_v49  ;;  %v1444_v45 = vsel %vm1281_vm2, %v4756_v51, 0.0 }
 0x3ab   : > { %1445 = vadd.xlane.f32.xlu0 %v1444_v45 }
 0x3ac   : > { %4759 = vpow2.f32 %v1665_v52 }
 0x3af   : > { %v1791_v56 = vpop.xlane.xlu1 %1790 }
 0x3b0   : > { %v1792_v57 = vsub.f32 %v5679_v2, %v1791_v56 }
 0x3b1   : > { %v5699_v53 = vpop.eup %4757 }
 0x3b2   : > { %v1556_v50 = vsel %vm1281_vm2, %v5699_v53, 0.0  ;;  %v1793_v61 = vmul.f32 1.442695, %v1792_v57 }
 0x3b3   : > { %1557 = vadd.xlane.f32.xlu1 %v1556_v50 }
 0x3b4   : > { %4761 = vpow2.f32 %v1793_v61 }
 0x3b7   : > { %v1901_v58 = vpop.xlane.xlu0 %1900 }
 0x3b8   : > { %v1902_v60 = vsub.f32 %v5683_v12, %v1901_v58 }
 0x3b9   : > { %v5703_v54 = vpop.eup %4759 }
 0x3ba   : > { %v1667_v55 = vsel %vm1281_vm2, %v5703_v54, 0.0  ;;  %v1903_v1 = vmul.f32 1.442695, %v1902_v60 }
 0x3bb   : > { %1668 = vadd.xlane.f32.xlu0 %v1667_v55 }
 0x3bc   : > { %4763 = vpow2.f32 %v1903_v1 }
 0x3bf   : > { %v2012_v59 = vpop.xlane.xlu1 %2011 }
 0x3c0   : > { %v2013_v62 = vsub.f32 %v5687_v17, %v2012_v59 }
 0x3c1   : > { %v5716_v11 = vpop.eup %4761 }
 0x3c2   : > { %v2014_v8 = vmul.f32 1.442695, %v2013_v62  ;;  %v1795_v2 = vsel %vm1281_vm2, %v5716_v11, 0.0 }
 0x3c4   : > { %1562 = vrot.lane.b32.xlu1 %v5692_v32, %s6127_s8  ;;  %4765 = vpow2.f32 %v2014_v8 }
 0x3c7   : > { %v2123_v63 = vpop.xlane.xlu0 %2122 }
 0x3c8   : > { %1673 = vrot.lane.b32.xlu1 %v5692_v32, %s6125_s4  ;;  %v2124_v9 = vsub.f32 %v2115_v28, %v2123_v63 }
 0x3c9   : > { %v5718_v13 = vpop.eup %4763 }
 0x3ca   : > { %v2125_v10 = vmul.f32 1.442695, %v2124_v9  ;;  %v1905_v14 = vsel %vm1281_vm2, %v5718_v13, 0.0 }
 0x3cc   : > { %4767 = vpow2.f32 %v2125_v10 }
 0x3d1   : > { %1451 = vrot.lane.b32.xlu0 %v5692_v32, %s5222_s9  ;;  %v5722_v12 = vpop.eup %4765 }
 0x3d2   : > { %v2016_v15 = vsel %vm1281_vm2, %v5722_v12, 0.0 }
 0x3d9   : > { %v5728_v16 = vpop.eup %4767 }
 0x3da   : > { %v2127_v17 = vsel %vm1281_vm2, %v5728_v16, 0.0 }
 0x3ec   : > { %1796 = vadd.xlane.f32.xlu1 %v1795_v2 }
 0x3f0   : > { %1906 = vadd.xlane.f32.xlu1 %v1905_v14  ;;  %2017 = vadd.xlane.f32.xlu0 %v2016_v15 }
 0x3f4   : > { %2128 = vadd.xlane.f32.xlu1 %v2127_v17 }
 0x405   : > { %2022 = vrot.lane.b32.xlu1 %v1801_v18, %s6127_s8  ;;  %s6185_s8 = sld [smem:[#allocation34_spill]] }
 0x406   : > { %1911 = vrot.lane.b32.xlu0 %v1801_v18, %s5222_s9 }
 0x40a   : > { %2133 = vrot.lane.b32.xlu0 %v1801_v18, %s6125_s4 }
 0x42c   : > { %v1336_v19 = vpop.xlane.xlu1 %1335 }
 0x42d   : > { %4769 = vrcp.f32 %v1336_v19 }
 0x434   : > { %v1446_v20 = vpop.xlane.xlu0 %1445 }
 0x435   : > { %4771 = vrcp.f32 %v1446_v20 }
 0x43a   : > { %v4770_v21 = vpop.eup %4769 }
 0x43b   : > { %v1338_v22 = vmul.f32 %v4770_v21, %v4754_v44 }
 0x43c   : > { %v1558_v23 = vpop.xlane.xlu1 %1557 }
 0x43d   : > { %v1339_v24 = vpack.c.bf16 %v1338_v22, %v1338_v22  ;;  %4773 = vrcp.f32 %v1558_v23 }
 0x43f   : > { %4305 = vmatmul.mubr.msk.bf16.vlgmr.msra.gmra.mxu1 %vm1281_vm2, %v1339_v24 }
 0x440   : > { %4316 = vmatprep.mubr.msk.bf16.mxu1 %vm5221_vm0, %v5220_v0  ;;  %v1563_v30 = vpop.permute.xlu1 %1562 }
 0x441   : > { %v1568_v33 = vsel %vm1343_vm3, %v1563_v30, 0 }
 0x442   : > { %v4772_v25 = vpop.eup %4771 }
 0x443   : > { %v1448_v27 = vmul.f32 %v4772_v25, %v4756_v51 }
 0x444   : > { %v1669_v26 = vpop.xlane.xlu0 %1668  ;;  %v1674_v35 = vpop.permute.xlu1 %1673 }
 0x445   : > { %4775 = vrcp.f32 %v1669_v26  ;;  %v1449_v31 = vpack.c.bf16 %v1448_v27, %v1448_v27  ;;  %v1679_v38 = vsel %vm1343_vm3, %v1674_v35, 0  ;;  %v4735_v27 = vld [vmem:[%s6181_s23 + $0x8] sm:$0xff]  }
 0x446   : > { %4393 = vmatpush3.bf16.msra.mxu0 %v4735_v27 }
 0x447   : > { %4394 = vmatprep.subr.bf16.mxu0 %v5220_v0 }
 0x448   : > { %v1452_v28 = vpop.permute.xlu0 %1451 }
 0x449   : > { %v1457_v29 = vsel %vm1343_vm3, %v1452_v28, 0 }
 0x44a   : > { %4315 = vmatpush3.bf16.msra.mxu1 %v1457_v29  ;;  %v4774_v32 = vpop.eup %4773 }
 0x44b   : > { %4326 = vmatprep.subr.bf16.mxu1 %v5220_v0  ;;  %v1560_v34 = vmul.f32 %v4774_v32, %v5699_v53 }
 0x44d   : > { %4317 = vmatmul.mubr.msk.bf16.vlgmr.msra.gmra.mxu1 %vm1281_vm2, %v1449_v31  ;;  %v1561_v36 = vpack.c.bf16 %v1560_v34, %v1560_v34  ;;  %v4736_v34 = vld [vmem:[%s6181_s23] sm:$0xff]  }
 0x44e   : > { %4327 = vmatpush3.bf16.msra.mxu1 %v1568_v33  ;;  %4328 = vmatprep.mubr.msk.bf16.mxu1 %vm5221_vm0, %v5220_v0 }
 0x44f   : > { %4338 = vmatprep.subr.bf16.mxu1 %v5220_v0  ;;  %4395 = vmatpush3.bf16.msra.mxu0 %v4736_v34 }
 0x452   : > { %v4776_v37 = vpop.eup %4775 }
 0x453   : > { %v1671_v39 = vmul.f32 %v4776_v37, %v5703_v54 }
 0x455   : > { %4329 = vmatmul.mubr.msk.bf16.vlgmr.msra.gmra.mxu1 %vm1281_vm2, %v1561_v36  ;;  %v1672_v40 = vpack.c.bf16 %v1671_v39, %v1671_v39 }
 0x456   : > { %4339 = vmatpush3.bf16.msra.mxu1 %v1679_v38  ;;  %4340 = vmatprep.mubr.msk.bf16.mxu1 %vm5221_vm0, %v5220_v0 }
 0x457   : > { %4350 = vmatprep.subr.bf16.mxu1 %v5220_v0 }
 0x45d   : > { %4341 = vmatmul.mubr.msk.bf16.vlgmr.msra.gmra.mxu1 %vm1281_vm2, %v1672_v40 }
 0x45e   : > { %4351 = vmatpush3.bf16.msra.mxu1 %v1806_v41  ;;  %4352 = vmatprep.mubr.msk.bf16.mxu1 %vm5221_vm0, %v5220_v0 }
 0x45f   : > { %4362 = vmatprep.subr.bf16.mxu1 %v5220_v0 }
 0x475   : > { %v1797_v42 = vpop.xlane.xlu1 %1796 }
 0x476   : > { %4777 = vrcp.f32 %v1797_v42 }
 0x479   : > { %v1907_v43 = vpop.xlane.xlu1 %1906  ;;  %v2018_v44 = vpop.xlane.xlu0 %2017 }
 0x47a   : > { %4779 = vrcp.f32 %v1907_v43 }
 0x47b   : > { %4781 = vrcp.f32 %v2018_v44 }
 0x47d   : > { %v1912_v48 = vpop.permute.xlu0 %1911  ;;  %v2129_v52 = vpop.xlane.xlu1 %2128 }
 0x47e   : > { %v1917_v45 = vsel %vm1343_vm3, %v1912_v48, 0  ;;  %4783 = vrcp.f32 %v2129_v52 }
 0x481   : > { %v2023_v50 = vpop.permute.xlu1 %2022  ;;  %v2134_v58 = vpop.permute.xlu0 %2133 }
 0x482   : > { %v2028_v56 = vsel %vm1343_vm3, %v2023_v50, 0  ;;  %v2139_v61 = vsel %vm1343_vm3, %v2134_v58, 0 }
 0x483   : > { %v4778_v46 = vpop.eup %4777 }
 0x484   : > { %v1799_v47 = vmul.f32 %v4778_v46, %v5716_v11 }
 0x486   : > { %v1800_v49 = vpack.c.bf16 %v1799_v47, %v1799_v47 }
 0x487   : > { %v4780_v51 = vpop.eup %4779 }
 0x488   : > { %4353 = vmatmul.mubr.msk.bf16.vlgmr.msra.gmra.mxu1 %vm1281_vm2, %v1800_v49  ;;  %v1909_v53 = vmul.f32 %v4780_v51, %v5718_v13  ;;  %v4782_v55 = vpop.eup %4781 }
 0x489   : > { %4363 = vmatpush3.bf16.msra.mxu1 %v1917_v45  ;;  %4364 = vmatprep.mubr.msk.bf16.mxu1 %vm5221_vm0, %v5220_v0  ;;  %v2020_v57 = vmul.f32 %v4782_v55, %v5722_v12 }
 0x48a   : > { %4374 = vmatprep.subr.bf16.mxu1 %v5220_v0  ;;  %v1910_v54 = vpack.c.bf16 %v1909_v53, %v1909_v53 }
 0x48b   : > { %v2021_v59 = vpack.c.bf16 %v2020_v57, %v2020_v57  ;;  %v4784_v60 = vpop.eup %4783 }
 0x48c   : > { %v2131_v62 = vmul.f32 %v4784_v60, %v5728_v16 }
 0x48e   : > { %v2132_v63 = vpack.c.bf16 %v2131_v62, %v2131_v62  ;;  %v4114_v62 = vld [vmem:[#allocation8] ss:$0 sm:$0xff] }
 0x490   : > { %4365 = vmatmul.mubr.msk.bf16.vlgmr.msra.gmra.mxu1 %vm1281_vm2, %v1910_v54 }
 0x491   : > { %4375 = vmatpush3.bf16.msra.mxu1 %v2028_v56  ;;  %4376 = vmatprep.mubr.msk.bf16.mxu1 %vm5221_vm0, %v5220_v0 }
 0x492   : > { %4386 = vmatprep.subr.bf16.mxu1 %v5220_v0 }
 0x498   : > { %4377 = vmatmul.mubr.msk.bf16.vlgmr.msra.gmra.mxu1 %vm1281_vm2, %v2021_v59 }
 0x499   : > { %4387 = vmatpush3.bf16.msra.mxu1 %v2139_v61  ;;  %4388 = vmatprep.mubr.msk.bf16.mxu1 %vm5221_vm0, %v5220_v0 }
 0x49a   : > { %4400 = vmatprep.subr.bf16.mxu1 %v5220_v0 }
 0x4a0   : > { %4389 = vmatmul.mubr.msk.bf16.vlgmr.msra.gmra.mxu1 %vm1281_vm2, %v2132_v63 }
 0x4a1   : > { %4404 = vmatprep.mubr.msk.bf16.mxu1 %vm5221_vm0, %v5220_v0 }
 0x4ff   : > { %v5780_v1 = vpop.f32.mrf.mxu1 }
 0x500   : > { %v1387_v50 = vpack.c.bf16 %v5780_v1, %v5780_v1 }
 0x501   : > { %v4306_v8 = vpop.f32.mrf.mxu1 }
 0x503   : > { %v1384_v9 = vpop.f32.mrf.mxu1 }
 0x505   : > { %v4307_v10 = vpop.f32.mrf.mxu1 }
 0x50d   : > { %v1493_v11 = vpop.f32.mrf.mxu1 }
 0x50e   : > { %v1499_v13 = vpack.c.bf16 %v1493_v11, %v1493_v11 }
 0x50f   : > { %v4318_v2 = vpop.f32.mrf.mxu1 }
 0x510   : > { %1723 = vrot.lane.b32.xlu0 %v1499_v13, %s6123_s22 }
 0x511   : > { %v1496_v12 = vpop.f32.mrf.mxu1 }
 0x513   : > { %v4319_v14 = vpop.f32.mrf.mxu1 }
 0x515   : > { %v1604_v15 = vpop.f32.mrf.mxu1 }
 0x516   : > { %v1610_v32 = vpack.c.bf16 %v1604_v15, %v1604_v15 }
 0x517   : > { %v4330_v16 = vpop.f32.mrf.mxu1 }
 0x519   : > { %v1607_v17 = vpop.f32.mrf.mxu1 }
 0x51b   : > { %v4331_v18 = vpop.f32.mrf.mxu1 }
 0x51d   : > { %v1715_v19 = vpop.f32.mrf.mxu1 }
 0x51e   : > { %v1721_v44 = vpack.c.bf16 %v1715_v19, %v1715_v19 }
 0x51f   : > { %v4342_v20 = vpop.f32.mrf.mxu1 }
 0x521   : > { %v1718_v21 = vpop.f32.mrf.mxu1 }
 0x523   : > { %v4343_v22 = vpop.f32.mrf.mxu1 }
 0x548   : > { %v1842_v23 = vpop.f32.mrf.mxu1 }
 0x549   : > { %v1848_v51 = vpack.c.bf16 %v1842_v23, %v1842_v23  ;;  %v4737_v23 = vld [vmem:[%s6182_s26 + $0x8] sm:$0xff]  }
 0x54a   : > { %v4354_v24 = vpop.f32.mrf.mxu1  ;;  %4408 = vmatprep.subr.bf16.mxu0 %v4737_v23 }
 0x54b   : > { %v4738_v24 = vld [vmem:[%s6182_s26] sm:$0xff]  }
 0x54c   : > { %v1845_v25 = vpop.f32.mrf.mxu1 }
 0x54e   : > { %v4355_v26 = vpop.f32.mrf.mxu1 }
 0x550   : > { %v1953_v28 = vpop.f32.mrf.mxu1 }
 0x551   : > { %v1959_v29 = vpack.c.bf16 %v1953_v28, %v1953_v28 }
 0x552   : > { %v4366_v30 = vpop.f32.mrf.mxu1 }
 0x553   : > { %2183 = vrot.lane.b32.xlu0 %v1959_v29, %s6123_s22 }
 0x554   : > { %v1956_v31 = vpop.f32.mrf.mxu1 }
 0x556   : > { %v4367_v33 = vpop.f32.mrf.mxu1 }
 0x557   : > { %1726 = vrot.lane.b32.xlu0 %v1610_v32, %s6121_s2 }
 0x558   : > { %v2064_v35 = vpop.f32.mrf.mxu1 }
 0x559   : > { %v2070_v36 = vpack.c.bf16 %v2064_v35, %v2064_v35 }
 0x55a   : > { %v4378_v37 = vpop.f32.mrf.mxu1 }
 0x55b   : > { %2186 = vrot.lane.b32.xlu1 %v2070_v36, %s6121_s2 }
 0x55c   : > { %v2067_v38 = vpop.f32.mrf.mxu1 }
 0x55e   : > { %v4379_v39 = vpop.f32.mrf.mxu1 }
 0x55f   : > { %v4739_v39 = vld [vmem:[%s6185_s8 + $0x8] sm:$0xff]  }
 0x560   : > { %v2175_v40 = vpop.f32.mrf.mxu1  ;;  %4401 = vmatpush3.bf16.msra.mxu1 %v4739_v39 }
 0x561   : > { %v2181_v41 = vpack.c.bf16 %v2175_v40, %v2175_v40  ;;  %v4740_v40 = vld [vmem:[%s6185_s8] sm:$0xff]   ;;  %4402 = vmatprep.subr.bf16.mxu1 %v5220_v0 }
 0x562   : > { %v4390_v42 = vpop.f32.mrf.mxu1 }
 0x563   : > { %2189 = vrot.lane.b32.xlu1 %v2181_v41, %s6119_s19 }
 0x564   : > { %v2178_v43 = vpop.f32.mrf.mxu1  ;;  %4403 = vmatpush3.bf16.msra.mxu1 %v4740_v40 }
 0x566   : > { %v4391_v46 = vpop.f32.mrf.mxu1 }
 0x567   : > { %1729 = vrot.lane.b32.xlu1 %v1721_v44, %s6119_s19  ;;  %s4084_s19 = sshll.u32 %s5410_s18, 2 }
 0x568   : > { %p1109_p8 = scmp.lt.s32.totalorder %s4084_s19, 7 }
 0x56a   : > { %s6211_s19 = smov (!%p1109_p8, %s4084_s19), 7 }
 0x56b   : > { %s4085_s2 = sshll.u32 %s6211_s19, 2  ;;  %s6189_s19 = smov 104  }
 0x56c   : > { %s1112_s22 = scalar_lea.vmem %s6183_s20, %s4085_s2  ;;  %s1118_s4 = scalar_lea.vmem %s6184_s28, %s4085_s2 }
 0x56d   : > { %v5812_v25 = vld [vmem:[%s1112_s22] sm:$0xf]  ;;  %v5814_v26 = vld [vmem:[%s1112_s22 + $0x4] sm:$0xf]  ;;  %v5816_v29 = vld [vmem:[%s1112_s22 + $0x8] sm:$0xf] }
 0x56e   : > { %v2319_v27 = vld [vmem:[%s1118_s4] sm:$0xf]  ;;  %v2320_v28 = vld [vmem:[%s1118_s4 + $0x4] sm:$0xf]  ;;  %v5820_v32 = vld [vmem:[%s1112_s22 + $0xc] sm:$0xf] }
 0x56f   : > { %v2323_v30 = vadd.bf16 %v2319_v27, %v5812_v25  ;;  %v2324_v31 = vadd.bf16 %v2320_v28, %v5814_v26  ;;  %v2321_v33 = vld [vmem:[%s1118_s4 + $0x8] sm:$0xf]  ;;  %v2322_v34 = vld [vmem:[%s1118_s4 + $0xc] sm:$0xf]  ;;  %s6186_s2 = sld [smem:[#allocation43_spill]]  ;;  %s6188_s22 = smov 112  }
 0x570   : > { %v2325_v35 = vadd.bf16 %v2321_v33, %v5816_v29  ;;  %v2326_v36 = vadd.bf16 %v2322_v34, %v5820_v32  ;;  %s6187_s4 = sld [smem:[#allocation44_spill]]  ;;  %s6192_s20 = smov 24  }
 0x571   : > { %v4125_v37 = vcombine.low %v2323_v30, %v2324_v31  ;;  %s6193_s28 = sld [smem:[#allocation39_spill]] }
 0x572   : > { %v4126_v38 = vcombine.low %v2325_v35, %v2326_v36 }
 0x582   : > { %v1724_v47 = vpop.permute.xlu0 %1723 }
 0x583   : > { %v1733_v56 = vsel %vm1281_vm2, %v1387_v50, %v1724_v47 }
 0x5c5   : > { %v2184_v48 = vpop.permute.xlu0 %2183 }
 0x5c6   : > { %v2193_v52 = vsel %vm1281_vm2, %v1848_v51, %v2184_v48 }
 0x5c9   : > { %v1727_v54 = vpop.permute.xlu0 %1726 }
 0x5ca   : > { %v1736_v57 = vsel %vm1734_vm5, %v1733_v56, %v1727_v54 }
 0x5cd   : > { %v2187_v49 = vpop.permute.xlu1 %2186 }
 0x5ce   : > { %v2195_v45 = vsel %vm1734_vm5, %v2193_v52, %v2187_v49  ;;  %v4118_v49 = vld [vmem:[%s6186_s2] ss:$0 sm:$0xff]  ;;  %s6194_s2 = sld [smem:[#allocation41_spill]] }
 0x5d5   : > { %v2190_v53 = vpop.permute.xlu1 %2189 }
 0x5d6   : > { %v2197_v55 = vsel %vm1737_vm4, %v2195_v45, %v2190_v53  ;;  %v4119_v53 = vld [vmem:[%s6187_s4] ss:$0 sm:$0xff]  ;;  %s6195_s4 = sld [smem:[#allocation45_spill]] }
 0x5d7   : > { %v2199_v58 = vrot.slane %v2197_v55, 4 }
 0x5d9   : > { %v1730_v59 = vpop.permute.xlu1 %1729 }
 0x5da   : > { %v1739_v60 = vsel %vm1737_vm4, %v1736_v57, %v1730_v59 }
 0x5db   : > { %v2201_v61 = vsel %vm1343_vm3, %v1739_v60, %v2199_v58 }
 0x5dc   : > { %4397 = vmatmul.mubr.msk.bf16.vlgmr.msra.gmra.mxu0 %vm1163_vm1, %v2201_v61  ;;  %v4124_v61 = vld [vmem:[#allocation11] ss:$0 sm:$0xff] }
 0x5dd   : > { %4409 = vmatpush3.bf16.msra.mxu0 %v4737_v23  ;;  %4412 = vmatprep.mubr.msk.bf16.mxu0 %vm1163_vm1, %v4125_v37  ;;  %v4133_v23 = vcombine.low %v5816_v29, %v5820_v32 }
 0x5de   : > { %4410 = vmatprep.subr.bf16.mxu0 %v4738_v24 }
 0x5e1   : > { %4411 = vmatpush3.bf16.msra.mxu0 %v4738_v24 }
 0x5e2   : > { %4424 = vmatprep.subr.bf16.mxu0 %v5220_v0 }
 0x5e4   : > { %4413 = vmatmul.mubr.msk.bf16.vlgmr.msra.gmra.mxu0 %vm1163_vm1, %v4126_v38 }
 0x5e5   : > { %4426 = vmatprep.mubr.msk.bf16.mxu0 %vm5221_vm0, %v5220_v0 }
 0x69c   : > { %v2261_v63 = vpop.f32.mrf.mxu0 }
 0x69d   : > { %v2262_v8 = vadd.f32 %v4114_v62, %v2261_v63 }
 0x69e   : > { %v4398_v9 = vpop.f32.mrf.mxu0 }
 0x69f   : > { %v2268_v1 = vadd.f32 %v2262_v8, %v5601_v3 }
 0x6a0   : > { %v2264_v10 = vpop.f32.mrf.mxu0 }
 0x6a1   : > { %v2265_v11 = vadd.f32 %v4114_v62, %v2264_v10  ;;  %v2272_v13 = vsel %vm1163_vm1, %v2268_v1, 0.0 }
 0x6a2   : > { %2273 = vadd.xlane.f32.xlu0 %v2272_v13  ;;  %v4399_v2 = vpop.f32.mrf.mxu0 }
 0x6a3   : > { %v2269_v12 = vadd.f32 %v2265_v11, %v5603_v4 }
 0x6a4   : > { %v4414_v60 = vpop.f32.mrf.mxu0 }
 0x6a5   : > { %v2275_v14 = vsel %vm1163_vm1, %v2269_v12, 0.0  ;;  %v2480_v62 = vadd.f32 %v4414_v60, %v4124_v61 }
 0x6a6   : > { %2276 = vadd.xlane.f32.xlu1 %v2275_v14  ;;  %v2471_v63 = vpop.f32.mrf.mxu0 }
 0x6a7   : > { %v2472_v9 = vadd.f32 %v4124_v61, %v2471_v63 }
 0x6a8   : > { %v4415_v8 = vpop.f32.mrf.mxu0 }
 0x6aa   : > { %v2474_v10 = vpop.f32.mrf.mxu0 }
 0x6ab   : > { %v2475_v13 = vadd.f32 %v4124_v61, %v2474_v10 }
 0x6ad   : > { %v2486_v2 = vpack.c.bf16 %v2475_v13, %v2472_v9 }
 0x6b7   : > { %2690 = vrot.lane.b32.xlu1 %v2486_v2, %s5222_s9 }
 0x6bb   : > { %2800 = vrot.lane.b32.xlu1 %v2486_v2, %s6188_s22 }
 0x72b   : > { %v2274_v15 = vpop.xlane.xlu0 %2273 }
 0x72c   : > { %v2279_v16 = vmul.f32 0.03125, %v2274_v15 }
 0x72e   : > { %v2281_v17 = vsub.f32 %v2268_v1, %v2279_v16  ;;  %v2483_v1 = vadd.f32 %v4415_v8, %v4124_v61 }
 0x72f   : > { %v2277_v18 = vpop.xlane.xlu1 %2276 }
 0x730   : > { %v2280_v19 = vmul.f32 0.03125, %v2277_v18  ;;  %v2283_v3 = vmul.f32 %v2281_v17, %v2281_v17  ;;  %v2487_v11 = vpack.c.bf16 %v2483_v1, %v2480_v62 }
 0x732   : > { %v2282_v20 = vsub.f32 %v2269_v12, %v2280_v19  ;;  %v2285_v21 = vsel %vm1163_vm1, %v2283_v3, 0.0  ;;  %v3043_v31 = vsel %vm1281_vm2, %v2487_v11, 0 }
 0x733   : > { %2286 = vadd.xlane.f32.xlu0 %v2285_v21  ;;  %v2691_v19 = vpop.permute.xlu1 %2690  ;;  %v4741_v21 = vld [vmem:[#allocation13 + $0x8] sm:$0xff]  }
 0x734   : > { %v2284_v22 = vmul.f32 %v2282_v20, %v2282_v20  ;;  %v2696_v3 = vsel %vm1281_vm2, %v2691_v19, 0  ;;  %4416 = vmatprep.subr.bf16.mxu1 %v4741_v21 }
 0x736   : > { %v2288_v4 = vsel %vm1163_vm1, %v2284_v22, 0.0  ;;  %v4742_v22 = vld [vmem:[#allocation13] sm:$0xff]  }
 0x737   : > { %2289 = vadd.xlane.f32.xlu0 %v2288_v4  ;;  %v4132_v4 = vcombine.low %v5812_v25, %v5814_v26  ;;  %v2801_v24 = vpop.permute.xlu1 %2800 }
 0x738   : > { %v2806_v25 = vsel %vm1281_vm2, %v2801_v24, 0 }
 0x7bc   : > { %v2287_v41 = vpop.xlane.xlu0 %2286 }
 0x7bd   : > { %v2291_v42 = vmul.f32 0.03125, %v2287_v41  ;;  %v4138_v41 = vld [vmem:[%s5564_s1] ss:$0 sm:$0xff] }
 0x7bf   : > { %v2293_v43 = vadd.f32 1e-05, %v2291_v42 }
 0x7c0   : > { %v2290_v44 = vpop.xlane.xlu0 %2289 }
 0x7c1   : > { %4785 = vrsqrt.f32 %v2293_v43  ;;  %v2292_v46 = vmul.f32 0.03125, %v2290_v44 }
 0x7c3   : > { %v2294_v47 = vadd.f32 1e-05, %v2292_v46 }
 0x7c5   : > { %4787 = vrsqrt.f32 %v2294_v47 }
 0x7ce   : > { %v4786_v48 = vpop.eup %4785 }
 0x7cf   : > { %v2297_v51 = vmul.f32 %v4786_v48, %v2281_v17 }
 0x7d1   : > { %v2305_v52 = vmul.f32 %v4118_v49, %v2297_v51 }
 0x7d2   : > { %v4788_v45 = vpop.eup %4787 }
 0x7d3   : > { %v2298_v50 = vmul.f32 %v4788_v45, %v2282_v20  ;;  %v5834_v55 = vadd.f32 %v4119_v53, %v2305_v52 }
 0x7d5   : > { %v2306_v54 = vmul.f32 %v4118_v49, %v2298_v50  ;;  %v2327_v57 = vadd.f32 %v4183_v6, %v5834_v55  ;;  %v2588_v6 = vsel %vm1281_vm2, %v2486_v2, 0 }
 0x7d6   : > { %4425 = vmatpush3.bf16.xpose.msra.mxu0 %v2588_v6 }
 0x7d7   : > { %v5836_v56 = vadd.f32 %v4119_v53, %v2306_v54  ;;  %4436 = vmatprep.subr.bf16.mxu0 %v5220_v0 }
 0x7d9   : > { %v2328_v58 = vadd.f32 %v4184_v7, %v5836_v56  ;;  %v4120_v7 = vld [vmem:[#allocation10] ss:$0 sm:$0xff] }
 0x7db   : > { %v2329_v59 = vpack.c.bf16 %v2328_v58, %v2327_v57 }
 0x7dd   : > { %4405 = vmatmul.mubr.msk.bf16.vlgmr.msra.gmra.mxu1 %vm1163_vm1, %v2329_v59 }
 0x7de   : > { %4420 = vmatprep.mubr.msk.bf16.mxu1 %vm1163_vm1, %v4132_v4  ;;  %4417 = vmatpush3.bf16.msra.mxu1 %v4741_v21 }
 0x7df   : > { %4418 = vmatprep.subr.bf16.mxu1 %v4742_v22 }
 0x7e2   : > { %4419 = vmatpush3.bf16.msra.mxu1 %v4742_v22 }
 0x7e3   : > { %4430 = vmatprep.subr.bf16.mxu1 %v5220_v0 }
 0x7e5   : > { %4421 = vmatmul.mubr.msk.bf16.vlgmr.msra.gmra.mxu1 %vm1163_vm1, %v4133_v23 }
 0x7e6   : > { %4432 = vmatprep.mubr.msk.bf16.mxu1 %vm5221_vm0, %v5220_v0 }
 0x89d   : > { %v2390_v5 = vpop.f32.mrf.mxu1 }
 0x89e   : > { %v2391_v15 = vadd.f32 %v4120_v7, %v2390_v5 }
 0x89f   : > { %v4406_v12 = vpop.f32.mrf.mxu1 }
 0x8a1   : > { %v2393_v14 = vpop.f32.mrf.mxu1 }
 0x8a2   : > { %v2394_v16 = vadd.f32 %v4120_v7, %v2393_v14 }
 0x8a3   : > { %v4407_v17 = vpop.f32.mrf.mxu1 }
 0x8a4   : > { %v2397_v18 = vpack.c.bf16 %v2394_v16, %v2391_v15 }
 0x8a5   : > { %v4422_v24 = vpop.f32.mrf.mxu1 }
 0x8a6   : > { %2798 = vrot.lane.b32.xlu1 %v2397_v18, %s6188_s22  ;;  %2687 = vrot.lane.b32.xlu0 %v2397_v18, %s5222_s9  ;;  %v3038_v20 = vrot.slane %v2397_v18, 4 }
 0x8a7   : > { %4427 = vmatmul.mubr.msk.bf16.vlgmr.msra.gmra.mxu0 %vm1281_vm2, %v2397_v18 }
 0x8a8   : > { %4437 = vmatpush3.bf16.xpose.msra.mxu0 %v2696_v3  ;;  %4438 = vmatprep.mubr.msk.bf16.mxu0 %vm5221_vm0, %v5220_v0 }
 0x8a9   : > { %4448 = vmatprep.subr.bf16.mxu0 %v5220_v0 }
 0x8aa   : > { %2907 = vrot.lane.b32.xlu1 %v2397_v18, %s6189_s19  ;;  %2909 = vrot.lane.b32.xlu0 %v2486_v2, %s6189_s19 }
 0x8ae   : > { %3144 = vrot.lane.b32.xlu0 %v2487_v11, %s5222_s9  ;;  %3141 = vrot.lane.b32.xlu1 %v3038_v20, %s5222_s9 }
 0x8b2   : > { %3254 = vrot.lane.b32.xlu0 %v2487_v11, %s6188_s22  ;;  %3252 = vrot.lane.b32.xlu1 %v3038_v20, %s6188_s22 }
 0x8b6   : > { %3363 = vrot.lane.b32.xlu0 %v2487_v11, %s6189_s19  ;;  %3361 = vrot.lane.b32.xlu1 %v3038_v20, %s6189_s19  ;;  %v4147_v11 = vld [vmem:[%s5564_s1 + $0x1] ss:$0 sm:$0xff]  ;;  %s6190_s1 = smov 8  }
 0x918   : > { %v2688_v27 = vpop.permute.xlu0 %2687  ;;  %v2799_v28 = vpop.permute.xlu1 %2798 }
 0x919   : > { %4439 = vmatmul.mubr.msk.bf16.vlgmr.msra.gmra.mxu0 %vm1281_vm2, %v2688_v27  ;;  %v4131_v27 = vld [vmem:[#allocation14] ss:$0 sm:$0xff] }
 0x91a   : > { %4449 = vmatpush3.bf16.xpose.msra.mxu0 %v2806_v25  ;;  %4450 = vmatprep.mubr.msk.bf16.mxu0 %vm5221_vm0, %v5220_v0 }
 0x91b   : > { %4460 = vmatprep.subr.bf16.mxu0 %v5220_v0 }
 0x91c   : > { %v2910_v26 = vpop.permute.xlu0 %2909  ;;  %v2908_v30 = vpop.permute.xlu1 %2907 }
 0x91d   : > { %v2915_v29 = vsel %vm1281_vm2, %v2910_v26, 0  ;;  %v2570_v26 = vadd.f32 %v4422_v24, %v4131_v27 }
 0x920   : > { %v3145_v32 = vpop.permute.xlu0 %3144  ;;  %v3142_v35 = vpop.permute.xlu1 %3141 }
 0x921   : > { %4451 = vmatmul.mubr.msk.bf16.vlgmr.msra.gmra.mxu0 %vm1281_vm2, %v2799_v28  ;;  %v3150_v33 = vsel %vm1281_vm2, %v3145_v32, 0 }
 0x922   : > { %4461 = vmatpush3.bf16.xpose.msra.mxu0 %v2915_v29  ;;  %4462 = vmatprep.mubr.msk.bf16.mxu0 %vm5221_vm0, %v5220_v0  ;;  %v2561_v29 = vpop.f32.mrf.mxu1 }
 0x923   : > { %4472 = vmatprep.subr.bf16.mxu0 %v5220_v0 }
 0x924   : > { %v3255_v34 = vpop.permute.xlu0 %3254  ;;  %v3253_v38 = vpop.permute.xlu1 %3252 }
 0x925   : > { %v3260_v36 = vsel %vm1281_vm2, %v3255_v34, 0  ;;  %v4423_v32 = vpop.f32.mrf.mxu1  ;;  %v2562_v34 = vadd.f32 %v4131_v27, %v2561_v29 }
 0x928   : > { %v3364_v37 = vpop.permute.xlu0 %3363  ;;  %v3362_v40 = vpop.permute.xlu1 %3361 }
 0x929   : > { %4463 = vmatmul.mubr.msk.bf16.vlgmr.msra.gmra.mxu0 %vm1281_vm2, %v2908_v30  ;;  %v3369_v39 = vsel %vm1281_vm2, %v3364_v37, 0 }
 0x92a   : > { %4473 = vmatpush3.bf16.xpose.msra.mxu0 %v3043_v31  ;;  %4474 = vmatprep.mubr.msk.bf16.mxu0 %vm5221_vm0, %v5220_v0 }
 0x92b   : > { %4484 = vmatprep.subr.bf16.mxu0 %v5220_v0 }
 0x931   : > { %4475 = vmatmul.mubr.msk.bf16.vlgmr.msra.gmra.mxu0 %vm1281_vm2, %v3038_v20 }
 0x932   : > { %4485 = vmatpush3.bf16.xpose.msra.mxu0 %v3150_v33  ;;  %4486 = vmatprep.mubr.msk.bf16.mxu0 %vm5221_vm0, %v5220_v0 }
 0x933   : > { %4496 = vmatprep.subr.bf16.mxu0 %v5220_v0 }
 0x939   : > { %4487 = vmatmul.mubr.msk.bf16.vlgmr.msra.gmra.mxu0 %vm1281_vm2, %v3142_v35 }
 0x93a   : > { %4497 = vmatpush3.bf16.xpose.msra.mxu0 %v3260_v36  ;;  %4498 = vmatprep.mubr.msk.bf16.mxu0 %vm5221_vm0, %v5220_v0  ;;  %v2564_v36 = vpop.f32.mrf.mxu1 }
 0x93b   : > { %4508 = vmatprep.subr.bf16.mxu0 %v5220_v0 }
 0x941   : > { %4499 = vmatmul.mubr.msk.bf16.vlgmr.msra.gmra.mxu0 %vm1281_vm2, %v3253_v38  ;;  %v2573_v38 = vadd.f32 %v4423_v32, %v4131_v27 }
 0x942   : > { %4509 = vmatpush3.bf16.xpose.msra.mxu0 %v3369_v39  ;;  %4510 = vmatprep.mubr.msk.bf16.mxu0 %vm5221_vm0, %v5220_v0  ;;  %v2565_v39 = vadd.f32 %v4131_v27, %v2564_v36 }
 0x943   : > { %4520 = vmatprep.subr.bf16.mxu0 %v5220_v0 }
 0x949   : > { %4511 = vmatmul.mubr.msk.bf16.vlgmr.msra.gmra.mxu0 %vm1281_vm2, %v3362_v40 }
 0x94a   : > { %4524 = vmatprep.mubr.msk.bf16.mxu0 %vm5221_vm0, %v5220_v0 }
 0x967   : > { %v2624_v42 = vpop.f32.mrf.mxu0 }
 0x968   : > { %v2625_v43 = vadd.f32 %v4138_v41, %v2624_v42  ;;  %v5935_v42 = vpack.c.bf16 %v2573_v38, %v2570_v26 }
 0x969   : > { %v4428_v44 = vpop.f32.mrf.mxu0 }
 0x96a   : > { %v2630_v46 = vsel %vm1734_vm5, %v2625_v43, -inf }
 0x96b   : > { %2631 = vmax.xlane.f32.xlu0 %v2630_v46  ;;  %v2627_v47 = vpop.f32.mrf.mxu0 }
 0x96d   : > { %v4429_v48 = vpop.f32.mrf.mxu0 }
 0x9d9   : > { %v2732_v49 = vpop.f32.mrf.mxu0 }
 0x9da   : > { %v5908_v51 = vadd.f32 %v4138_v41, %v2732_v49 }
 0x9db   : > { %v4440_v52 = vpop.f32.mrf.mxu0 }
 0x9dc   : > { %v2738_v45 = vsel %vm1734_vm5, %v5908_v51, -inf }
 0x9dd   : > { %2739 = vmax.xlane.f32.xlu1 %v2738_v45  ;;  %v2735_v53 = vpop.f32.mrf.mxu0 }
 0x9df   : > { %v4441_v50 = vpop.f32.mrf.mxu0 }
 0x9e1   : > { %v2842_v54 = vpop.f32.mrf.mxu0 }
 0x9e2   : > { %v5912_v57 = vadd.f32 %v4138_v41, %v2842_v54 }
 0x9e3   : > { %v4452_v58 = vpop.f32.mrf.mxu0 }
 0x9e4   : > { %v2848_v59 = vsel %vm1734_vm5, %v5912_v57, -inf }
 0x9e5   : > { %2849 = vmax.xlane.f32.xlu0 %v2848_v59  ;;  %v2845_v60 = vpop.f32.mrf.mxu0 }
 0x9e7   : > { %v4453_v61 = vpop.f32.mrf.mxu0 }
 0x9e9   : > { %v2951_v62 = vpop.f32.mrf.mxu0 }
 0x9ea   : > { %v5916_v63 = vadd.f32 %v4138_v41, %v2951_v62 }
 0x9eb   : > { %v4464_v8 = vpop.f32.mrf.mxu0 }
 0x9ec   : > { %v2957_v9 = vsel %vm1734_vm5, %v5916_v63, -inf }
 0x9ed   : > { %2958 = vmax.xlane.f32.xlu0 %v2957_v9  ;;  %v2954_v1 = vpop.f32.mrf.mxu0 }
 0x9ef   : > { %v4465_v10 = vpop.f32.mrf.mxu0 }
 0x9f1   : > { %v3079_v13 = vpop.f32.mrf.mxu0 }
 0x9f2   : > { %v5921_v2 = vadd.f32 %v4147_v11, %v3079_v13 }
 0x9f3   : > { %v4476_v6 = vpop.f32.mrf.mxu0 }
 0x9f4   : > { %v2632_v5 = vpop.xlane.xlu0 %2631  ;;  %v3085_v7 = vsel %vm1734_vm5, %v5921_v2, -inf }
 0x9f5   : > { %v2633_v12 = vsub.f32 %v2625_v43, %v2632_v5  ;;  %3086 = vmax.xlane.f32.xlu1 %v3085_v7  ;;  %v3082_v14 = vpop.f32.mrf.mxu0  ;;  %v2576_v43 = vpack.c.bf16 %v2565_v39, %v2562_v34 }
 0x9f7   : > { %v2634_v15 = vmul.f32 1.442695, %v2633_v12  ;;  %v4477_v16 = vpop.f32.mrf.mxu0  ;;  %4431 = vmatpush3.bf16.msra.mxu1 %v2576_v43 }
 0x9f8   : > { %4442 = vmatprep.subr.bf16.mxu1 %v5220_v0 }
 0x9f9   : > { %4789 = vpow2.f32 %v2634_v15  ;;  %v3186_v17 = vpop.f32.mrf.mxu0 }
 0x9fa   : > { %v5925_v18 = vadd.f32 %v4147_v11, %v3186_v17 }
 0x9fb   : > { %v4488_v19 = vpop.f32.mrf.mxu0 }
 0x9fc   : > { %v3192_v3 = vsel %vm1734_vm5, %v5925_v18, -inf }
 0x9fd   : > { %3193 = vmax.xlane.f32.xlu0 %v3192_v3  ;;  %v3189_v20 = vpop.f32.mrf.mxu0 }
 0x9ff   : > { %v4489_v21 = vpop.f32.mrf.mxu0 }
 0xa01   : > { %v3296_v22 = vpop.f32.mrf.mxu0 }
 0xa02   : > { %v5929_v4 = vadd.f32 %v4147_v11, %v3296_v22 }
 0xa03   : > { %v4500_v23 = vpop.f32.mrf.mxu0 }
 0xa04   : > { %v3302_v25 = vsel %vm1734_vm5, %v5929_v4, -inf }
 0xa05   : > { %3303 = vmax.xlane.f32.xlu1 %v3302_v25  ;;  %v3299_v28 = vpop.f32.mrf.mxu0 }
 0xa06   : > { %v4790_v30 = vpop.eup %4789 }
 0xa07   : > { %v4501_v31 = vpop.f32.mrf.mxu0  ;;  %v2636_v33 = vsel %vm1734_vm5, %v4790_v30, 0.0 }
 0xa09   : > { %2637 = vadd.xlane.f32.xlu1 %v2636_v33  ;;  %v3405_v35 = vpop.f32.mrf.mxu0 }
 0xa0a   : > { %v3406_v37 = vadd.f32 %v4147_v11, %v3405_v35 }
 0xa0b   : > { %v4512_v40 = vpop.f32.mrf.mxu0 }
 0xa0c   : > { %v3411_v41 = vsel %vm1734_vm5, %v3406_v37, -inf }
 0xa0d   : > { %3412 = vmax.xlane.f32.xlu0 %v3411_v41  ;;  %v3408_v44 = vpop.f32.mrf.mxu0 }
 0xa0f   : > { %v4513_v46 = vpop.f32.mrf.mxu0 }
 0xa66   : > { %v2740_v47 = vpop.xlane.xlu1 %2739 }
 0xa67   : > { %v2741_v48 = vsub.f32 %v5908_v51, %v2740_v47 }
 0xa69   : > { %v2742_v49 = vmul.f32 1.442695, %v2741_v48 }
 0xa6b   : > { %4791 = vpow2.f32 %v2742_v49 }
 0xa6e   : > { %v2850_v52 = vpop.xlane.xlu0 %2849 }
 0xa6f   : > { %v2851_v45 = vsub.f32 %v5912_v57, %v2850_v52 }
 0xa71   : > { %v2852_v53 = vmul.f32 1.442695, %v2851_v45 }
 0xa73   : > { %4793 = vpow2.f32 %v2852_v53 }
 0xa76   : > { %v2959_v50 = vpop.xlane.xlu0 %2958 }
 0xa77   : > { %v2960_v54 = vsub.f32 %v5916_v63, %v2959_v50 }
 0xa78   : > { %v4792_v58 = vpop.eup %4791 }
 0xa79   : > { %v2961_v59 = vmul.f32 1.442695, %v2960_v54  ;;  %v2744_v60 = vsel %vm1734_vm5, %v4792_v58, 0.0 }
 0xa7a   : > { %2745 = vadd.xlane.f32.xlu0 %v2744_v60 }
 0xa7b   : > { %4795 = vpow2.f32 %v2961_v59 }
 0xa7e   : > { %v3087_v8 = vpop.xlane.xlu1 %3086 }
 0xa7f   : > { %v3088_v10 = vsub.f32 %v5921_v2, %v3087_v8 }
 0xa80   : > { %v5942_v61 = vpop.eup %4793 }
 0xa81   : > { %v2854_v51 = vsel %vm1734_vm5, %v5942_v61, 0.0  ;;  %v3089_v7 = vmul.f32 1.442695, %v3088_v10 }
 0xa82   : > { %2855 = vadd.xlane.f32.xlu1 %v2854_v51 }
 0xa86   : > { %v3194_v11 = vpop.xlane.xlu0 %3193 }
 0xa87   : > { %v3195_v5 = vsub.f32 %v5925_v18, %v3194_v11 }
 0xa88   : > { %v5946_v62 = vpop.eup %4795 }
 0xa89   : > { %v2963_v57 = vsel %vm1734_vm5, %v5946_v62, 0.0  ;;  %v3196_v15 = vmul.f32 1.442695, %v3195_v5 }
 0xa8a   : > { %2964 = vadd.xlane.f32.xlu0 %v2963_v57 }
 0xa8e   : > { %v3304_v63 = vpop.xlane.xlu1 %3303 }
 0xa8f   : > { %v3305_v12 = vsub.f32 %v5929_v4, %v3304_v63 }
 0xa91   : > { %v3306_v16 = vmul.f32 1.442695, %v3305_v12 }
 0xa92   : > { %v2638_v9 = vpop.xlane.xlu1 %2637 }
 0xa93   : > { %2860 = vrot.lane.b32.xlu1 %v2576_v43, %s6188_s22  ;;  %4797 = vrcp.f32 %v2638_v9 }
 0xa94   : > { %4799 = vpow2.f32 %v3089_v7 }
 0xa95   : > { %4801 = vpow2.f32 %v3196_v15 }
 0xa96   : > { %v3413_v14 = vpop.xlane.xlu0 %3412  ;;  %4803 = vpow2.f32 %v3306_v16 }
 0xa97   : > { %2969 = vrot.lane.b32.xlu1 %v2576_v43, %s6189_s19  ;;  %v3414_v17 = vsub.f32 %v3406_v37, %v3413_v14 }
 0xa99   : > { %v3415_v2 = vmul.f32 1.442695, %v3414_v17 }
 0xa9b   : > { %4805 = vpow2.f32 %v3415_v2 }
 0xaa0   : > { %2751 = vrot.lane.b32.xlu0 %v2576_v43, %s5222_s9  ;;  %v4798_v1 = vpop.eup %4797 }
 0xaa1   : > { %v2640_v13 = vmul.f32 %v4798_v1, %v4790_v30  ;;  %v4800_v19 = vpop.eup %4799 }
 0xaa2   : > { %v5959_v3 = vpop.eup %4801  ;;  %v3091_v18 = vsel %vm1734_vm5, %v4800_v19, 0.0 }
 0xaa3   : > { %v2641_v6 = vpack.c.bf16 %v2640_v13, %v2640_v13  ;;  %v5962_v20 = vpop.eup %4803  ;;  %v3198_v21 = vsel %vm1734_vm5, %v5959_v3, 0.0 }
 0xaa4   : > { %v3308_v22 = vsel %vm1734_vm5, %v5962_v20, 0.0 }
 0xaa5   : > { %4433 = vmatmul.mubr.msk.bf16.vlgmr.msra.gmra.mxu1 %vm1734_vm5, %v2641_v6 }
 0xaa6   : > { %4444 = vmatprep.mubr.msk.bf16.mxu1 %vm5221_vm0, %v5220_v0 }
 0xaa8   : > { %v5968_v4 = vpop.eup %4805 }
 0xaa9   : > { %v3417_v23 = vsel %vm1734_vm5, %v5968_v4, 0.0 }
 0xabb   : > { %3092 = vadd.xlane.f32.xlu1 %v3091_v18  ;;  %v4745_v18 = vld [vmem:[#allocation16 + $0x8] sm:$0xff]  }
 0xabc   : > { %4521 = vmatpush3.bf16.msra.mxu0 %v4745_v18 }
 0xabd   : > { %4522 = vmatprep.subr.bf16.mxu0 %v5220_v0 }
 0xabf   : > { %3199 = vadd.xlane.f32.xlu1 %v3198_v21  ;;  %3309 = vadd.xlane.f32.xlu0 %v3308_v22 }
 0xac3   : > { %3418 = vadd.xlane.f32.xlu1 %v3417_v23 }
 0xad4   : > { %3314 = vrot.lane.b32.xlu1 %v5935_v42, %s6188_s22  ;;  %s6196_s22 = sld [smem:[#allocation40_spill]] }
 0xad5   : > { %3205 = vrot.lane.b32.xlu0 %v5935_v42, %s5222_s9  ;;  %s6191_s9 = smov 16  }
 0xad9   : > { %3423 = vrot.lane.b32.xlu0 %v5935_v42, %s6189_s19  ;;  %s6197_s19 = sld [smem:[#allocation42_spill]] }
 0xb03   : > { %v2746_v24 = vpop.xlane.xlu0 %2745 }
 0xb04   : > { %4807 = vrcp.f32 %v2746_v24 }
 0xb0b   : > { %v2856_v27 = vpop.xlane.xlu1 %2855 }
 0xb0c   : > { %4809 = vrcp.f32 %v2856_v27  ;;  %v4746_v27 = vld [vmem:[#allocation16] sm:$0xff]  }
 0xb0d   : > { %4523 = vmatpush3.bf16.msra.mxu0 %v4746_v27 }
 0xb0e   : > { %4536 = vmatprep.subr.bf16.mxu0 %v5220_v0 }
 0xb0f   : > { %v2861_v32 = vpop.permute.xlu1 %2860 }
 0xb11   : > { %v4808_v25 = vpop.eup %4807 }
 0xb12   : > { %v2748_v28 = vmul.f32 %v4808_v25, %v4792_v58 }
 0xb13   : > { %v2965_v26 = vpop.xlane.xlu0 %2964  ;;  %v2970_v36 = vpop.permute.xlu1 %2969 }
 0xb14   : > { %4811 = vrcp.f32 %v2965_v26  ;;  %v2749_v30 = vpack.c.bf16 %v2748_v28, %v2748_v28 }
 0xb17   : > { %v2752_v29 = vpop.permute.xlu0 %2751 }
 0xb18   : > { %4443 = vmatpush3.bf16.msra.mxu1 %v2752_v29 }
 0xb19   : > { %4454 = vmatprep.subr.bf16.mxu1 %v5220_v0  ;;  %v4810_v31 = vpop.eup %4809 }
 0xb1a   : > { %v2858_v33 = vmul.f32 %v4810_v31, %v5942_v61 }
 0xb1b   : > { %4445 = vmatmul.mubr.msk.bf16.vlgmr.msra.gmra.mxu1 %vm1734_vm5, %v2749_v30 }
 0xb1c   : > { %4455 = vmatpush3.bf16.msra.mxu1 %v2861_v32  ;;  %4456 = vmatprep.mubr.msk.bf16.mxu1 %vm5221_vm0, %v5220_v0  ;;  %v2859_v34 = vpack.c.bf16 %v2858_v33, %v2858_v33 }
 0xb1d   : > { %4466 = vmatprep.subr.bf16.mxu1 %v5220_v0 }
 0xb21   : > { %v4812_v35 = vpop.eup %4811 }
 0xb22   : > { %v2967_v37 = vmul.f32 %v4812_v35, %v5946_v62 }
 0xb23   : > { %4457 = vmatmul.mubr.msk.bf16.vlgmr.msra.gmra.mxu1 %vm1734_vm5, %v2859_v34 }
 0xb24   : > { %4467 = vmatpush3.bf16.msra.mxu1 %v2970_v36  ;;  %4468 = vmatprep.mubr.msk.bf16.mxu1 %vm5221_vm0, %v5220_v0  ;;  %v2968_v38 = vpack.c.bf16 %v2967_v37, %v2967_v37 }
 0xb25   : > { %4478 = vmatprep.subr.bf16.mxu1 %v5220_v0 }
 0xb2b   : > { %4469 = vmatmul.mubr.msk.bf16.vlgmr.msra.gmra.mxu1 %vm1734_vm5, %v2968_v38 }
 0xb2c   : > { %4479 = vmatpush3.bf16.msra.mxu1 %v5935_v42  ;;  %4480 = vmatprep.mubr.msk.bf16.mxu1 %vm5221_vm0, %v5220_v0 }
 0xb2d   : > { %4490 = vmatprep.subr.bf16.mxu1 %v5220_v0 }
 0xb44   : > { %v3093_v39 = vpop.xlane.xlu1 %3092 }
 0xb45   : > { %4813 = vrcp.f32 %v3093_v39 }
 0xb48   : > { %v3200_v40 = vpop.xlane.xlu1 %3199  ;;  %v3310_v41 = vpop.xlane.xlu0 %3309 }
 0xb49   : > { %4815 = vrcp.f32 %v3200_v40 }
 0xb4a   : > { %4817 = vrcp.f32 %v3310_v41 }
 0xb4c   : > { %v3419_v48 = vpop.xlane.xlu1 %3418  ;;  %v3206_v49 = vpop.permute.xlu0 %3205 }
 0xb4d   : > { %4819 = vrcp.f32 %v3419_v48 }
 0xb50   : > { %v3315_v53 = vpop.permute.xlu1 %3314  ;;  %v3424_v60 = vpop.permute.xlu0 %3423 }
 0xb52   : > { %v4814_v43 = vpop.eup %4813 }
 0xb53   : > { %v3095_v44 = vmul.f32 %v4814_v43, %v4800_v19 }
 0xb55   : > { %v3096_v46 = vpack.c.bf16 %v3095_v44, %v3095_v44 }
 0xb56   : > { %v4816_v47 = vpop.eup %4815 }
 0xb57   : > { %4481 = vmatmul.mubr.msk.bf16.vlgmr.msra.gmra.mxu1 %vm1734_vm5, %v3096_v46  ;;  %v3202_v42 = vmul.f32 %v4816_v47, %v5959_v3  ;;  %v4818_v45 = vpop.eup %4817 }
 0xb58   : > { %4491 = vmatpush3.bf16.msra.mxu1 %v3206_v49  ;;  %4492 = vmatprep.mubr.msk.bf16.mxu1 %vm5221_vm0, %v5220_v0  ;;  %v3312_v50 = vmul.f32 %v4818_v45, %v5962_v20 }
 0xb59   : > { %4502 = vmatprep.subr.bf16.mxu1 %v5220_v0  ;;  %v3203_v52 = vpack.c.bf16 %v3202_v42, %v3202_v42 }
 0xb5a   : > { %v3313_v54 = vpack.c.bf16 %v3312_v50, %v3312_v50  ;;  %v4820_v58 = vpop.eup %4819 }
 0xb5b   : > { %v3421_v51 = vmul.f32 %v4820_v58, %v5968_v4 }
 0xb5d   : > { %v3422_v8 = vpack.c.bf16 %v3421_v51, %v3421_v51 }
 0xb5f   : > { %4493 = vmatmul.mubr.msk.bf16.vlgmr.msra.gmra.mxu1 %vm1734_vm5, %v3203_v52 }
 0xb60   : > { %4503 = vmatpush3.bf16.msra.mxu1 %v3315_v53  ;;  %4504 = vmatprep.mubr.msk.bf16.mxu1 %vm5221_vm0, %v5220_v0 }
 0xb61   : > { %4514 = vmatprep.subr.bf16.mxu1 %v5220_v0 }
 0xb65   : > { %v6004_v59 = vpop.f32.mrf.mxu1 }
 0xb66   : > { %v2685_v46 = vpack.c.bf16 %v6004_v59, %v6004_v59 }
 0xb67   : > { %4505 = vmatmul.mubr.msk.bf16.vlgmr.msra.gmra.mxu1 %vm1734_vm5, %v3313_v54  ;;  %v4434_v61 = vpop.f32.mrf.mxu1  ;;  %v4156_v54 = vld [vmem:[#allocation17] ss:$0 sm:$0xff] }
 0xb68   : > { %4515 = vmatpush3.bf16.msra.mxu1 %v3424_v60  ;;  %4516 = vmatprep.mubr.msk.bf16.mxu1 %vm5221_vm0, %v5220_v0 }
 0xb69   : > { %4528 = vmatprep.subr.bf16.mxu1 %v5220_v0  ;;  %v2682_v62 = vpop.f32.mrf.mxu1 }
 0xb6b   : > { %v4435_v57 = vpop.f32.mrf.mxu1 }
 0xb6f   : > { %4517 = vmatmul.mubr.msk.bf16.vlgmr.msra.gmra.mxu1 %vm1734_vm5, %v3422_v8 }
 0xb70   : > { %4532 = vmatprep.mubr.msk.bf16.mxu1 %vm5221_vm0, %v5220_v0 }
 0xbdb   : > { %v2791_v63 = vpop.f32.mrf.mxu1 }
 0xbdc   : > { %v2797_v9 = vpack.c.bf16 %v2791_v63, %v2791_v63 }
 0xbdd   : > { %v4446_v1 = vpop.f32.mrf.mxu1 }
 0xbde   : > { %3017 = vrot.lane.b32.xlu0 %v2797_v9, %s6190_s1 }
 0xbdf   : > { %v2794_v10 = vpop.f32.mrf.mxu1 }
 0xbe1   : > { %v4447_v11 = vpop.f32.mrf.mxu1 }
 0xbe3   : > { %v2900_v13 = vpop.f32.mrf.mxu1 }
 0xbe4   : > { %v2906_v23 = vpack.c.bf16 %v2900_v13, %v2900_v13 }
 0xbe5   : > { %v4458_v6 = vpop.f32.mrf.mxu1 }
 0xbe7   : > { %v2903_v5 = vpop.f32.mrf.mxu1 }
 0xbe9   : > { %v4459_v7 = vpop.f32.mrf.mxu1 }
 0xbeb   : > { %v3009_v12 = vpop.f32.mrf.mxu1 }
 0xbec   : > { %v3015_v35 = vpack.c.bf16 %v3009_v12, %v3009_v12 }
 0xbed   : > { %v4470_v14 = vpop.f32.mrf.mxu1 }
 0xbef   : > { %v3012_v15 = vpop.f32.mrf.mxu1 }
 0xbf0   : > { %v4748_v15 = vld [vmem:[%s6193_s28] sm:$0xff]  }
 0xbf1   : > { %v4471_v16 = vpop.f32.mrf.mxu1 }
 0xbf2   : > { %v4749_v16 = vld [vmem:[%s6194_s2 + $0x18] sm:$0xff]  }
 0xc17   : > { %v3134_v17 = vpop.f32.mrf.mxu1 }
 0xc18   : > { %v3140_v40 = vpack.c.bf16 %v3134_v17, %v3134_v17 }
 0xc19   : > { %v4482_v2 = vpop.f32.mrf.mxu1 }
 0xc1b   : > { %v3137_v19 = vpop.f32.mrf.mxu1 }
 0xc1d   : > { %v4483_v3 = vpop.f32.mrf.mxu1 }
 0xc1f   : > { %v3245_v20 = vpop.f32.mrf.mxu1 }
 0xc20   : > { %v3251_v21 = vpack.c.bf16 %v3245_v20, %v3245_v20 }
 0xc21   : > { %v4494_v22 = vpop.f32.mrf.mxu1 }
 0xc22   : > { %3471 = vrot.lane.b32.xlu0 %v3251_v21, %s6190_s1 }
 0xc23   : > { %v3248_v4 = vpop.f32.mrf.mxu1 }
 0xc24   : > { %v4160_v4 = vld [vmem:[%s6195_s4] ss:$0 sm:$0xff]  ;;  %s6200_s4 = sld [smem:[#allocation48_spill]] }
 0xc25   : > { %v4495_v24 = vpop.f32.mrf.mxu1 }
 0xc26   : > { %3020 = vrot.lane.b32.xlu0 %v2906_v23, %s6191_s9 }
 0xc27   : > { %v3354_v25 = vpop.f32.mrf.mxu1 }
 0xc28   : > { %v3360_v26 = vpack.c.bf16 %v3354_v25, %v3354_v25  ;;  %v4161_v25 = vld [vmem:[%s5372_s14] ss:$0 sm:$0xff] }
 0xc29   : > { %v4506_v28 = vpop.f32.mrf.mxu1 }
 0xc2a   : > { %3474 = vrot.lane.b32.xlu1 %v3360_v26, %s6191_s9  ;;  %s6198_s9 = sld [smem:[#allocation46_spill]] }
 0xc2b   : > { %v3357_v29 = vpop.f32.mrf.mxu1 }
 0xc2d   : > { %v4507_v30 = vpop.f32.mrf.mxu1 }
 0xc2f   : > { %v3463_v31 = vpop.f32.mrf.mxu1 }
 0xc30   : > { %v3469_v32 = vpack.c.bf16 %v3463_v31, %v3463_v31  ;;  %v4750_v31 = vld [vmem:[%s6194_s2 + $0x10] sm:$0xff]  }
 0xc31   : > { %v4518_v33 = vpop.f32.mrf.mxu1 }
 0xc32   : > { %3477 = vrot.lane.b32.xlu1 %v3469_v32, %s6192_s20  ;;  %v4751_v32 = vld [vmem:[%s6194_s2 + $0x8] sm:$0xff]   ;;  %v4752_v33 = vld [vmem:[%s6194_s2] sm:$0xff]  }
 0xc33   : > { %v3466_v34 = vpop.f32.mrf.mxu1 }
 0xc34   : > { %v4162_v34 = vld [vmem:[%s6196_s22] ss:$0 sm:$0xff]  ;;  %s4081_s22 = sshll.u32 %s5560_s6, 4 }
 0xc35   : > { %v4519_v36 = vpop.f32.mrf.mxu1  ;;  %s1101_s2 = scalar_lea.vmem [#allocation19], %s4081_s22 }
 0xc36   : > { %3023 = vrot.lane.b32.xlu1 %v3015_v35, %s6192_s20  ;;  %s6199_s20 = sld [smem:[#allocation47_spill]]  ;;  %s3819_s3 = sshll.u32 %s1101_s2, 4  ;;  %s6067_s3 = int_to_ptr.vmem [resolvable:$true] %s3819_s3 }
 0xc50   : > { %v3018_v37 = vpop.permute.xlu0 %3017 }
 0xc51   : > { %v3027_v49 = vsel %vm1281_vm2, %v2685_v46, %v3018_v37  ;;  %v4166_v46 = vld [vmem:[%s6197_s19] ss:$0 sm:$0xff]  ;;  %s4180_s19 = sshll.u32 %s5410_s18, 8  ;;  %s5232_s18 = smov [#allocation19]  }
 0xc52   : > { %s6065_s5 = scalar_lea.hbm %s6200_s4, %s4180_s19  ;;  %s5095_s22 = sshll.u32 %s5232_s18, 4  ;;  %s5096_s22 = int_to_ptr.vmem [resolvable:$false] %s5095_s22 }
 0xc53   : > { %s5097_s8 = scalar_lea.vmem %s5096_s22, 512  ;;  %p5098_p5 = scmp.lt.s32.totalorder %s6067_s3, %s5096_s22 }
 0xc94   : > { %v3472_v38 = vpop.permute.xlu0 %3471 }
 0xc95   : > { %v3481_v41 = vsel %vm1281_vm2, %v3140_v40, %v3472_v38 }
 0xc98   : > { %v3021_v47 = vpop.permute.xlu0 %3020 }
 0xc99   : > { %v3029_v42 = vsel %vm1734_vm5, %v3027_v49, %v3021_v47 }
 0xc9c   : > { %v3475_v39 = vpop.permute.xlu1 %3474 }
 0xc9d   : > { %v3483_v43 = vsel %vm1734_vm5, %v3481_v41, %v3475_v39 }
 0xca4   : > { %v3478_v44 = vpop.permute.xlu1 %3477 }
 0xca5   : > { %v3485_v48 = vsel %vm1737_vm4, %v3483_v43, %v3478_v44 }
 0xca6   : > { %v3487_v52 = vrot.slane %v3485_v48, 4 }
 0xca8   : > { %v3024_v45 = vpop.permute.xlu1 %3023 }
 0xca9   : > { %v3031_v53 = vsel %vm1737_vm4, %v3029_v42, %v3024_v45 }
 0xcaa   : > { %v3489_v50 = vsel %vm1343_vm3, %v3031_v53, %v3487_v52 }
 0xcab   : > { %4525 = vmatmul.mubr.msk.bf16.vlgmr.msra.gmra.mxu0 %vm1163_vm1, %v3489_v50 }
 0xcac   : > { %4544 = vmatprep.mubr.msk.bf16.mxu0 %vm5221_vm0, %v5220_v0  ;;  %4537 = vmatpush3.bf16.msra.mxu0 %v4749_v16 }
 0xcad   : > { %4538 = vmatprep.subr.bf16.mxu0 %v5220_v0 }
 0xcb0   : > { %4539 = vmatpush3.bf16.msra.mxu0 %v4750_v31 }
 0xcb1   : > { %4540 = vmatprep.subr.bf16.mxu0 %v5220_v0 }
 0xcb4   : > { %4541 = vmatpush3.bf16.msra.mxu0 %v4751_v32 }
 0xcb5   : > { %4542 = vmatprep.subr.bf16.mxu0 %v5220_v0 }
 0xcb8   : > { %4543 = vmatpush3.bf16.msra.mxu0 %v4752_v33 }
 0xd6b   : > { %v3549_v58 = vpop.f32.mrf.mxu0 }
 0xd6c   : > { %v3550_v59 = vadd.f32 %v4156_v54, %v3549_v58 }
 0xd6d   : > { %v4526_v60 = vpop.f32.mrf.mxu0 }
 0xd6e   : > { %v3556_v61 = vadd.f32 %v3550_v59, %v5834_v55 }
 0xd6f   : > { %v3552_v51 = vpop.f32.mrf.mxu0 }
 0xd70   : > { %v3553_v62 = vadd.f32 %v4156_v54, %v3552_v51  ;;  %v3560_v57 = vsel %vm1163_vm1, %v3556_v61, 0.0 }
 0xd71   : > { %3561 = vadd.xlane.f32.xlu0 %v3560_v57  ;;  %v4527_v8 = vpop.f32.mrf.mxu0 }
 0xd72   : > { %v3557_v63 = vadd.f32 %v3553_v62, %v5836_v56  ;;  %v4747_v56 = vld [vmem:[%s6193_s28 + $0x8] sm:$0xff]  }
 0xd73   : > { %4529 = vmatpush3.bf16.msra.mxu1 %v4747_v56 }
 0xd74   : > { %v3563_v9 = vsel %vm1163_vm1, %v3557_v63, 0.0  ;;  %4530 = vmatprep.subr.bf16.mxu1 %v5220_v0 }
 0xd75   : > { %3564 = vadd.xlane.f32.xlu1 %v3563_v9 }
 0xd77   : > { %4531 = vmatpush3.bf16.msra.mxu1 %v4748_v15 }
 0xdfa   : > { %v3562_v1 = vpop.xlane.xlu0 %3561 }
 0xdfb   : > { %v3566_v10 = vmul.f32 0.03125, %v3562_v1 }
 0xdfd   : > { %v3568_v11 = vsub.f32 %v3556_v61, %v3566_v10 }
 0xdfe   : > { %v3565_v13 = vpop.xlane.xlu1 %3564 }
 0xdff   : > { %v3567_v6 = vmul.f32 0.03125, %v3565_v13  ;;  %v3570_v55 = vmul.f32 %v3568_v11, %v3568_v11 }
 0xe01   : > { %v3569_v5 = vsub.f32 %v3557_v63, %v3567_v6  ;;  %v3572_v7 = vsel %vm1163_vm1, %v3570_v55, 0.0 }
 0xe02   : > { %3573 = vadd.xlane.f32.xlu0 %v3572_v7  ;;  %v4172_v7 = vld [vmem:[%s6198_s9] ss:$0 sm:$0xff]  ;;  %s3806_s9 = scalar_lea.sflag [#allocation4], %s5560_s6 }
 0xe03   : > { %v3571_v12 = vmul.f32 %v3569_v5, %v3569_v5 }
 0xe05   : > { %v3575_v14 = vsel %vm1163_vm1, %v3571_v12, 0.0 }
 0xe06   : > { %3576 = vadd.xlane.f32.xlu0 %v3575_v14  ;;  %v4173_v14 = vld [vmem:[%s6199_s20] ss:$0 sm:$0xff]  ;;  %s5091_s20 = scalar_lea.vmem %s6067_s3, 256 }
 0xe07   : > { %p5092_p7 = scmp.ne.s32.totalorder %s6067_s3, %s5091_s20  ;;  %p5099_p1 = scmp.lt.s32.totalorder %s5097_s8, %s5091_s20 }
 0xe09   : > { %p5093_p6 = pnand %p5092_p7, %p6201_p10  ;;  %p5100_p3 = por %p5099_p1, %p5098_p5 }
 0xe0b   : > { %p5094_p0 = pneg %p5093_p6 }
 0xe0d   : > { %p5101_p4 = pnand %p5100_p3, %p5094_p0 }
 0xe8b   : > { %v3574_v17 = vpop.xlane.xlu0 %3573 }
 0xe8c   : > { %v3578_v2 = vmul.f32 0.03125, %v3574_v17 }
 0xe8e   : > { %v3580_v19 = vadd.f32 1e-05, %v3578_v2 }
 0xe8f   : > { %v3577_v3 = vpop.xlane.xlu0 %3576 }
 0xe90   : > { %4821 = vrsqrt.f32 %v3580_v19  ;;  %v3579_v18 = vmul.f32 0.03125, %v3577_v3 }
 0xe92   : > { %v3581_v20 = vadd.f32 1e-05, %v3579_v18 }
 0xe94   : > { %4823 = vrsqrt.f32 %v3581_v20 }
 0xe9d   : > { %v4822_v21 = vpop.eup %4821 }
 0xe9e   : > { %v3584_v22 = vmul.f32 %v4822_v21, %v3568_v11 }
 0xea0   : > { %v3592_v27 = vmul.f32 %v4160_v4, %v3584_v22 }
 0xea1   : > { %v4824_v23 = vpop.eup %4823 }
 0xea2   : > { %v3585_v24 = vmul.f32 %v4824_v23, %v3569_v5  ;;  %v3600_v28 = vadd.f32 %v4161_v25, %v3592_v27 }
 0xea4   : > { %v3593_v26 = vmul.f32 %v4160_v4, %v3585_v24 }
 0xea6   : > { %v3601_v29 = vadd.f32 %v4161_v25, %v3593_v26 }
 0xea8   : > { %v3602_v30 = vpack.c.bf16 %v3601_v29, %v3600_v28 }
 0xeaa   : > { %4533 = vmatmul.mubr.msk.bf16.vlgmr.msra.gmra.mxu1 %vm1163_vm1, %v3602_v30 }
 0xf6a   : > { %v3663_v35 = vpop.f32.mrf.mxu1 }
 0xf6b   : > { %v3664_v37 = vadd.f32 %v4162_v34, %v3663_v35 }
 0xf6c   : > { %v4534_v36 = vpop.f32.mrf.mxu1 }
 0xf6d   : > { %v3670_v41 = vmax.f32 %v3664_v37, 0.0 }
 0xf6e   : > { %v3666_v38 = vpop.f32.mrf.mxu1 }
 0xf6f   : > { %v3667_v39 = vadd.f32 %v4162_v34, %v3666_v38 }
 0xf70   : > { %v4535_v40 = vpop.f32.mrf.mxu1 }
 0xf71   : > { %v3671_v43 = vmax.f32 %v3667_v39, 0.0 }
 0xf73   : > { %v3672_v44 = vpack.c.bf16 %v3671_v43, %v3670_v41 }
 0xf75   : > { %4545 = vmatmul.mubr.msk.bf16.vlgmr.msra.gmra.mxu0 %vm3712_vm6, %v3672_v44 }
0x1035   : > { %v3750_v47 = vpop.f32.mrf.mxu0 }
0x1036   : > { %v3751_v48 = vadd.f32 %v4166_v46, %v3750_v47 }
0x1037   : > { %v4546_v49 = vpop.f32.mrf.mxu0 }
0x1038   : > { %v3757_v42 = vadd.f32 %v3751_v48, %v3600_v28 }
0x1039   : > { %v3753_v0 = vpop.f32.mrf.mxu0 }
0x103a   : > { %v3754_v52 = vadd.f32 %v4166_v46, %v3753_v0  ;;  %v3761_v45 = vsel %vm1163_vm1, %v3757_v42, 0.0 }
0x103b   : > { %3762 = vadd.xlane.f32.xlu1 %v3761_v45  ;;  %v4547_v53 = vpop.f32.mrf.mxu0 }
0x103c   : > { %v3758_v50 = vadd.f32 %v3754_v52, %v3601_v29 }
0x103e   : > { %v3764_v54 = vsel %vm1163_vm1, %v3758_v50, 0.0 }
0x103f   : > { %3765 = vadd.xlane.f32.xlu0 %v3764_v54 }
0x10c4   : > { %v3763_v58 = vpop.xlane.xlu1 %3762 }
0x10c5   : > { %v3767_v59 = vmul.f32 0.03125, %v3763_v58 }
0x10c7   : > { %v3769_v60 = vsub.f32 %v3757_v42, %v3767_v59 }
0x10c8   : > { %v3766_v61 = vpop.xlane.xlu0 %3765 }
0x10c9   : > { %v3768_v51 = vmul.f32 0.03125, %v3766_v61  ;;  %v3771_v62 = vmul.f32 %v3769_v60, %v3769_v60 }
0x10cb   : > { %v3770_v57 = vsub.f32 %v3758_v50, %v3768_v51  ;;  %v3773_v8 = vsel %vm1163_vm1, %v3771_v62, 0.0 }
0x10cc   : > { %3774 = vadd.xlane.f32.xlu1 %v3773_v8 }
0x10cd   : > { %v3772_v63 = vmul.f32 %v3770_v57, %v3770_v57 }
0x10cf   : > { %v3776_v9 = vsel %vm1163_vm1, %v3772_v63, 0.0 }
0x10d0   : > { %3777 = vadd.xlane.f32.xlu0 %v3776_v9 }
0x1155   : > { %v3775_v1 = vpop.xlane.xlu1 %3774 }
0x1156   : > { %v3779_v10 = vmul.f32 0.03125, %v3775_v1 }
0x1158   : > { %v3781_v11 = vadd.f32 1e-05, %v3779_v10 }
0x1159   : > { %v3778_v13 = vpop.xlane.xlu0 %3777 }
0x115a   : > { %4825 = vrsqrt.f32 %v3781_v11  ;;  %v3780_v6 = vmul.f32 0.03125, %v3778_v13 }
0x115c   : > { %v3782_v55 = vadd.f32 1e-05, %v3780_v6 }
0x115e   : > { %4827 = vrsqrt.f32 %v3782_v55 }
0x1167   : > { %v4826_v5 = vpop.eup %4825 }
0x1168   : > { %v3785_v12 = vmul.f32 %v4826_v5, %v3769_v60 }
0x116a   : > { %v3793_v56 = vmul.f32 %v4172_v7, %v3785_v12 }
0x116b   : > { %v4828_v15 = vpop.eup %4827 }
0x116c   : > { %v3801_v16 = vadd.f32 %v4173_v14, %v3793_v56  ;;  %v3786_v17 = vmul.f32 %v4828_v15, %v3770_v57 }
0x116e   : > { %v3794_v2 = vmul.f32 %v4172_v7, %v3786_v17  ;;  %3803 = vst.msk [vmem:[%s1101_s2] sm:$0xff] %vm1163_vm1, %v3801_v16 }
0x1170   : > { %v3802_v19 = vadd.f32 %v4173_v14, %v3794_v2 }
0x1172   : > { %3804 = vst.msk [vmem:[%s1101_s2 + $0x8] sm:$0xff] %vm1163_vm1, %v3802_v19 }
0x1173   : > { %5104 = shalt.err (!%p5101_p4)
}
0x1174   : > { %s5105_s2 = scalar_lea.hbm %s6065_s5, 256  ;;  %s5109_s19 = scalar_lea.hbm %s6200_s4, 512 }
0x1175   : > { %p5106_p11 = scmp.ne.s32.totalorder %s6065_s5, %s5105_s2  ;;  %p5110_p13 = scmp.lt.s32.totalorder %s6065_s5, %s6200_s4 }
0x1176   : > { %p5111_p2 = scmp.lt.s32.totalorder %s5109_s19, %s5105_s2 }
0x1177   : > { %p5107_p12 = pnand %p5106_p11, %p6201_p10 }
0x1178   : > { %p5112_p8 = por %p5111_p2, %p5110_p13 }
0x1179   : > { %p5108_p9 = pneg %p5107_p12 }
0x117b   : > { %p5113_p7 = pnand %p5112_p8, %p5108_p9 }
0x117d   : > { %5116 = shalt.err (!%p5113_p7)
}
0x117e   : > { %s5233_s8 = smov 128  }
0x117f   : > { %4586 = dma.vmem_to_hbm [thread:$0]  (%p6201_p10), %s6067_s3, 256, %s6065_s5, %s3806_s9, %s5233_s8, %s5233_s8, %s6190_s1  }
0x1180 PF: > { %s3834_s20 = sand.u32 1, %s5163_s7   ;;  %p6202_p6 = scmp.ne.s32.totalorder %s6166_s0, 0 }
0x1181   : > { %p6203_p0 = scmp.ge.s32.totalorder %s5175_s15, 2  ;;  %s3835_s18 = scalar_lea.sflag [#allocation4], %s3834_s20 }
0x1183   : > { %p4621_p5 = pnand %p6203_p0, %p6202_p6 }
0x1185   : > { %p4622_p1 = pneg %p4621_p5 }
0x1187   : > { %5158 = dma.done.wait (%p4622_p1), %s3835_s18, 256  }
0x1188   : > { %5160 = vsyncadd (%p4622_p1), %s3835_s18, 4294967040  ;;  %p77_p3 = scmp.ge.s32.totalorder %s5500_s12, 4   ;;  %s6204_s7 = smov %s5167_s10 }
0x1189   : > { %s6205_s10 = smov %s5171_s11  ;;  %s6206_s11 = smov %s5512_s16 }
0x118a   : > { %s6207_s15 = smov %s5500_s12  ;;  %79 = sbr.rel (!%p77_p3) target bundleno = 68 (0x44), region = 258 }
0x118f   :  { %3840 = vsyncpa [#allocation3], 1 }
0x1190   :  { %3842 = vsyncpa [#allocation3 + $0x1], 1 }
0x1191   :  { %3843 = vsyncpa [#allocation6], 1 }
0x1192   :  { %3844 = vsyncpa [#allocation9], 1 }
0x1193   :  { %3845 = vsyncpa [#allocation12], 1 }
0x1194   :  { %3846 = vsyncpa [#allocation15], 1 }
0x1195   :  { %3847 = vsyncpa [#allocation18], 1 }
0x1196   :  { %3848 = vsyncpa [#allocation4], 1 }
0x1197   :  { %3850 = vsyncpa [#allocation4 + $0x1], 1 }

</bundles_post_ra>
